<compile_context>
chip_gen: v7x
topology: tpu7x:2x2x1
jax: 0.10.0
libtpu: 0.0.40
codegen_flags: <defaults>
</compile_context>

<pallas_src>
import jax
import jax.numpy as jnp
from jax.experimental import pallas as pl
from jax.experimental.pallas import tpu as pltpu


# ----------------------------- fused Pallas kernel -----------------------------

def _seq2seq_fused_kernel(tfmask_ref,                                   # (T,1,1) f32 {0,1}
                          enc_xproj_ref, enc_whh0_ref, enc_wcat_ref, enc_bcat_ref,
                          dec_tokproj_ref, dec_whh0_ref, dec_wcat_ref, dec_bcat_ref,
                          teacher_proj_ref, fc_w_ref, fc_b_ref,
                          out_ref,                                      # (T,B,V)
                          h_ref, c_ref):                                # (B, L*H) scratch
    S, B, G = enc_xproj_ref.shape          # G = 4*H
    H = enc_whh0_ref.shape[0]
    L = h_ref.shape[1] // H
    T = out_ref.shape[0]
    V = out_ref.shape[2]

    # encoder initial states are zero
    h_ref[...] = jnp.zeros_like(h_ref)
    c_ref[...] = jnp.zeros_like(c_ref)

    def cell_update(gates, l):
        # PyTorch gate order: i, f, g, o
        i = jax.nn.sigmoid(gates[:, 0 * H:1 * H])
        f = jax.nn.sigmoid(gates[:, 1 * H:2 * H])
        g = jnp.tanh(gates[:, 2 * H:3 * H])
        o = jax.nn.sigmoid(gates[:, 3 * H:4 * H])
        c_new = f * c_ref[:, l * H:(l + 1) * H] + i * g
        h_new = o * jnp.tanh(c_new)
        c_ref[:, l * H:(l + 1) * H] = c_new
        h_ref[:, l * H:(l + 1) * H] = h_new

    def stack_step(x_proj, whh0_ref, wcat_ref, bcat_ref):
        # layer 0: input projection (incl. bias) precomputed -> only the recurrent dot here
        gates0 = x_proj + jnp.dot(h_ref[:, 0:H], whh0_ref[...],
                                  preferred_element_type=jnp.float32)
        cell_update(gates0, 0)
        # layers 1..L-1: single concat-dot on the contiguous lane slice [h_{l-1}, h_l]
        # (dropout between layers is identity at inference)
        for l in range(1, L):
            hin = h_ref[:, (l - 1) * H:(l + 1) * H]          # new h_{l-1}, old h_l
            gates = (jnp.dot(hin, wcat_ref[l - 1],
                             preferred_element_type=jnp.float32)
                     + bcat_ref[l - 1])
            cell_update(gates, l)

    # ---------------- encoder recurrence ----------------
    for s in range(S):
        stack_step(enc_xproj_ref[s], enc_whh0_ref, enc_wcat_ref, enc_bcat_ref)

    # ---------------- decoder recurrence ----------------
    out_ref[0] = jnp.zeros((B, V), jnp.float32)              # outputs[0] stays zero (as in torch)
    lane_iota = jax.lax.broadcasted_iota(jnp.int32, (B, V), 1)
    cur_proj = teacher_proj_ref[0]                           # token target[0] (always used first)
    for t in range(1, T):
        stack_step(cur_proj, dec_whh0_ref, dec_wcat_ref, dec_bcat_ref)
        h_top = h_ref[:, (L - 1) * H:L * H]
        logits = (jnp.dot(h_top, fc_w_ref[...], preferred_element_type=jnp.float32)
                  + fc_b_ref[...])
        out_ref[t] = logits                                  # lane-dense (B,128) store

        # argmax (first max on ties) via lane reduces: max value -> min masked index
        row_max = jnp.max(logits, axis=1, keepdims=True)
        best = jnp.min(jnp.where(logits == row_max, lane_iota, V),
                       axis=1, keepdims=True)                # (B,1) int32
        pred_onehot = (lane_iota == best).astype(jnp.float32)
        pred_proj = jnp.dot(pred_onehot, dec_tokproj_ref[...],
                            preferred_element_type=jnp.float32)

        # teacher-forcing blend (flag is exactly 0.0 or 1.0 -> exact select)
        tf = tfmask_ref[t]                                   # (1,1)
        cur_proj = tf * teacher_proj_ref[t] + (1.0 - tf) * pred_proj


def _vmem_full(shape):
    return pl.BlockSpec(shape, lambda: (0,) * len(shape),
                        memory_space=pltpu.MemorySpace.VMEM)


# ----------------------------- params & forward -----------------------------

def init_params(key, src_vocab, trg_vocab, emb, hidden, num_layers):
    assert num_layers >= 2
    ks = iter(jax.random.split(key, 32))
    scale = 0.08

    def mat(shape):
        return scale * jax.random.normal(next(ks), shape, dtype=jnp.float32)

    def stack(in_dim):
        return dict(
            w_ih0=mat((in_dim, 4 * hidden)),                       # layer-0 input proj
            b0=mat((1, 4 * hidden)),                               # b_ih + b_hh combined
            whh0=mat((hidden, 4 * hidden)),                        # layer-0 recurrent
            wcat=mat((num_layers - 1, 2 * hidden, 4 * hidden)),    # [W_ih_l; W_hh_l]
            bcat=mat((num_layers - 1, 1, 4 * hidden)),
        )

    return dict(
        enc_emb=mat((src_vocab, emb)),
        dec_emb=mat((trg_vocab, emb)),
        enc=stack(emb),
        dec=stack(emb),
        fc_w=mat((hidden, trg_vocab)),
        fc_b=mat((1, trg_vocab)),
    )


@jax.jit
def seq2seq_forward(params, source, target, key, teacher_force_ratio=0.5):
    S, B = source.shape
    T, _ = target.shape
    H = params["enc"]["whh0"].shape[0]
    G = 4 * H
    L = params["enc"]["wcat"].shape[0] + 1
    V = params["fc_w"].shape[1]
    E = params["enc_emb"].shape[1]

    # TODO(synk): python random.random() teacher forcing replaced by a deterministic
    #             jax.random stream (same distribution, one scalar decision per step).
    tf_mask = (jax.random.uniform(key, (T,)) < teacher_force_ratio)
    tf_mask = tf_mask.astype(jnp.float32).reshape(T, 1, 1)

    # precompute layer-0 input projections outside the serial recurrence
    src_emb = jnp.take(params["enc_emb"], source, axis=0)               # (S,B,E)
    enc_xproj = (src_emb.reshape(S * B, E) @ params["enc"]["w_ih0"]
                 + params["enc"]["b0"]).reshape(S, B, G)
    dec_tok_proj = params["dec_emb"] @ params["dec"]["w_ih0"] + params["dec"]["b0"]  # (V,G)
    teacher_proj = jnp.take(dec_tok_proj, target, axis=0)               # (T,B,G)

    operands = (tf_mask,
                enc_xproj, params["enc"]["whh0"], params["enc"]["wcat"], params["enc"]["bcat"],
                dec_tok_proj, params["dec"]["whh0"], params["dec"]["wcat"], params["dec"]["bcat"],
                teacher_proj, params["fc_w"], params["fc_b"])

    return pl.pallas_call(
        _seq2seq_fused_kernel,
        out_shape=jax.ShapeDtypeStruct((T, B, V), jnp.float32),
        in_specs=[_vmem_full(op.shape) for op in operands],
        out_specs=_vmem_full((T, B, V)),
        scratch_shapes=[pltpu.VMEM((B, L * H), jnp.float32),   # h (all layers, lane-packed)
                        pltpu.VMEM((B, L * H), jnp.float32)],  # c
    )(*operands)


# ----------------------------- pure-JAX reference -----------------------------

def reference_forward(params, source, target, key, teacher_force_ratio=0.5):
    S, B = source.shape
    T, _ = target.shape
    H = params["enc"]["whh0"].shape[0]
    L = params["enc"]["wcat"].shape[0] + 1
    V = params["fc_w"].shape[1]
    tf_flags = jax.random.uniform(key, (T,)) < teacher_force_ratio

    def upd(gates, c_prev):
        i = jax.nn.sigmoid(gates[:, 0:H]); f = jax.nn.sigmoid(gates[:, H:2 * H])
        g = jnp.tanh(gates[:, 2 * H:3 * H]); o = jax.nn.sigmoid(gates[:, 3 * H:4 * H])
        c_new = f * c_prev + i * g
        return o * jnp.tanh(c_new), c_new

    def stack_step(p, x_emb, h, c):
        gates0 = x_emb @ p["w_ih0"] + p["b0"] + h[0] @ p["whh0"]
        h0, c0 = upd(gates0, c[0])
        hs, cs, prev = [h0], [c0], h0
        for l in range(1, L):
            gates = jnp.concatenate([prev, h[l]], axis=1) @ p["wcat"][l - 1] + p["bcat"][l - 1]
            hl, cl = upd(gates, c[l])
            hs.append(hl); cs.append(cl); prev = hl
        return prev, jnp.stack(hs), jnp.stack(cs)

    h = jnp.zeros((L, B, H), jnp.float32)
    c = jnp.zeros((L, B, H), jnp.float32)
    src_emb = jnp.take(params["enc_emb"], source, axis=0)
    for s in range(S):
        _, h, c = stack_step(params["enc"], src_emb[s], h, c)

    outs = [jnp.zeros((B, V), jnp.float32)]
    x = target[0]
    for t in range(1, T):
        x_emb = jnp.take(params["dec_emb"], x, axis=0)
        top, h, c = stack_step(params["dec"], x_emb, h, c)
        logits = top @ params["fc_w"] + params["fc_b"]
        outs.append(logits)
        best = jnp.argmax(logits, axis=1).astype(target.dtype)
        x = jnp.where(tf_flags[t], target[t], best)
    return jnp.stack(outs, axis=0)


# ----------------------------- main -----------------------------

if __name__ == "__main__":
    SRC_VOCAB = 100
    TRG_VOCAB = 128     # lane-aligned vocab / logits
    EMB = 16
    HIDDEN = 32         # 4*H = 128 -> lane-aligned gate width
    NUM_LAYERS = 2
    B = 8
    S_SRC = 10
    T_TRG = 8

    key = jax.random.PRNGKey(0)
    k_param, k_src, k_trg, k_tf = jax.random.split(key, 4)

    params = init_params(k_param, SRC_VOCAB, TRG_VOCAB, EMB, HIDDEN, NUM_LAYERS)
    source = jax.random.randint(k_src, (S_SRC, B), 0, SRC_VOCAB, dtype=jnp.int32)
    target = jax.random.randint(k_trg, (T_TRG, B), 0, TRG_VOCAB, dtype=jnp.int32)

    # 1) numerics check with full teacher forcing (no argmax-cascade ambiguity)
    out_tf = seq2seq_forward(params, source, target, k_tf, 1.0)
    ref_tf = reference_forward(params, source, target, k_tf, 1.0)
    out_tf = jax.block_until_ready(out_tf)
    assert out_tf.shape == (T_TRG, B, TRG_VOCAB)
    assert bool(jnp.all(out_tf[0] == 0.0))
    assert bool(jnp.allclose(out_tf, ref_tf, atol=2e-3, rtol=2e-3))

    # 2) default teacher-force ratio (exercises in-kernel argmax / select path)
    out = seq2seq_forward(params, source, target, k_tf, 0.5)
    out = jax.block_until_ready(out)
    assert out.shape == (T_TRG, B, TRG_VOCAB)
    assert bool(jnp.all(out[0] == 0.0))
    assert bool(jnp.all(jnp.isfinite(out)))

    print("KERNEL_OK")
</pallas_src>

<mosaic_0001>
module attributes {stable_mosaic.version = 11 : i64} {
  func.func @_seq2seq_fused_kernel(%arg0: memref<8x1x1xf32, #tpu.memory_space<vmem>>, %arg1: memref<10x8x128xf32, #tpu.memory_space<vmem>>, %arg2: memref<32x128xf32, #tpu.memory_space<vmem>>, %arg3: memref<1x64x128xf32, #tpu.memory_space<vmem>>, %arg4: memref<1x1x128xf32, #tpu.memory_space<vmem>>, %arg5: memref<128x128xf32, #tpu.memory_space<vmem>>, %arg6: memref<32x128xf32, #tpu.memory_space<vmem>>, %arg7: memref<1x64x128xf32, #tpu.memory_space<vmem>>, %arg8: memref<1x1x128xf32, #tpu.memory_space<vmem>>, %arg9: memref<8x8x128xf32, #tpu.memory_space<vmem>>, %arg10: memref<32x128xf32, #tpu.memory_space<vmem>>, %arg11: memref<1x128xf32, #tpu.memory_space<vmem>>, %arg12: memref<8x8x128xf32, #tpu.memory_space<vmem>>, %arg13: memref<8x64xf32, #tpu.memory_space<vmem>>, %arg14: memref<8x64xf32, #tpu.memory_space<vmem>>) attributes {dimension_semantics = [], scalar_prefetch = 0 : i64, scratch_operands = 2 : i64, tpu.core_type = #tpu.core_type<tc>} {
    %cst = arith.constant 0.000000e+00 : f32
    %0 = vector.broadcast %cst : f32 to vector<8x64xf32>
    %c0 = arith.constant 0 : index
    %c0_0 = arith.constant 0 : index
    %1 = vector.load %arg13[%c0, %c0_0] : memref<8x64xf32, #tpu.memory_space<vmem>>, vector<8x64xf32>
    tpu.vector_store %arg13[%c0, %c0_0], %0 {strides = array<i32>} : memref<8x64xf32, #tpu.memory_space<vmem>>, vector<8x64xf32>,
    %cst_1 = arith.constant 0.000000e+00 : f32
    %2 = vector.broadcast %cst_1 : f32 to vector<8x64xf32>
    %c0_2 = arith.constant 0 : index
    %c0_3 = arith.constant 0 : index
    %3 = vector.load %arg14[%c0_2, %c0_3] : memref<8x64xf32, #tpu.memory_space<vmem>>, vector<8x64xf32>
    tpu.vector_store %arg14[%c0_2, %c0_3], %2 {strides = array<i32>} : memref<8x64xf32, #tpu.memory_space<vmem>>, vector<8x64xf32>,
    %c0_4 = arith.constant 0 : index
    %c0_5 = arith.constant 0 : index
    %c0_6 = arith.constant 0 : index
    %4 = vector.load %arg1[%c0_4, %c0_5, %c0_6] : memref<10x8x128xf32, #tpu.memory_space<vmem>>, vector<1x8x128xf32>
    %5 = vector.shape_cast %4 : vector<1x8x128xf32> to vector<8x128xf32>
    %c0_7 = arith.constant 0 : index
    %c0_8 = arith.constant 0 : index
    %6 = vector.load %arg13[%c0_7, %c0_8] : memref<8x64xf32, #tpu.memory_space<vmem>>, vector<8x32xf32>
    %c0_9 = arith.constant 0 : index
    %c0_10 = arith.constant 0 : index
    %7 = vector.load %arg2[%c0_9, %c0_10] : memref<32x128xf32, #tpu.memory_space<vmem>>, vector<32x128xf32>
    %cst_11 = arith.constant dense<0.000000e+00> : vector<8x128xf32>
    %8 = tpu.matmul %6, %7, %cst_11 {dimension_numbers = #tpu.dot_dimension_numbers<[1], [0], [0], [1], [0, 0, 1, 1], [], []>} : vector<8x32xf32>, vector<32x128xf32>, vector<8x128xf32> -> vector<8x128xf32>
    %9 = arith.addf %5, %8 : vector<8x128xf32>
    %10 = vector.extract_strided_slice %9 {offsets = [0, 0], sizes = [8, 32], strides = [1, 1]} : vector<8x128xf32> to vector<8x32xf32>
    %11 = arith.negf %10 : vector<8x32xf32>
    %12 = math.exp %11 : vector<8x32xf32>
    %cst_12 = arith.constant 1.000000e+00 : f32
    %13 = vector.broadcast %cst_12 : f32 to vector<8x32xf32>
    %14 = arith.addf %13, %12 : vector<8x32xf32>
    %15 = arith.divf %13, %14 : vector<8x32xf32>
    %16 = vector.extract_strided_slice %9 {offsets = [0, 32], sizes = [8, 32], strides = [1, 1]} : vector<8x128xf32> to vector<8x32xf32>
    %17 = arith.negf %16 : vector<8x32xf32>
    %18 = math.exp %17 : vector<8x32xf32>
    %cst_13 = arith.constant 1.000000e+00 : f32
    %19 = vector.broadcast %cst_13 : f32 to vector<8x32xf32>
    %20 = arith.addf %19, %18 : vector<8x32xf32>
    %21 = arith.divf %19, %20 : vector<8x32xf32>
    %22 = vector.extract_strided_slice %9 {offsets = [0, 64], sizes = [8, 32], strides = [1, 1]} : vector<8x128xf32> to vector<8x32xf32>
    %23 = math.tanh %22 : vector<8x32xf32>
    %24 = vector.extract_strided_slice %9 {offsets = [0, 96], sizes = [8, 32], strides = [1, 1]} : vector<8x128xf32> to vector<8x32xf32>
    %25 = arith.negf %24 : vector<8x32xf32>
    %26 = math.exp %25 : vector<8x32xf32>
    %cst_14 = arith.constant 1.000000e+00 : f32
    %27 = vector.broadcast %cst_14 : f32 to vector<8x32xf32>
    %28 = arith.addf %27, %26 : vector<8x32xf32>
    %29 = arith.divf %27, %28 : vector<8x32xf32>
    %c0_15 = arith.constant 0 : index
    %c0_16 = arith.constant 0 : index
    %30 = vector.load %arg14[%c0_15, %c0_16] : memref<8x64xf32, #tpu.memory_space<vmem>>, vector<8x32xf32>
    %31 = arith.mulf %21, %30 : vector<8x32xf32>
    %32 = arith.mulf %15, %23 : vector<8x32xf32>
    %33 = arith.addf %31, %32 : vector<8x32xf32>
    %34 = math.tanh %33 : vector<8x32xf32>
    %35 = arith.mulf %29, %34 : vector<8x32xf32>
    %c0_17 = arith.constant 0 : index
    %c0_18 = arith.constant 0 : index
    %36 = vector.load %arg14[%c0_17, %c0_18] : memref<8x64xf32, #tpu.memory_space<vmem>>, vector<8x32xf32>
    tpu.vector_store %arg14[%c0_17, %c0_18], %33 {strides = array<i32>} : memref<8x64xf32, #tpu.memory_space<vmem>>, vector<8x32xf32>,
    %c0_19 = arith.constant 0 : index
    %c0_20 = arith.constant 0 : index
    %37 = vector.load %arg13[%c0_19, %c0_20] : memref<8x64xf32, #tpu.memory_space<vmem>>, vector<8x32xf32>
    tpu.vector_store %arg13[%c0_19, %c0_20], %35 {strides = array<i32>} : memref<8x64xf32, #tpu.memory_space<vmem>>, vector<8x32xf32>,
    %c0_21 = arith.constant 0 : index
    %c0_22 = arith.constant 0 : index
    %38 = vector.load %arg13[%c0_21, %c0_22] : memref<8x64xf32, #tpu.memory_space<vmem>>, vector<8x64xf32>
    %c0_23 = arith.constant 0 : index
    %c0_24 = arith.constant 0 : index
    %c0_25 = arith.constant 0 : index
    %39 = vector.load %arg3[%c0_23, %c0_24, %c0_25] : memref<1x64x128xf32, #tpu.memory_space<vmem>>, vector<1x64x128xf32>
    %40 = vector.shape_cast %39 : vector<1x64x128xf32> to vector<64x128xf32>
    %cst_26 = arith.constant dense<0.000000e+00> : vector<8x128xf32>
    %41 = tpu.matmul %38, %40, %cst_26 {dimension_numbers = #tpu.dot_dimension_numbers<[1], [0], [0], [1], [0, 0, 1, 1], [], []>} : vector<8x64xf32>, vector<64x128xf32>, vector<8x128xf32> -> vector<8x128xf32>
    %c0_27 = arith.constant 0 : index
    %c0_28 = arith.constant 0 : index
    %c0_29 = arith.constant 0 : index
    %42 = vector.load %arg4[%c0_27, %c0_28, %c0_29] : memref<1x1x128xf32, #tpu.memory_space<vmem>>, vector<1x1x128xf32>
    %43 = vector.shape_cast %42 : vector<1x1x128xf32> to vector<1x128xf32>
    %44 = vector.broadcast %43 : vector<1x128xf32> to vector<8x128xf32>
    %45 = arith.addf %41, %44 : vector<8x128xf32>
    %46 = vector.extract_strided_slice %45 {offsets = [0, 0], sizes = [8, 32], strides = [1, 1]} : vector<8x128xf32> to vector<8x32xf32>
    %47 = arith.negf %46 : vector<8x32xf32>
    %48 = math.exp %47 : vector<8x32xf32>
    %cst_30 = arith.constant 1.000000e+00 : f32
    %49 = vector.broadcast %cst_30 : f32 to vector<8x32xf32>
    %50 = arith.addf %49, %48 : vector<8x32xf32>
    %51 = arith.divf %49, %50 : vector<8x32xf32>
    %52 = vector.extract_strided_slice %45 {offsets = [0, 32], sizes = [8, 32], strides = [1, 1]} : vector<8x128xf32> to vector<8x32xf32>
    %53 = arith.negf %52 : vector<8x32xf32>
    %54 = math.exp %53 : vector<8x32xf32>
    %cst_31 = arith.constant 1.000000e+00 : f32
    %55 = vector.broadcast %cst_31 : f32 to vector<8x32xf32>
    %56 = arith.addf %55, %54 : vector<8x32xf32>
    %57 = arith.divf %55, %56 : vector<8x32xf32>
    %58 = vector.extract_strided_slice %45 {offsets = [0, 64], sizes = [8, 32], strides = [1, 1]} : vector<8x128xf32> to vector<8x32xf32>
    %59 = math.tanh %58 : vector<8x32xf32>
    %60 = vector.extract_strided_slice %45 {offsets = [0, 96], sizes = [8, 32], strides = [1, 1]} : vector<8x128xf32> to vector<8x32xf32>
    %61 = arith.negf %60 : vector<8x32xf32>
    %62 = math.exp %61 : vector<8x32xf32>
    %cst_32 = arith.constant 1.000000e+00 : f32
    %63 = vector.broadcast %cst_32 : f32 to vector<8x32xf32>
    %64 = arith.addf %63, %62 : vector<8x32xf32>
    %65 = arith.divf %63, %64 : vector<8x32xf32>
    %c0_33 = arith.constant 0 : index
    %c32 = arith.constant 32 : index
    %66 = vector.load %arg14[%c0_33, %c32] : memref<8x64xf32, #tpu.memory_space<vmem>>, vector<8x32xf32>
    %67 = arith.mulf %57, %66 : vector<8x32xf32>
    %68 = arith.mulf %51, %59 : vector<8x32xf32>
    %69 = arith.addf %67, %68 : vector<8x32xf32>
    %70 = math.tanh %69 : vector<8x32xf32>
    %71 = arith.mulf %65, %70 : vector<8x32xf32>
    %c0_34 = arith.constant 0 : index
    %c32_35 = arith.constant 32 : index
    %72 = vector.load %arg14[%c0_34, %c32_35] : memref<8x64xf32, #tpu.memory_space<vmem>>, vector<8x32xf32>
    tpu.vector_store %arg14[%c0_34, %c32_35], %69 {strides = array<i32>} : memref<8x64xf32, #tpu.memory_space<vmem>>, vector<8x32xf32>,
    %c0_36 = arith.constant 0 : index
    %c32_37 = arith.constant 32 : index
    %73 = vector.load %arg13[%c0_36, %c32_37] : memref<8x64xf32, #tpu.memory_space<vmem>>, vector<8x32xf32>
    tpu.vector_store %arg13[%c0_36, %c32_37], %71 {strides = array<i32>} : memref<8x64xf32, #tpu.memory_space<vmem>>, vector<8x32xf32>,
    %c1 = arith.constant 1 : index
    %c0_38 = arith.constant 0 : index
    %c0_39 = arith.constant 0 : index
    %74 = vector.load %arg1[%c1, %c0_38, %c0_39] : memref<10x8x128xf32, #tpu.memory_space<vmem>>, vector<1x8x128xf32>
    %75 = vector.shape_cast %74 : vector<1x8x128xf32> to vector<8x128xf32>
    %c0_40 = arith.constant 0 : index
    %c0_41 = arith.constant 0 : index
    %76 = vector.load %arg13[%c0_40, %c0_41] : memref<8x64xf32, #tpu.memory_space<vmem>>, vector<8x32xf32>
    %c0_42 = arith.constant 0 : index
    %c0_43 = arith.constant 0 : index
    %77 = vector.load %arg2[%c0_42, %c0_43] : memref<32x128xf32, #tpu.memory_space<vmem>>, vector<32x128xf32>
    %cst_44 = arith.constant dense<0.000000e+00> : vector<8x128xf32>
    %78 = tpu.matmul %76, %77, %cst_44 {dimension_numbers = #tpu.dot_dimension_numbers<[1], [0], [0], [1], [0, 0, 1, 1], [], []>} : vector<8x32xf32>, vector<32x128xf32>, vector<8x128xf32> -> vector<8x128xf32>
    %79 = arith.addf %75, %78 : vector<8x128xf32>
    %80 = vector.extract_strided_slice %79 {offsets = [0, 0], sizes = [8, 32], strides = [1, 1]} : vector<8x128xf32> to vector<8x32xf32>
    %81 = arith.negf %80 : vector<8x32xf32>
    %82 = math.exp %81 : vector<8x32xf32>
    %cst_45 = arith.constant 1.000000e+00 : f32
    %83 = vector.broadcast %cst_45 : f32 to vector<8x32xf32>
    %84 = arith.addf %83, %82 : vector<8x32xf32>
    %85 = arith.divf %83, %84 : vector<8x32xf32>
    %86 = vector.extract_strided_slice %79 {offsets = [0, 32], sizes = [8, 32], strides = [1, 1]} : vector<8x128xf32> to vector<8x32xf32>
    %87 = arith.negf %86 : vector<8x32xf32>
    %88 = math.exp %87 : vector<8x32xf32>
    %cst_46 = arith.constant 1.000000e+00 : f32
    %89 = vector.broadcast %cst_46 : f32 to vector<8x32xf32>
    %90 = arith.addf %89, %88 : vector<8x32xf32>
    %91 = arith.divf %89, %90 : vector<8x32xf32>
    %92 = vector.extract_strided_slice %79 {offsets = [0, 64], sizes = [8, 32], strides = [1, 1]} : vector<8x128xf32> to vector<8x32xf32>
    %93 = math.tanh %92 : vector<8x32xf32>
    %94 = vector.extract_strided_slice %79 {offsets = [0, 96], sizes = [8, 32], strides = [1, 1]} : vector<8x128xf32> to vector<8x32xf32>
    %95 = arith.negf %94 : vector<8x32xf32>
    %96 = math.exp %95 : vector<8x32xf32>
    %cst_47 = arith.constant 1.000000e+00 : f32
    %97 = vector.broadcast %cst_47 : f32 to vector<8x32xf32>
    %98 = arith.addf %97, %96 : vector<8x32xf32>
    %99 = arith.divf %97, %98 : vector<8x32xf32>
    %c0_48 = arith.constant 0 : index
    %c0_49 = arith.constant 0 : index
    %100 = vector.load %arg14[%c0_48, %c0_49] : memref<8x64xf32, #tpu.memory_space<vmem>>, vector<8x32xf32>
    %101 = arith.mulf %91, %100 : vector<8x32xf32>
    %102 = arith.mulf %85, %93 : vector<8x32xf32>
    %103 = arith.addf %101, %102 : vector<8x32xf32>
    %104 = math.tanh %103 : vector<8x32xf32>
    %105 = arith.mulf %99, %104 : vector<8x32xf32>
    %c0_50 = arith.constant 0 : index
    %c0_51 = arith.constant 0 : index
    %106 = vector.load %arg14[%c0_50, %c0_51] : memref<8x64xf32, #tpu.memory_space<vmem>>, vector<8x32xf32>
    tpu.vector_store %arg14[%c0_50, %c0_51], %103 {strides = array<i32>} : memref<8x64xf32, #tpu.memory_space<vmem>>, vector<8x32xf32>,
    %c0_52 = arith.constant 0 : index
    %c0_53 = arith.constant 0 : index
    %107 = vector.load %arg13[%c0_52, %c0_53] : memref<8x64xf32, #tpu.memory_space<vmem>>, vector<8x32xf32>
    tpu.vector_store %arg13[%c0_52, %c0_53], %105 {strides = array<i32>} : memref<8x64xf32, #tpu.memory_space<vmem>>, vector<8x32xf32>,
    %c0_54 = arith.constant 0 : index
    %c0_55 = arith.constant 0 : index
    %108 = vector.load %arg13[%c0_54, %c0_55] : memref<8x64xf32, #tpu.memory_space<vmem>>, vector<8x64xf32>
    %c0_56 = arith.constant 0 : index
    %c0_57 = arith.constant 0 : index
    %c0_58 = arith.constant 0 : index
    %109 = vector.load %arg3[%c0_56, %c0_57, %c0_58] : memref<1x64x128xf32, #tpu.memory_space<vmem>>, vector<1x64x128xf32>
    %110 = vector.shape_cast %109 : vector<1x64x128xf32> to vector<64x128xf32>
    %cst_59 = arith.constant dense<0.000000e+00> : vector<8x128xf32>
    %111 = tpu.matmul %108, %110, %cst_59 {dimension_numbers = #tpu.dot_dimension_numbers<[1], [0], [0], [1], [0, 0, 1, 1], [], []>} : vector<8x64xf32>, vector<64x128xf32>, vector<8x128xf32> -> vector<8x128xf32>
    %c0_60 = arith.constant 0 : index
    %c0_61 = arith.constant 0 : index
    %c0_62 = arith.constant 0 : index
    %112 = vector.load %arg4[%c0_60, %c0_61, %c0_62] : memref<1x1x128xf32, #tpu.memory_space<vmem>>, vector<1x1x128xf32>
    %113 = vector.shape_cast %112 : vector<1x1x128xf32> to vector<1x128xf32>
    %114 = vector.broadcast %113 : vector<1x128xf32> to vector<8x128xf32>
    %115 = arith.addf %111, %114 : vector<8x128xf32>
    %116 = vector.extract_strided_slice %115 {offsets = [0, 0], sizes = [8, 32], strides = [1, 1]} : vector<8x128xf32> to vector<8x32xf32>
    %117 = arith.negf %116 : vector<8x32xf32>
    %118 = math.exp %117 : vector<8x32xf32>
    %cst_63 = arith.constant 1.000000e+00 : f32
    %119 = vector.broadcast %cst_63 : f32 to vector<8x32xf32>
    %120 = arith.addf %119, %118 : vector<8x32xf32>
    %121 = arith.divf %119, %120 : vector<8x32xf32>
    %122 = vector.extract_strided_slice %115 {offsets = [0, 32], sizes = [8, 32], strides = [1, 1]} : vector<8x128xf32> to vector<8x32xf32>
    %123 = arith.negf %122 : vector<8x32xf32>
    %124 = math.exp %123 : vector<8x32xf32>
    %cst_64 = arith.constant 1.000000e+00 : f32
    %125 = vector.broadcast %cst_64 : f32 to vector<8x32xf32>
    %126 = arith.addf %125, %124 : vector<8x32xf32>
    %127 = arith.divf %125, %126 : vector<8x32xf32>
    %128 = vector.extract_strided_slice %115 {offsets = [0, 64], sizes = [8, 32], strides = [1, 1]} : vector<8x128xf32> to vector<8x32xf32>
    %129 = math.tanh %128 : vector<8x32xf32>
    %130 = vector.extract_strided_slice %115 {offsets = [0, 96], sizes = [8, 32], strides = [1, 1]} : vector<8x128xf32> to vector<8x32xf32>
    %131 = arith.negf %130 : vector<8x32xf32>
    %132 = math.exp %131 : vector<8x32xf32>
    %cst_65 = arith.constant 1.000000e+00 : f32
    %133 = vector.broadcast %cst_65 : f32 to vector<8x32xf32>
    %134 = arith.addf %133, %132 : vector<8x32xf32>
    %135 = arith.divf %133, %134 : vector<8x32xf32>
    %c0_66 = arith.constant 0 : index
    %c32_67 = arith.constant 32 : index
    %136 = vector.load %arg14[%c0_66, %c32_67] : memref<8x64xf32, #tpu.memory_space<vmem>>, vector<8x32xf32>
    %137 = arith.mulf %127, %136 : vector<8x32xf32>
    %138 = arith.mulf %121, %129 : vector<8x32xf32>
    %139 = arith.addf %137, %138 : vector<8x32xf32>
    %140 = math.tanh %139 : vector<8x32xf32>
    %141 = arith.mulf %135, %140 : vector<8x32xf32>
    %c0_68 = arith.constant 0 : index
    %c32_69 = arith.constant 32 : index
    %142 = vector.load %arg14[%c0_68, %c32_69] : memref<8x64xf32, #tpu.memory_space<vmem>>, vector<8x32xf32>
    tpu.vector_store %arg14[%c0_68, %c32_69], %139 {strides = array<i32>} : memref<8x64xf32, #tpu.memory_space<vmem>>, vector<8x32xf32>,
    %c0_70 = arith.constant 0 : index
    %c32_71 = arith.constant 32 : index
    %143 = vector.load %arg13[%c0_70, %c32_71] : memref<8x64xf32, #tpu.memory_space<vmem>>, vector<8x32xf32>
    tpu.vector_store %arg13[%c0_70, %c32_71], %141 {strides = array<i32>} : memref<8x64xf32, #tpu.memory_space<vmem>>, vector<8x32xf32>,
    %c2 = arith.constant 2 : index
    %c0_72 = arith.constant 0 : index
    %c0_73 = arith.constant 0 : index
    %144 = vector.load %arg1[%c2, %c0_72, %c0_73] : memref<10x8x128xf32, #tpu.memory_space<vmem>>, vector<1x8x128xf32>
    %145 = vector.shape_cast %144 : vector<1x8x128xf32> to vector<8x128xf32>
    %c0_74 = arith.constant 0 : index
    %c0_75 = arith.constant 0 : index
    %146 = vector.load %arg13[%c0_74, %c0_75] : memref<8x64xf32, #tpu.memory_space<vmem>>, vector<8x32xf32>
    %c0_76 = arith.constant 0 : index
    %c0_77 = arith.constant 0 : index
    %147 = vector.load %arg2[%c0_76, %c0_77] : memref<32x128xf32, #tpu.memory_space<vmem>>, vector<32x128xf32>
    %cst_78 = arith.constant dense<0.000000e+00> : vector<8x128xf32>
    %148 = tpu.matmul %146, %147, %cst_78 {dimension_numbers = #tpu.dot_dimension_numbers<[1], [0], [0], [1], [0, 0, 1, 1], [], []>} : vector<8x32xf32>, vector<32x128xf32>, vector<8x128xf32> -> vector<8x128xf32>
    %149 = arith.addf %145, %148 : vector<8x128xf32>
    %150 = vector.extract_strided_slice %149 {offsets = [0, 0], sizes = [8, 32], strides = [1, 1]} : vector<8x128xf32> to vector<8x32xf32>
    %151 = arith.negf %150 : vector<8x32xf32>
    %152 = math.exp %151 : vector<8x32xf32>
    %cst_79 = arith.constant 1.000000e+00 : f32
    %153 = vector.broadcast %cst_79 : f32 to vector<8x32xf32>
    %154 = arith.addf %153, %152 : vector<8x32xf32>
    %155 = arith.divf %153, %154 : vector<8x32xf32>
    %156 = vector.extract_strided_slice %149 {offsets = [0, 32], sizes = [8, 32], strides = [1, 1]} : vector<8x128xf32> to vector<8x32xf32>
    %157 = arith.negf %156 : vector<8x32xf32>
    %158 = math.exp %157 : vector<8x32xf32>
    %cst_80 = arith.constant 1.000000e+00 : f32
    %159 = vector.broadcast %cst_80 : f32 to vector<8x32xf32>
    %160 = arith.addf %159, %158 : vector<8x32xf32>
    %161 = arith.divf %159, %160 : vector<8x32xf32>
    %162 = vector.extract_strided_slice %149 {offsets = [0, 64], sizes = [8, 32], strides = [1, 1]} : vector<8x128xf32> to vector<8x32xf32>
    %163 = math.tanh %162 : vector<8x32xf32>
    %164 = vector.extract_strided_slice %149 {offsets = [0, 96], sizes = [8, 32], strides = [1, 1]} : vector<8x128xf32> to vector<8x32xf32>
    %165 = arith.negf %164 : vector<8x32xf32>
    %166 = math.exp %165 : vector<8x32xf32>
    %cst_81 = arith.constant 1.000000e+00 : f32
    %167 = vector.broadcast %cst_81 : f32 to vector<8x32xf32>
    %168 = arith.addf %167, %166 : vector<8x32xf32>
    %169 = arith.divf %167, %168 : vector<8x32xf32>
    %c0_82 = arith.constant 0 : index
    %c0_83 = arith.constant 0 : index
    %170 = vector.load %arg14[%c0_82, %c0_83] : memref<8x64xf32, #tpu.memory_space<vmem>>, vector<8x32xf32>
    %171 = arith.mulf %161, %170 : vector<8x32xf32>
    %172 = arith.mulf %155, %163 : vector<8x32xf32>
    %173 = arith.addf %171, %172 : vector<8x32xf32>
    %174 = math.tanh %173 : vector<8x32xf32>
    %175 = arith.mulf %169, %174 : vector<8x32xf32>
    %c0_84 = arith.constant 0 : index
    %c0_85 = arith.constant 0 : index
    %176 = vector.load %arg14[%c0_84, %c0_85] : memref<8x64xf32, #tpu.memory_space<vmem>>, vector<8x32xf32>
    tpu.vector_store %arg14[%c0_84, %c0_85], %173 {strides = array<i32>} : memref<8x64xf32, #tpu.memory_space<vmem>>, vector<8x32xf32>,
    %c0_86 = arith.constant 0 : index
    %c0_87 = arith.constant 0 : index
    %177 = vector.load %arg13[%c0_86, %c0_87] : memref<8x64xf32, #tpu.memory_space<vmem>>, vector<8x32xf32>
    tpu.vector_store %arg13[%c0_86, %c0_87], %175 {strides = array<i32>} : memref<8x64xf32, #tpu.memory_space<vmem>>, vector<8x32xf32>,
    %c0_88 = arith.constant 0 : index
    %c0_89 = arith.constant 0 : index
    %178 = vector.load %arg13[%c0_88, %c0_89] : memref<8x64xf32, #tpu.memory_space<vmem>>, vector<8x64xf32>
    %c0_90 = arith.constant 0 : index
    %c0_91 = arith.constant 0 : index
    %c0_92 = arith.constant 0 : index
    %179 = vector.load %arg3[%c0_90, %c0_91, %c0_92] : memref<1x64x128xf32, #tpu.memory_space<vmem>>, vector<1x64x128xf32>
    %180 = vector.shape_cast %179 : vector<1x64x128xf32> to vector<64x128xf32>
    %cst_93 = arith.constant dense<0.000000e+00> : vector<8x128xf32>
    %181 = tpu.matmul %178, %180, %cst_93 {dimension_numbers = #tpu.dot_dimension_numbers<[1], [0], [0], [1], [0, 0, 1, 1], [], []>} : vector<8x64xf32>, vector<64x128xf32>, vector<8x128xf32> -> vector<8x128xf32>
    %c0_94 = arith.constant 0 : index
    %c0_95 = arith.constant 0 : index
    %c0_96 = arith.constant 0 : index
    %182 = vector.load %arg4[%c0_94, %c0_95, %c0_96] : memref<1x1x128xf32, #tpu.memory_space<vmem>>, vector<1x1x128xf32>
    %183 = vector.shape_cast %182 : vector<1x1x128xf32> to vector<1x128xf32>
    %184 = vector.broadcast %183 : vector<1x128xf32> to vector<8x128xf32>
    %185 = arith.addf %181, %184 : vector<8x128xf32>
    %186 = vector.extract_strided_slice %185 {offsets = [0, 0], sizes = [8, 32], strides = [1, 1]} : vector<8x128xf32> to vector<8x32xf32>
    %187 = arith.negf %186 : vector<8x32xf32>
    %188 = math.exp %187 : vector<8x32xf32>
    %cst_97 = arith.constant 1.000000e+00 : f32
    %189 = vector.broadcast %cst_97 : f32 to vector<8x32xf32>
    %190 = arith.addf %189, %188 : vector<8x32xf32>
    %191 = arith.divf %189, %190 : vector<8x32xf32>
    %192 = vector.extract_strided_slice %185 {offsets = [0, 32], sizes = [8, 32], strides = [1, 1]} : vector<8x128xf32> to vector<8x32xf32>
    %193 = arith.negf %192 : vector<8x32xf32>
    %194 = math.exp %193 : vector<8x32xf32>
    %cst_98 = arith.constant 1.000000e+00 : f32
    %195 = vector.broadcast %cst_98 : f32 to vector<8x32xf32>
    %196 = arith.addf %195, %194 : vector<8x32xf32>
    %197 = arith.divf %195, %196 : vector<8x32xf32>
    %198 = vector.extract_strided_slice %185 {offsets = [0, 64], sizes = [8, 32], strides = [1, 1]} : vector<8x128xf32> to vector<8x32xf32>
    %199 = math.tanh %198 : vector<8x32xf32>
    %200 = vector.extract_strided_slice %185 {offsets = [0, 96], sizes = [8, 32], strides = [1, 1]} : vector<8x128xf32> to vector<8x32xf32>
    %201 = arith.negf %200 : vector<8x32xf32>
    %202 = math.exp %201 : vector<8x32xf32>
    %cst_99 = arith.constant 1.000000e+00 : f32
    %203 = vector.broadcast %cst_99 : f32 to vector<8x32xf32>
    %204 = arith.addf %203, %202 : vector<8x32xf32>
    %205 = arith.divf %203, %204 : vector<8x32xf32>
    %c0_100 = arith.constant 0 : index
    %c32_101 = arith.constant 32 : index
    %206 = vector.load %arg14[%c0_100, %c32_101] : memref<8x64xf32, #tpu.memory_space<vmem>>, vector<8x32xf32>
    %207 = arith.mulf %197, %206 : vector<8x32xf32>
    %208 = arith.mulf %191, %199 : vector<8x32xf32>
    %209 = arith.addf %207, %208 : vector<8x32xf32>
    %210 = math.tanh %209 : vector<8x32xf32>
    %211 = arith.mulf %205, %210 : vector<8x32xf32>
    %c0_102 = arith.constant 0 : index
    %c32_103 = arith.constant 32 : index
    %212 = vector.load %arg14[%c0_102, %c32_103] : memref<8x64xf32, #tpu.memory_space<vmem>>, vector<8x32xf32>
    tpu.vector_store %arg14[%c0_102, %c32_103], %209 {strides = array<i32>} : memref<8x64xf32, #tpu.memory_space<vmem>>, vector<8x32xf32>,
    %c0_104 = arith.constant 0 : index
    %c32_105 = arith.constant 32 : index
    %213 = vector.load %arg13[%c0_104, %c32_105] : memref<8x64xf32, #tpu.memory_space<vmem>>, vector<8x32xf32>
    tpu.vector_store %arg13[%c0_104, %c32_105], %211 {strides = array<i32>} : memref<8x64xf32, #tpu.memory_space<vmem>>, vector<8x32xf32>,
    %c3 = arith.constant 3 : index
    %c0_106 = arith.constant 0 : index
    %c0_107 = arith.constant 0 : index
    %214 = vector.load %arg1[%c3, %c0_106, %c0_107] : memref<10x8x128xf32, #tpu.memory_space<vmem>>, vector<1x8x128xf32>
    %215 = vector.shape_cast %214 : vector<1x8x128xf32> to vector<8x128xf32>
    %c0_108 = arith.constant 0 : index
    %c0_109 = arith.constant 0 : index
    %216 = vector.load %arg13[%c0_108, %c0_109] : memref<8x64xf32, #tpu.memory_space<vmem>>, vector<8x32xf32>
    %c0_110 = arith.constant 0 : index
    %c0_111 = arith.constant 0 : index
    %217 = vector.load %arg2[%c0_110, %c0_111] : memref<32x128xf32, #tpu.memory_space<vmem>>, vector<32x128xf32>
    %cst_112 = arith.constant dense<0.000000e+00> : vector<8x128xf32>
    %218 = tpu.matmul %216, %217, %cst_112 {dimension_numbers = #tpu.dot_dimension_numbers<[1], [0], [0], [1], [0, 0, 1, 1], [], []>} : vector<8x32xf32>, vector<32x128xf32>, vector<8x128xf32> -> vector<8x128xf32>
    %219 = arith.addf %215, %218 : vector<8x128xf32>
    %220 = vector.extract_strided_slice %219 {offsets = [0, 0], sizes = [8, 32], strides = [1, 1]} : vector<8x128xf32> to vector<8x32xf32>
    %221 = arith.negf %220 : vector<8x32xf32>
    %222 = math.exp %221 : vector<8x32xf32>
    %cst_113 = arith.constant 1.000000e+00 : f32
    %223 = vector.broadcast %cst_113 : f32 to vector<8x32xf32>
    %224 = arith.addf %223, %222 : vector<8x32xf32>
    %225 = arith.divf %223, %224 : vector<8x32xf32>
    %226 = vector.extract_strided_slice %219 {offsets = [0, 32], sizes = [8, 32], strides = [1, 1]} : vector<8x128xf32> to vector<8x32xf32>
    %227 = arith.negf %226 : vector<8x32xf32>
    %228 = math.exp %227 : vector<8x32xf32>
    %cst_114 = arith.constant 1.000000e+00 : f32
    %229 = vector.broadcast %cst_114 : f32 to vector<8x32xf32>
    %230 = arith.addf %229, %228 : vector<8x32xf32>
    %231 = arith.divf %229, %230 : vector<8x32xf32>
    %232 = vector.extract_strided_slice %219 {offsets = [0, 64], sizes = [8, 32], strides = [1, 1]} : vector<8x128xf32> to vector<8x32xf32>
    %233 = math.tanh %232 : vector<8x32xf32>
    %234 = vector.extract_strided_slice %219 {offsets = [0, 96], sizes = [8, 32], strides = [1, 1]} : vector<8x128xf32> to vector<8x32xf32>
    %235 = arith.negf %234 : vector<8x32xf32>
    %236 = math.exp %235 : vector<8x32xf32>
    %cst_115 = arith.constant 1.000000e+00 : f32
    %237 = vector.broadcast %cst_115 : f32 to vector<8x32xf32>
    %238 = arith.addf %237, %236 : vector<8x32xf32>
    %239 = arith.divf %237, %238 : vector<8x32xf32>
    %c0_116 = arith.constant 0 : index
    %c0_117 = arith.constant 0 : index
    %240 = vector.load %arg14[%c0_116, %c0_117] : memref<8x64xf32, #tpu.memory_space<vmem>>, vector<8x32xf32>
    %241 = arith.mulf %231, %240 : vector<8x32xf32>
    %242 = arith.mulf %225, %233 : vector<8x32xf32>
    %243 = arith.addf %241, %242 : vector<8x32xf32>
    %244 = math.tanh %243 : vector<8x32xf32>
    %245 = arith.mulf %239, %244 : vector<8x32xf32>
    %c0_118 = arith.constant 0 : index
    %c0_119 = arith.constant 0 : index
    %246 = vector.load %arg14[%c0_118, %c0_119] : memref<8x64xf32, #tpu.memory_space<vmem>>, vector<8x32xf32>
    tpu.vector_store %arg14[%c0_118, %c0_119], %243 {strides = array<i32>} : memref<8x64xf32, #tpu.memory_space<vmem>>, vector<8x32xf32>,
    %c0_120 = arith.constant 0 : index
    %c0_121 = arith.constant 0 : index
    %247 = vector.load %arg13[%c0_120, %c0_121] : memref<8x64xf32, #tpu.memory_space<vmem>>, vector<8x32xf32>
    tpu.vector_store %arg13[%c0_120, %c0_121], %245 {strides = array<i32>} : memref<8x64xf32, #tpu.memory_space<vmem>>, vector<8x32xf32>,
    %c0_122 = arith.constant 0 : index
    %c0_123 = arith.constant 0 : index
    %248 = vector.load %arg13[%c0_122, %c0_123] : memref<8x64xf32, #tpu.memory_space<vmem>>, vector<8x64xf32>
    %c0_124 = arith.constant 0 : index
    %c0_125 = arith.constant 0 : index
    %c0_126 = arith.constant 0 : index
    %249 = vector.load %arg3[%c0_124, %c0_125, %c0_126] : memref<1x64x128xf32, #tpu.memory_space<vmem>>, vector<1x64x128xf32>
    %250 = vector.shape_cast %249 : vector<1x64x128xf32> to vector<64x128xf32>
    %cst_127 = arith.constant dense<0.000000e+00> : vector<8x128xf32>
    %251 = tpu.matmul %248, %250, %cst_127 {dimension_numbers = #tpu.dot_dimension_numbers<[1], [0], [0], [1], [0, 0, 1, 1], [], []>} : vector<8x64xf32>, vector<64x128xf32>, vector<8x128xf32> -> vector<8x128xf32>
    %c0_128 = arith.constant 0 : index
    %c0_129 = arith.constant 0 : index
    %c0_130 = arith.constant 0 : index
    %252 = vector.load %arg4[%c0_128, %c0_129, %c0_130] : memref<1x1x128xf32, #tpu.memory_space<vmem>>, vector<1x1x128xf32>
    %253 = vector.shape_cast %252 : vector<1x1x128xf32> to vector<1x128xf32>
    %254 = vector.broadcast %253 : vector<1x128xf32> to vector<8x128xf32>
    %255 = arith.addf %251, %254 : vector<8x128xf32>
    %256 = vector.extract_strided_slice %255 {offsets = [0, 0], sizes = [8, 32], strides = [1, 1]} : vector<8x128xf32> to vector<8x32xf32>
    %257 = arith.negf %256 : vector<8x32xf32>
    %258 = math.exp %257 : vector<8x32xf32>
    %cst_131 = arith.constant 1.000000e+00 : f32
    %259 = vector.broadcast %cst_131 : f32 to vector<8x32xf32>
    %260 = arith.addf %259, %258 : vector<8x32xf32>
    %261 = arith.divf %259, %260 : vector<8x32xf32>
    %262 = vector.extract_strided_slice %255 {offsets = [0, 32], sizes = [8, 32], strides = [1, 1]} : vector<8x128xf32> to vector<8x32xf32>
    %263 = arith.negf %262 : vector<8x32xf32>
    %264 = math.exp %263 : vector<8x32xf32>
    %cst_132 = arith.constant 1.000000e+00 : f32
    %265 = vector.broadcast %cst_132 : f32 to vector<8x32xf32>
    %266 = arith.addf %265, %264 : vector<8x32xf32>
    %267 = arith.divf %265, %266 : vector<8x32xf32>
    %268 = vector.extract_strided_slice %255 {offsets = [0, 64], sizes = [8, 32], strides = [1, 1]} : vector<8x128xf32> to vector<8x32xf32>
    %269 = math.tanh %268 : vector<8x32xf32>
    %270 = vector.extract_strided_slice %255 {offsets = [0, 96], sizes = [8, 32], strides = [1, 1]} : vector<8x128xf32> to vector<8x32xf32>
    %271 = arith.negf %270 : vector<8x32xf32>
    %272 = math.exp %271 : vector<8x32xf32>
    %cst_133 = arith.constant 1.000000e+00 : f32
    %273 = vector.broadcast %cst_133 : f32 to vector<8x32xf32>
    %274 = arith.addf %273, %272 : vector<8x32xf32>
    %275 = arith.divf %273, %274 : vector<8x32xf32>
    %c0_134 = arith.constant 0 : index
    %c32_135 = arith.constant 32 : index
    %276 = vector.load %arg14[%c0_134, %c32_135] : memref<8x64xf32, #tpu.memory_space<vmem>>, vector<8x32xf32>
    %277 = arith.mulf %267, %276 : vector<8x32xf32>
    %278 = arith.mulf %261, %269 : vector<8x32xf32>
    %279 = arith.addf %277, %278 : vector<8x32xf32>
    %280 = math.tanh %279 : vector<8x32xf32>
    %281 = arith.mulf %275, %280 : vector<8x32xf32>
    %c0_136 = arith.constant 0 : index
    %c32_137 = arith.constant 32 : index
    %282 = vector.load %arg14[%c0_136, %c32_137] : memref<8x64xf32, #tpu.memory_space<vmem>>, vector<8x32xf32>
    tpu.vector_store %arg14[%c0_136, %c32_137], %279 {strides = array<i32>} : memref<8x64xf32, #tpu.memory_space<vmem>>, vector<8x32xf32>,
    %c0_138 = arith.constant 0 : index
    %c32_139 = arith.constant 32 : index
    %283 = vector.load %arg13[%c0_138, %c32_139] : memref<8x64xf32, #tpu.memory_space<vmem>>, vector<8x32xf32>
    tpu.vector_store %arg13[%c0_138, %c32_139], %281 {strides = array<i32>} : memref<8x64xf32, #tpu.memory_space<vmem>>, vector<8x32xf32>,
    %c4 = arith.constant 4 : index
    %c0_140 = arith.constant 0 : index
    %c0_141 = arith.constant 0 : index
    %284 = vector.load %arg1[%c4, %c0_140, %c0_141] : memref<10x8x128xf32, #tpu.memory_space<vmem>>, vector<1x8x128xf32>
    %285 = vector.shape_cast %284 : vector<1x8x128xf32> to vector<8x128xf32>
    %c0_142 = arith.constant 0 : index
    %c0_143 = arith.constant 0 : index
    %286 = vector.load %arg13[%c0_142, %c0_143] : memref<8x64xf32, #tpu.memory_space<vmem>>, vector<8x32xf32>
    %c0_144 = arith.constant 0 : index
    %c0_145 = arith.constant 0 : index
    %287 = vector.load %arg2[%c0_144, %c0_145] : memref<32x128xf32, #tpu.memory_space<vmem>>, vector<32x128xf32>
    %cst_146 = arith.constant dense<0.000000e+00> : vector<8x128xf32>
    %288 = tpu.matmul %286, %287, %cst_146 {dimension_numbers = #tpu.dot_dimension_numbers<[1], [0], [0], [1], [0, 0, 1, 1], [], []>} : vector<8x32xf32>, vector<32x128xf32>, vector<8x128xf32> -> vector<8x128xf32>
    %289 = arith.addf %285, %288 : vector<8x128xf32>
    %290 = vector.extract_strided_slice %289 {offsets = [0, 0], sizes = [8, 32], strides = [1, 1]} : vector<8x128xf32> to vector<8x32xf32>
    %291 = arith.negf %290 : vector<8x32xf32>
    %292 = math.exp %291 : vector<8x32xf32>
    %cst_147 = arith.constant 1.000000e+00 : f32
    %293 = vector.broadcast %cst_147 : f32 to vector<8x32xf32>
    %294 = arith.addf %293, %292 : vector<8x32xf32>
    %295 = arith.divf %293, %294 : vector<8x32xf32>
    %296 = vector.extract_strided_slice %289 {offsets = [0, 32], sizes = [8, 32], strides = [1, 1]} : vector<8x128xf32> to vector<8x32xf32>
    %297 = arith.negf %296 : vector<8x32xf32>
    %298 = math.exp %297 : vector<8x32xf32>
    %cst_148 = arith.constant 1.000000e+00 : f32
    %299 = vector.broadcast %cst_148 : f32 to vector<8x32xf32>
    %300 = arith.addf %299, %298 : vector<8x32xf32>
    %301 = arith.divf %299, %300 : vector<8x32xf32>
    %302 = vector.extract_strided_slice %289 {offsets = [0, 64], sizes = [8, 32], strides = [1, 1]} : vector<8x128xf32> to vector<8x32xf32>
    %303 = math.tanh %302 : vector<8x32xf32>
    %304 = vector.extract_strided_slice %289 {offsets = [0, 96], sizes = [8, 32], strides = [1, 1]} : vector<8x128xf32> to vector<8x32xf32>
    %305 = arith.negf %304 : vector<8x32xf32>
    %306 = math.exp %305 : vector<8x32xf32>
    %cst_149 = arith.constant 1.000000e+00 : f32
    %307 = vector.broadcast %cst_149 : f32 to vector<8x32xf32>
    %308 = arith.addf %307, %306 : vector<8x32xf32>
    %309 = arith.divf %307, %308 : vector<8x32xf32>
    %c0_150 = arith.constant 0 : index
    %c0_151 = arith.constant 0 : index
    %310 = vector.load %arg14[%c0_150, %c0_151] : memref<8x64xf32, #tpu.memory_space<vmem>>, vector<8x32xf32>
    %311 = arith.mulf %301, %310 : vector<8x32xf32>
    %312 = arith.mulf %295, %303 : vector<8x32xf32>
    %313 = arith.addf %311, %312 : vector<8x32xf32>
    %314 = math.tanh %313 : vector<8x32xf32>
    %315 = arith.mulf %309, %314 : vector<8x32xf32>
    %c0_152 = arith.constant 0 : index
    %c0_153 = arith.constant 0 : index
    %316 = vector.load %arg14[%c0_152, %c0_153] : memref<8x64xf32, #tpu.memory_space<vmem>>, vector<8x32xf32>
    tpu.vector_store %arg14[%c0_152, %c0_153], %313 {strides = array<i32>} : memref<8x64xf32, #tpu.memory_space<vmem>>, vector<8x32xf32>,
    %c0_154 = arith.constant 0 : index
    %c0_155 = arith.constant 0 : index
    %317 = vector.load %arg13[%c0_154, %c0_155] : memref<8x64xf32, #tpu.memory_space<vmem>>, vector<8x32xf32>
    tpu.vector_store %arg13[%c0_154, %c0_155], %315 {strides = array<i32>} : memref<8x64xf32, #tpu.memory_space<vmem>>, vector<8x32xf32>,
    %c0_156 = arith.constant 0 : index
    %c0_157 = arith.constant 0 : index
    %318 = vector.load %arg13[%c0_156, %c0_157] : memref<8x64xf32, #tpu.memory_space<vmem>>, vector<8x64xf32>
    %c0_158 = arith.constant 0 : index
    %c0_159 = arith.constant 0 : index
    %c0_160 = arith.constant 0 : index
    %319 = vector.load %arg3[%c0_158, %c0_159, %c0_160] : memref<1x64x128xf32, #tpu.memory_space<vmem>>, vector<1x64x128xf32>
    %320 = vector.shape_cast %319 : vector<1x64x128xf32> to vector<64x128xf32>
    %cst_161 = arith.constant dense<0.000000e+00> : vector<8x128xf32>
    %321 = tpu.matmul %318, %320, %cst_161 {dimension_numbers = #tpu.dot_dimension_numbers<[1], [0], [0], [1], [0, 0, 1, 1], [], []>} : vector<8x64xf32>, vector<64x128xf32>, vector<8x128xf32> -> vector<8x128xf32>
    %c0_162 = arith.constant 0 : index
    %c0_163 = arith.constant 0 : index
    %c0_164 = arith.constant 0 : index
    %322 = vector.load %arg4[%c0_162, %c0_163, %c0_164] : memref<1x1x128xf32, #tpu.memory_space<vmem>>, vector<1x1x128xf32>
    %323 = vector.shape_cast %322 : vector<1x1x128xf32> to vector<1x128xf32>
    %324 = vector.broadcast %323 : vector<1x128xf32> to vector<8x128xf32>
    %325 = arith.addf %321, %324 : vector<8x128xf32>
    %326 = vector.extract_strided_slice %325 {offsets = [0, 0], sizes = [8, 32], strides = [1, 1]} : vector<8x128xf32> to vector<8x32xf32>
    %327 = arith.negf %326 : vector<8x32xf32>
    %328 = math.exp %327 : vector<8x32xf32>
    %cst_165 = arith.constant 1.000000e+00 : f32
    %329 = vector.broadcast %cst_165 : f32 to vector<8x32xf32>
    %330 = arith.addf %329, %328 : vector<8x32xf32>
    %331 = arith.divf %329, %330 : vector<8x32xf32>
    %332 = vector.extract_strided_slice %325 {offsets = [0, 32], sizes = [8, 32], strides = [1, 1]} : vector<8x128xf32> to vector<8x32xf32>
    %333 = arith.negf %332 : vector<8x32xf32>
    %334 = math.exp %333 : vector<8x32xf32>
    %cst_166 = arith.constant 1.000000e+00 : f32
    %335 = vector.broadcast %cst_166 : f32 to vector<8x32xf32>
    %336 = arith.addf %335, %334 : vector<8x32xf32>
    %337 = arith.divf %335, %336 : vector<8x32xf32>
    %338 = vector.extract_strided_slice %325 {offsets = [0, 64], sizes = [8, 32], strides = [1, 1]} : vector<8x128xf32> to vector<8x32xf32>
    %339 = math.tanh %338 : vector<8x32xf32>
    %340 = vector.extract_strided_slice %325 {offsets = [0, 96], sizes = [8, 32], strides = [1, 1]} : vector<8x128xf32> to vector<8x32xf32>
    %341 = arith.negf %340 : vector<8x32xf32>
    %342 = math.exp %341 : vector<8x32xf32>
    %cst_167 = arith.constant 1.000000e+00 : f32
    %343 = vector.broadcast %cst_167 : f32 to vector<8x32xf32>
    %344 = arith.addf %343, %342 : vector<8x32xf32>
    %345 = arith.divf %343, %344 : vector<8x32xf32>
    %c0_168 = arith.constant 0 : index
    %c32_169 = arith.constant 32 : index
    %346 = vector.load %arg14[%c0_168, %c32_169] : memref<8x64xf32, #tpu.memory_space<vmem>>, vector<8x32xf32>
    %347 = arith.mulf %337, %346 : vector<8x32xf32>
    %348 = arith.mulf %331, %339 : vector<8x32xf32>
    %349 = arith.addf %347, %348 : vector<8x32xf32>
    %350 = math.tanh %349 : vector<8x32xf32>
    %351 = arith.mulf %345, %350 : vector<8x32xf32>
    %c0_170 = arith.constant 0 : index
    %c32_171 = arith.constant 32 : index
    %352 = vector.load %arg14[%c0_170, %c32_171] : memref<8x64xf32, #tpu.memory_space<vmem>>, vector<8x32xf32>
    tpu.vector_store %arg14[%c0_170, %c32_171], %349 {strides = array<i32>} : memref<8x64xf32, #tpu.memory_space<vmem>>, vector<8x32xf32>,
    %c0_172 = arith.constant 0 : index
    %c32_173 = arith.constant 32 : index
    %353 = vector.load %arg13[%c0_172, %c32_173] : memref<8x64xf32, #tpu.memory_space<vmem>>, vector<8x32xf32>
    tpu.vector_store %arg13[%c0_172, %c32_173], %351 {strides = array<i32>} : memref<8x64xf32, #tpu.memory_space<vmem>>, vector<8x32xf32>,
    %c5 = arith.constant 5 : index
    %c0_174 = arith.constant 0 : index
    %c0_175 = arith.constant 0 : index
    %354 = vector.load %arg1[%c5, %c0_174, %c0_175] : memref<10x8x128xf32, #tpu.memory_space<vmem>>, vector<1x8x128xf32>
    %355 = vector.shape_cast %354 : vector<1x8x128xf32> to vector<8x128xf32>
    %c0_176 = arith.constant 0 : index
    %c0_177 = arith.constant 0 : index
    %356 = vector.load %arg13[%c0_176, %c0_177] : memref<8x64xf32, #tpu.memory_space<vmem>>, vector<8x32xf32>
    %c0_178 = arith.constant 0 : index
    %c0_179 = arith.constant 0 : index
    %357 = vector.load %arg2[%c0_178, %c0_179] : memref<32x128xf32, #tpu.memory_space<vmem>>, vector<32x128xf32>
    %cst_180 = arith.constant dense<0.000000e+00> : vector<8x128xf32>
    %358 = tpu.matmul %356, %357, %cst_180 {dimension_numbers = #tpu.dot_dimension_numbers<[1], [0], [0], [1], [0, 0, 1, 1], [], []>} : vector<8x32xf32>, vector<32x128xf32>, vector<8x128xf32> -> vector<8x128xf32>
    %359 = arith.addf %355, %358 : vector<8x128xf32>
    %360 = vector.extract_strided_slice %359 {offsets = [0, 0], sizes = [8, 32], strides = [1, 1]} : vector<8x128xf32> to vector<8x32xf32>
    %361 = arith.negf %360 : vector<8x32xf32>
    %362 = math.exp %361 : vector<8x32xf32>
    %cst_181 = arith.constant 1.000000e+00 : f32
    %363 = vector.broadcast %cst_181 : f32 to vector<8x32xf32>
    %364 = arith.addf %363, %362 : vector<8x32xf32>
    %365 = arith.divf %363, %364 : vector<8x32xf32>
    %366 = vector.extract_strided_slice %359 {offsets = [0, 32], sizes = [8, 32], strides = [1, 1]} : vector<8x128xf32> to vector<8x32xf32>
    %367 = arith.negf %366 : vector<8x32xf32>
    %368 = math.exp %367 : vector<8x32xf32>
    %cst_182 = arith.constant 1.000000e+00 : f32
    %369 = vector.broadcast %cst_182 : f32 to vector<8x32xf32>
    %370 = arith.addf %369, %368 : vector<8x32xf32>
    %371 = arith.divf %369, %370 : vector<8x32xf32>
    %372 = vector.extract_strided_slice %359 {offsets = [0, 64], sizes = [8, 32], strides = [1, 1]} : vector<8x128xf32> to vector<8x32xf32>
    %373 = math.tanh %372 : vector<8x32xf32>
    %374 = vector.extract_strided_slice %359 {offsets = [0, 96], sizes = [8, 32], strides = [1, 1]} : vector<8x128xf32> to vector<8x32xf32>
    %375 = arith.negf %374 : vector<8x32xf32>
    %376 = math.exp %375 : vector<8x32xf32>
    %cst_183 = arith.constant 1.000000e+00 : f32
    %377 = vector.broadcast %cst_183 : f32 to vector<8x32xf32>
    %378 = arith.addf %377, %376 : vector<8x32xf32>
    %379 = arith.divf %377, %378 : vector<8x32xf32>
    %c0_184 = arith.constant 0 : index
    %c0_185 = arith.constant 0 : index
    %380 = vector.load %arg14[%c0_184, %c0_185] : memref<8x64xf32, #tpu.memory_space<vmem>>, vector<8x32xf32>
    %381 = arith.mulf %371, %380 : vector<8x32xf32>
    %382 = arith.mulf %365, %373 : vector<8x32xf32>
    %383 = arith.addf %381, %382 : vector<8x32xf32>
    %384 = math.tanh %383 : vector<8x32xf32>
    %385 = arith.mulf %379, %384 : vector<8x32xf32>
    %c0_186 = arith.constant 0 : index
    %c0_187 = arith.constant 0 : index
    %386 = vector.load %arg14[%c0_186, %c0_187] : memref<8x64xf32, #tpu.memory_space<vmem>>, vector<8x32xf32>
    tpu.vector_store %arg14[%c0_186, %c0_187], %383 {strides = array<i32>} : memref<8x64xf32, #tpu.memory_space<vmem>>, vector<8x32xf32>,
    %c0_188 = arith.constant 0 : index
    %c0_189 = arith.constant 0 : index
    %387 = vector.load %arg13[%c0_188, %c0_189] : memref<8x64xf32, #tpu.memory_space<vmem>>, vector<8x32xf32>
    tpu.vector_store %arg13[%c0_188, %c0_189], %385 {strides = array<i32>} : memref<8x64xf32, #tpu.memory_space<vmem>>, vector<8x32xf32>,
    %c0_190 = arith.constant 0 : index
    %c0_191 = arith.constant 0 : index
    %388 = vector.load %arg13[%c0_190, %c0_191] : memref<8x64xf32, #tpu.memory_space<vmem>>, vector<8x64xf32>
    %c0_192 = arith.constant 0 : index
    %c0_193 = arith.constant 0 : index
    %c0_194 = arith.constant 0 : index
    %389 = vector.load %arg3[%c0_192, %c0_193, %c0_194] : memref<1x64x128xf32, #tpu.memory_space<vmem>>, vector<1x64x128xf32>
    %390 = vector.shape_cast %389 : vector<1x64x128xf32> to vector<64x128xf32>
    %cst_195 = arith.constant dense<0.000000e+00> : vector<8x128xf32>
    %391 = tpu.matmul %388, %390, %cst_195 {dimension_numbers = #tpu.dot_dimension_numbers<[1], [0], [0], [1], [0, 0, 1, 1], [], []>} : vector<8x64xf32>, vector<64x128xf32>, vector<8x128xf32> -> vector<8x128xf32>
    %c0_196 = arith.constant 0 : index
    %c0_197 = arith.constant 0 : index
    %c0_198 = arith.constant 0 : index
    %392 = vector.load %arg4[%c0_196, %c0_197, %c0_198] : memref<1x1x128xf32, #tpu.memory_space<vmem>>, vector<1x1x128xf32>
    %393 = vector.shape_cast %392 : vector<1x1x128xf32> to vector<1x128xf32>
    %394 = vector.broadcast %393 : vector<1x128xf32> to vector<8x128xf32>
    %395 = arith.addf %391, %394 : vector<8x128xf32>
    %396 = vector.extract_strided_slice %395 {offsets = [0, 0], sizes = [8, 32], strides = [1, 1]} : vector<8x128xf32> to vector<8x32xf32>
    %397 = arith.negf %396 : vector<8x32xf32>
    %398 = math.exp %397 : vector<8x32xf32>
    %cst_199 = arith.constant 1.000000e+00 : f32
    %399 = vector.broadcast %cst_199 : f32 to vector<8x32xf32>
    %400 = arith.addf %399, %398 : vector<8x32xf32>
    %401 = arith.divf %399, %400 : vector<8x32xf32>
    %402 = vector.extract_strided_slice %395 {offsets = [0, 32], sizes = [8, 32], strides = [1, 1]} : vector<8x128xf32> to vector<8x32xf32>
    %403 = arith.negf %402 : vector<8x32xf32>
    %404 = math.exp %403 : vector<8x32xf32>
    %cst_200 = arith.constant 1.000000e+00 : f32
    %405 = vector.broadcast %cst_200 : f32 to vector<8x32xf32>
    %406 = arith.addf %405, %404 : vector<8x32xf32>
    %407 = arith.divf %405, %406 : vector<8x32xf32>
    %408 = vector.extract_strided_slice %395 {offsets = [0, 64], sizes = [8, 32], strides = [1, 1]} : vector<8x128xf32> to vector<8x32xf32>
    %409 = math.tanh %408 : vector<8x32xf32>
    %410 = vector.extract_strided_slice %395 {offsets = [0, 96], sizes = [8, 32], strides = [1, 1]} : vector<8x128xf32> to vector<8x32xf32>
    %411 = arith.negf %410 : vector<8x32xf32>
    %412 = math.exp %411 : vector<8x32xf32>
    %cst_201 = arith.constant 1.000000e+00 : f32
    %413 = vector.broadcast %cst_201 : f32 to vector<8x32xf32>
    %414 = arith.addf %413, %412 : vector<8x32xf32>
    %415 = arith.divf %413, %414 : vector<8x32xf32>
    %c0_202 = arith.constant 0 : index
    %c32_203 = arith.constant 32 : index
    %416 = vector.load %arg14[%c0_202, %c32_203] : memref<8x64xf32, #tpu.memory_space<vmem>>, vector<8x32xf32>
    %417 = arith.mulf %407, %416 : vector<8x32xf32>
    %418 = arith.mulf %401, %409 : vector<8x32xf32>
    %419 = arith.addf %417, %418 : vector<8x32xf32>
    %420 = math.tanh %419 : vector<8x32xf32>
    %421 = arith.mulf %415, %420 : vector<8x32xf32>
    %c0_204 = arith.constant 0 : index
    %c32_205 = arith.constant 32 : index
    %422 = vector.load %arg14[%c0_204, %c32_205] : memref<8x64xf32, #tpu.memory_space<vmem>>, vector<8x32xf32>
    tpu.vector_store %arg14[%c0_204, %c32_205], %419 {strides = array<i32>} : memref<8x64xf32, #tpu.memory_space<vmem>>, vector<8x32xf32>,
    %c0_206 = arith.constant 0 : index
    %c32_207 = arith.constant 32 : index
    %423 = vector.load %arg13[%c0_206, %c32_207] : memref<8x64xf32, #tpu.memory_space<vmem>>, vector<8x32xf32>
    tpu.vector_store %arg13[%c0_206, %c32_207], %421 {strides = array<i32>} : memref<8x64xf32, #tpu.memory_space<vmem>>, vector<8x32xf32>,
    %c6 = arith.constant 6 : index
    %c0_208 = arith.constant 0 : index
    %c0_209 = arith.constant 0 : index
    %424 = vector.load %arg1[%c6, %c0_208, %c0_209] : memref<10x8x128xf32, #tpu.memory_space<vmem>>, vector<1x8x128xf32>
    %425 = vector.shape_cast %424 : vector<1x8x128xf32> to vector<8x128xf32>
    %c0_210 = arith.constant 0 : index
    %c0_211 = arith.constant 0 : index
    %426 = vector.load %arg13[%c0_210, %c0_211] : memref<8x64xf32, #tpu.memory_space<vmem>>, vector<8x32xf32>
    %c0_212 = arith.constant 0 : index
    %c0_213 = arith.constant 0 : index
    %427 = vector.load %arg2[%c0_212, %c0_213] : memref<32x128xf32, #tpu.memory_space<vmem>>, vector<32x128xf32>
    %cst_214 = arith.constant dense<0.000000e+00> : vector<8x128xf32>
    %428 = tpu.matmul %426, %427, %cst_214 {dimension_numbers = #tpu.dot_dimension_numbers<[1], [0], [0], [1], [0, 0, 1, 1], [], []>} : vector<8x32xf32>, vector<32x128xf32>, vector<8x128xf32> -> vector<8x128xf32>
    %429 = arith.addf %425, %428 : vector<8x128xf32>
    %430 = vector.extract_strided_slice %429 {offsets = [0, 0], sizes = [8, 32], strides = [1, 1]} : vector<8x128xf32> to vector<8x32xf32>
    %431 = arith.negf %430 : vector<8x32xf32>
    %432 = math.exp %431 : vector<8x32xf32>
    %cst_215 = arith.constant 1.000000e+00 : f32
    %433 = vector.broadcast %cst_215 : f32 to vector<8x32xf32>
    %434 = arith.addf %433, %432 : vector<8x32xf32>
    %435 = arith.divf %433, %434 : vector<8x32xf32>
    %436 = vector.extract_strided_slice %429 {offsets = [0, 32], sizes = [8, 32], strides = [1, 1]} : vector<8x128xf32> to vector<8x32xf32>
    %437 = arith.negf %436 : vector<8x32xf32>
    %438 = math.exp %437 : vector<8x32xf32>
    %cst_216 = arith.constant 1.000000e+00 : f32
    %439 = vector.broadcast %cst_216 : f32 to vector<8x32xf32>
    %440 = arith.addf %439, %438 : vector<8x32xf32>
    %441 = arith.divf %439, %440 : vector<8x32xf32>
    %442 = vector.extract_strided_slice %429 {offsets = [0, 64], sizes = [8, 32], strides = [1, 1]} : vector<8x128xf32> to vector<8x32xf32>
    %443 = math.tanh %442 : vector<8x32xf32>
    %444 = vector.extract_strided_slice %429 {offsets = [0, 96], sizes = [8, 32], strides = [1, 1]} : vector<8x128xf32> to vector<8x32xf32>
    %445 = arith.negf %444 : vector<8x32xf32>
    %446 = math.exp %445 : vector<8x32xf32>
    %cst_217 = arith.constant 1.000000e+00 : f32
    %447 = vector.broadcast %cst_217 : f32 to vector<8x32xf32>
    %448 = arith.addf %447, %446 : vector<8x32xf32>
    %449 = arith.divf %447, %448 : vector<8x32xf32>
    %c0_218 = arith.constant 0 : index
    %c0_219 = arith.constant 0 : index
    %450 = vector.load %arg14[%c0_218, %c0_219] : memref<8x64xf32, #tpu.memory_space<vmem>>, vector<8x32xf32>
    %451 = arith.mulf %441, %450 : vector<8x32xf32>
    %452 = arith.mulf %435, %443 : vector<8x32xf32>
    %453 = arith.addf %451, %452 : vector<8x32xf32>
    %454 = math.tanh %453 : vector<8x32xf32>
    %455 = arith.mulf %449, %454 : vector<8x32xf32>
    %c0_220 = arith.constant 0 : index
    %c0_221 = arith.constant 0 : index
    %456 = vector.load %arg14[%c0_220, %c0_221] : memref<8x64xf32, #tpu.memory_space<vmem>>, vector<8x32xf32>
    tpu.vector_store %arg14[%c0_220, %c0_221], %453 {strides = array<i32>} : memref<8x64xf32, #tpu.memory_space<vmem>>, vector<8x32xf32>,
    %c0_222 = arith.constant 0 : index
    %c0_223 = arith.constant 0 : index
    %457 = vector.load %arg13[%c0_222, %c0_223] : memref<8x64xf32, #tpu.memory_space<vmem>>, vector<8x32xf32>
    tpu.vector_store %arg13[%c0_222, %c0_223], %455 {strides = array<i32>} : memref<8x64xf32, #tpu.memory_space<vmem>>, vector<8x32xf32>,
    %c0_224 = arith.constant 0 : index
    %c0_225 = arith.constant 0 : index
    %458 = vector.load %arg13[%c0_224, %c0_225] : memref<8x64xf32, #tpu.memory_space<vmem>>, vector<8x64xf32>
    %c0_226 = arith.constant 0 : index
    %c0_227 = arith.constant 0 : index
    %c0_228 = arith.constant 0 : index
    %459 = vector.load %arg3[%c0_226, %c0_227, %c0_228] : memref<1x64x128xf32, #tpu.memory_space<vmem>>, vector<1x64x128xf32>
    %460 = vector.shape_cast %459 : vector<1x64x128xf32> to vector<64x128xf32>
    %cst_229 = arith.constant dense<0.000000e+00> : vector<8x128xf32>
    %461 = tpu.matmul %458, %460, %cst_229 {dimension_numbers = #tpu.dot_dimension_numbers<[1], [0], [0], [1], [0, 0, 1, 1], [], []>} : vector<8x64xf32>, vector<64x128xf32>, vector<8x128xf32> -> vector<8x128xf32>
    %c0_230 = arith.constant 0 : index
    %c0_231 = arith.constant 0 : index
    %c0_232 = arith.constant 0 : index
    %462 = vector.load %arg4[%c0_230, %c0_231, %c0_232] : memref<1x1x128xf32, #tpu.memory_space<vmem>>, vector<1x1x128xf32>
    %463 = vector.shape_cast %462 : vector<1x1x128xf32> to vector<1x128xf32>
    %464 = vector.broadcast %463 : vector<1x128xf32> to vector<8x128xf32>
    %465 = arith.addf %461, %464 : vector<8x128xf32>
    %466 = vector.extract_strided_slice %465 {offsets = [0, 0], sizes = [8, 32], strides = [1, 1]} : vector<8x128xf32> to vector<8x32xf32>
    %467 = arith.negf %466 : vector<8x32xf32>
    %468 = math.exp %467 : vector<8x32xf32>
    %cst_233 = arith.constant 1.000000e+00 : f32
    %469 = vector.broadcast %cst_233 : f32 to vector<8x32xf32>
    %470 = arith.addf %469, %468 : vector<8x32xf32>
    %471 = arith.divf %469, %470 : vector<8x32xf32>
    %472 = vector.extract_strided_slice %465 {offsets = [0, 32], sizes = [8, 32], strides = [1, 1]} : vector<8x128xf32> to vector<8x32xf32>
    %473 = arith.negf %472 : vector<8x32xf32>
    %474 = math.exp %473 : vector<8x32xf32>
    %cst_234 = arith.constant 1.000000e+00 : f32
    %475 = vector.broadcast %cst_234 : f32 to vector<8x32xf32>
    %476 = arith.addf %475, %474 : vector<8x32xf32>
    %477 = arith.divf %475, %476 : vector<8x32xf32>
    %478 = vector.extract_strided_slice %465 {offsets = [0, 64], sizes = [8, 32], strides = [1, 1]} : vector<8x128xf32> to vector<8x32xf32>
    %479 = math.tanh %478 : vector<8x32xf32>
    %480 = vector.extract_strided_slice %465 {offsets = [0, 96], sizes = [8, 32], strides = [1, 1]} : vector<8x128xf32> to vector<8x32xf32>
    %481 = arith.negf %480 : vector<8x32xf32>
    %482 = math.exp %481 : vector<8x32xf32>
    %cst_235 = arith.constant 1.000000e+00 : f32
    %483 = vector.broadcast %cst_235 : f32 to vector<8x32xf32>
    %484 = arith.addf %483, %482 : vector<8x32xf32>
    %485 = arith.divf %483, %484 : vector<8x32xf32>
    %c0_236 = arith.constant 0 : index
    %c32_237 = arith.constant 32 : index
    %486 = vector.load %arg14[%c0_236, %c32_237] : memref<8x64xf32, #tpu.memory_space<vmem>>, vector<8x32xf32>
    %487 = arith.mulf %477, %486 : vector<8x32xf32>
    %488 = arith.mulf %471, %479 : vector<8x32xf32>
    %489 = arith.addf %487, %488 : vector<8x32xf32>
    %490 = math.tanh %489 : vector<8x32xf32>
    %491 = arith.mulf %485, %490 : vector<8x32xf32>
    %c0_238 = arith.constant 0 : index
    %c32_239 = arith.constant 32 : index
    %492 = vector.load %arg14[%c0_238, %c32_239] : memref<8x64xf32, #tpu.memory_space<vmem>>, vector<8x32xf32>
    tpu.vector_store %arg14[%c0_238, %c32_239], %489 {strides = array<i32>} : memref<8x64xf32, #tpu.memory_space<vmem>>, vector<8x32xf32>,
    %c0_240 = arith.constant 0 : index
    %c32_241 = arith.constant 32 : index
    %493 = vector.load %arg13[%c0_240, %c32_241] : memref<8x64xf32, #tpu.memory_space<vmem>>, vector<8x32xf32>
    tpu.vector_store %arg13[%c0_240, %c32_241], %491 {strides = array<i32>} : memref<8x64xf32, #tpu.memory_space<vmem>>, vector<8x32xf32>,
    %c7 = arith.constant 7 : index
    %c0_242 = arith.constant 0 : index
    %c0_243 = arith.constant 0 : index
    %494 = vector.load %arg1[%c7, %c0_242, %c0_243] : memref<10x8x128xf32, #tpu.memory_space<vmem>>, vector<1x8x128xf32>
    %495 = vector.shape_cast %494 : vector<1x8x128xf32> to vector<8x128xf32>
    %c0_244 = arith.constant 0 : index
    %c0_245 = arith.constant 0 : index
    %496 = vector.load %arg13[%c0_244, %c0_245] : memref<8x64xf32, #tpu.memory_space<vmem>>, vector<8x32xf32>
    %c0_246 = arith.constant 0 : index
    %c0_247 = arith.constant 0 : index
    %497 = vector.load %arg2[%c0_246, %c0_247] : memref<32x128xf32, #tpu.memory_space<vmem>>, vector<32x128xf32>
    %cst_248 = arith.constant dense<0.000000e+00> : vector<8x128xf32>
    %498 = tpu.matmul %496, %497, %cst_248 {dimension_numbers = #tpu.dot_dimension_numbers<[1], [0], [0], [1], [0, 0, 1, 1], [], []>} : vector<8x32xf32>, vector<32x128xf32>, vector<8x128xf32> -> vector<8x128xf32>
    %499 = arith.addf %495, %498 : vector<8x128xf32>
    %500 = vector.extract_strided_slice %499 {offsets = [0, 0], sizes = [8, 32], strides = [1, 1]} : vector<8x128xf32> to vector<8x32xf32>
    %501 = arith.negf %500 : vector<8x32xf32>
    %502 = math.exp %501 : vector<8x32xf32>
    %cst_249 = arith.constant 1.000000e+00 : f32
    %503 = vector.broadcast %cst_249 : f32 to vector<8x32xf32>
    %504 = arith.addf %503, %502 : vector<8x32xf32>
    %505 = arith.divf %503, %504 : vector<8x32xf32>
    %506 = vector.extract_strided_slice %499 {offsets = [0, 32], sizes = [8, 32], strides = [1, 1]} : vector<8x128xf32> to vector<8x32xf32>
    %507 = arith.negf %506 : vector<8x32xf32>
    %508 = math.exp %507 : vector<8x32xf32>
    %cst_250 = arith.constant 1.000000e+00 : f32
    %509 = vector.broadcast %cst_250 : f32 to vector<8x32xf32>
    %510 = arith.addf %509, %508 : vector<8x32xf32>
    %511 = arith.divf %509, %510 : vector<8x32xf32>
    %512 = vector.extract_strided_slice %499 {offsets = [0, 64], sizes = [8, 32], strides = [1, 1]} : vector<8x128xf32> to vector<8x32xf32>
    %513 = math.tanh %512 : vector<8x32xf32>
    %514 = vector.extract_strided_slice %499 {offsets = [0, 96], sizes = [8, 32], strides = [1, 1]} : vector<8x128xf32> to vector<8x32xf32>
    %515 = arith.negf %514 : vector<8x32xf32>
    %516 = math.exp %515 : vector<8x32xf32>
    %cst_251 = arith.constant 1.000000e+00 : f32
    %517 = vector.broadcast %cst_251 : f32 to vector<8x32xf32>
    %518 = arith.addf %517, %516 : vector<8x32xf32>
    %519 = arith.divf %517, %518 : vector<8x32xf32>
    %c0_252 = arith.constant 0 : index
    %c0_253 = arith.constant 0 : index
    %520 = vector.load %arg14[%c0_252, %c0_253] : memref<8x64xf32, #tpu.memory_space<vmem>>, vector<8x32xf32>
    %521 = arith.mulf %511, %520 : vector<8x32xf32>
    %522 = arith.mulf %505, %513 : vector<8x32xf32>
    %523 = arith.addf %521, %522 : vector<8x32xf32>
    %524 = math.tanh %523 : vector<8x32xf32>
    %525 = arith.mulf %519, %524 : vector<8x32xf32>
    %c0_254 = arith.constant 0 : index
    %c0_255 = arith.constant 0 : index
    %526 = vector.load %arg14[%c0_254, %c0_255] : memref<8x64xf32, #tpu.memory_space<vmem>>, vector<8x32xf32>
    tpu.vector_store %arg14[%c0_254, %c0_255], %523 {strides = array<i32>} : memref<8x64xf32, #tpu.memory_space<vmem>>, vector<8x32xf32>,
    %c0_256 = arith.constant 0 : index
    %c0_257 = arith.constant 0 : index
    %527 = vector.load %arg13[%c0_256, %c0_257] : memref<8x64xf32, #tpu.memory_space<vmem>>, vector<8x32xf32>
    tpu.vector_store %arg13[%c0_256, %c0_257], %525 {strides = array<i32>} : memref<8x64xf32, #tpu.memory_space<vmem>>, vector<8x32xf32>,
    %c0_258 = arith.constant 0 : index
    %c0_259 = arith.constant 0 : index
    %528 = vector.load %arg13[%c0_258, %c0_259] : memref<8x64xf32, #tpu.memory_space<vmem>>, vector<8x64xf32>
    %c0_260 = arith.constant 0 : index
    %c0_261 = arith.constant 0 : index
    %c0_262 = arith.constant 0 : index
    %529 = vector.load %arg3[%c0_260, %c0_261, %c0_262] : memref<1x64x128xf32, #tpu.memory_space<vmem>>, vector<1x64x128xf32>
    %530 = vector.shape_cast %529 : vector<1x64x128xf32> to vector<64x128xf32>
    %cst_263 = arith.constant dense<0.000000e+00> : vector<8x128xf32>
    %531 = tpu.matmul %528, %530, %cst_263 {dimension_numbers = #tpu.dot_dimension_numbers<[1], [0], [0], [1], [0, 0, 1, 1], [], []>} : vector<8x64xf32>, vector<64x128xf32>, vector<8x128xf32> -> vector<8x128xf32>
    %c0_264 = arith.constant 0 : index
    %c0_265 = arith.constant 0 : index
    %c0_266 = arith.constant 0 : index
    %532 = vector.load %arg4[%c0_264, %c0_265, %c0_266] : memref<1x1x128xf32, #tpu.memory_space<vmem>>, vector<1x1x128xf32>
    %533 = vector.shape_cast %532 : vector<1x1x128xf32> to vector<1x128xf32>
    %534 = vector.broadcast %533 : vector<1x128xf32> to vector<8x128xf32>
    %535 = arith.addf %531, %534 : vector<8x128xf32>
    %536 = vector.extract_strided_slice %535 {offsets = [0, 0], sizes = [8, 32], strides = [1, 1]} : vector<8x128xf32> to vector<8x32xf32>
    %537 = arith.negf %536 : vector<8x32xf32>
    %538 = math.exp %537 : vector<8x32xf32>
    %cst_267 = arith.constant 1.000000e+00 : f32
    %539 = vector.broadcast %cst_267 : f32 to vector<8x32xf32>
    %540 = arith.addf %539, %538 : vector<8x32xf32>
    %541 = arith.divf %539, %540 : vector<8x32xf32>
    %542 = vector.extract_strided_slice %535 {offsets = [0, 32], sizes = [8, 32], strides = [1, 1]} : vector<8x128xf32> to vector<8x32xf32>
    %543 = arith.negf %542 : vector<8x32xf32>
    %544 = math.exp %543 : vector<8x32xf32>
    %cst_268 = arith.constant 1.000000e+00 : f32
    %545 = vector.broadcast %cst_268 : f32 to vector<8x32xf32>
    %546 = arith.addf %545, %544 : vector<8x32xf32>
    %547 = arith.divf %545, %546 : vector<8x32xf32>
    %548 = vector.extract_strided_slice %535 {offsets = [0, 64], sizes = [8, 32], strides = [1, 1]} : vector<8x128xf32> to vector<8x32xf32>
    %549 = math.tanh %548 : vector<8x32xf32>
    %550 = vector.extract_strided_slice %535 {offsets = [0, 96], sizes = [8, 32], strides = [1, 1]} : vector<8x128xf32> to vector<8x32xf32>
    %551 = arith.negf %550 : vector<8x32xf32>
    %552 = math.exp %551 : vector<8x32xf32>
    %cst_269 = arith.constant 1.000000e+00 : f32
    %553 = vector.broadcast %cst_269 : f32 to vector<8x32xf32>
    %554 = arith.addf %553, %552 : vector<8x32xf32>
    %555 = arith.divf %553, %554 : vector<8x32xf32>
    %c0_270 = arith.constant 0 : index
    %c32_271 = arith.constant 32 : index
    %556 = vector.load %arg14[%c0_270, %c32_271] : memref<8x64xf32, #tpu.memory_space<vmem>>, vector<8x32xf32>
    %557 = arith.mulf %547, %556 : vector<8x32xf32>
    %558 = arith.mulf %541, %549 : vector<8x32xf32>
    %559 = arith.addf %557, %558 : vector<8x32xf32>
    %560 = math.tanh %559 : vector<8x32xf32>
    %561 = arith.mulf %555, %560 : vector<8x32xf32>
    %c0_272 = arith.constant 0 : index
    %c32_273 = arith.constant 32 : index
    %562 = vector.load %arg14[%c0_272, %c32_273] : memref<8x64xf32, #tpu.memory_space<vmem>>, vector<8x32xf32>
    tpu.vector_store %arg14[%c0_272, %c32_273], %559 {strides = array<i32>} : memref<8x64xf32, #tpu.memory_space<vmem>>, vector<8x32xf32>,
    %c0_274 = arith.constant 0 : index
    %c32_275 = arith.constant 32 : index
    %563 = vector.load %arg13[%c0_274, %c32_275] : memref<8x64xf32, #tpu.memory_space<vmem>>, vector<8x32xf32>
    tpu.vector_store %arg13[%c0_274, %c32_275], %561 {strides = array<i32>} : memref<8x64xf32, #tpu.memory_space<vmem>>, vector<8x32xf32>,
    %c8 = arith.constant 8 : index
    %c0_276 = arith.constant 0 : index
    %c0_277 = arith.constant 0 : index
    %564 = vector.load %arg1[%c8, %c0_276, %c0_277] : memref<10x8x128xf32, #tpu.memory_space<vmem>>, vector<1x8x128xf32>
    %565 = vector.shape_cast %564 : vector<1x8x128xf32> to vector<8x128xf32>
    %c0_278 = arith.constant 0 : index
    %c0_279 = arith.constant 0 : index
    %566 = vector.load %arg13[%c0_278, %c0_279] : memref<8x64xf32, #tpu.memory_space<vmem>>, vector<8x32xf32>
    %c0_280 = arith.constant 0 : index
    %c0_281 = arith.constant 0 : index
    %567 = vector.load %arg2[%c0_280, %c0_281] : memref<32x128xf32, #tpu.memory_space<vmem>>, vector<32x128xf32>
    %cst_282 = arith.constant dense<0.000000e+00> : vector<8x128xf32>
    %568 = tpu.matmul %566, %567, %cst_282 {dimension_numbers = #tpu.dot_dimension_numbers<[1], [0], [0], [1], [0, 0, 1, 1], [], []>} : vector<8x32xf32>, vector<32x128xf32>, vector<8x128xf32> -> vector<8x128xf32>
    %569 = arith.addf %565, %568 : vector<8x128xf32>
    %570 = vector.extract_strided_slice %569 {offsets = [0, 0], sizes = [8, 32], strides = [1, 1]} : vector<8x128xf32> to vector<8x32xf32>
    %571 = arith.negf %570 : vector<8x32xf32>
    %572 = math.exp %571 : vector<8x32xf32>
    %cst_283 = arith.constant 1.000000e+00 : f32
    %573 = vector.broadcast %cst_283 : f32 to vector<8x32xf32>
    %574 = arith.addf %573, %572 : vector<8x32xf32>
    %575 = arith.divf %573, %574 : vector<8x32xf32>
    %576 = vector.extract_strided_slice %569 {offsets = [0, 32], sizes = [8, 32], strides = [1, 1]} : vector<8x128xf32> to vector<8x32xf32>
    %577 = arith.negf %576 : vector<8x32xf32>
    %578 = math.exp %577 : vector<8x32xf32>
    %cst_284 = arith.constant 1.000000e+00 : f32
    %579 = vector.broadcast %cst_284 : f32 to vector<8x32xf32>
    %580 = arith.addf %579, %578 : vector<8x32xf32>
    %581 = arith.divf %579, %580 : vector<8x32xf32>
    %582 = vector.extract_strided_slice %569 {offsets = [0, 64], sizes = [8, 32], strides = [1, 1]} : vector<8x128xf32> to vector<8x32xf32>
    %583 = math.tanh %582 : vector<8x32xf32>
    %584 = vector.extract_strided_slice %569 {offsets = [0, 96], sizes = [8, 32], strides = [1, 1]} : vector<8x128xf32> to vector<8x32xf32>
    %585 = arith.negf %584 : vector<8x32xf32>
    %586 = math.exp %585 : vector<8x32xf32>
    %cst_285 = arith.constant 1.000000e+00 : f32
    %587 = vector.broadcast %cst_285 : f32 to vector<8x32xf32>
    %588 = arith.addf %587, %586 : vector<8x32xf32>
    %589 = arith.divf %587, %588 : vector<8x32xf32>
    %c0_286 = arith.constant 0 : index
    %c0_287 = arith.constant 0 : index
    %590 = vector.load %arg14[%c0_286, %c0_287] : memref<8x64xf32, #tpu.memory_space<vmem>>, vector<8x32xf32>
    %591 = arith.mulf %581, %590 : vector<8x32xf32>
    %592 = arith.mulf %575, %583 : vector<8x32xf32>
    %593 = arith.addf %591, %592 : vector<8x32xf32>
    %594 = math.tanh %593 : vector<8x32xf32>
    %595 = arith.mulf %589, %594 : vector<8x32xf32>
    %c0_288 = arith.constant 0 : index
    %c0_289 = arith.constant 0 : index
    %596 = vector.load %arg14[%c0_288, %c0_289] : memref<8x64xf32, #tpu.memory_space<vmem>>, vector<8x32xf32>
    tpu.vector_store %arg14[%c0_288, %c0_289], %593 {strides = array<i32>} : memref<8x64xf32, #tpu.memory_space<vmem>>, vector<8x32xf32>,
    %c0_290 = arith.constant 0 : index
    %c0_291 = arith.constant 0 : index
    %597 = vector.load %arg13[%c0_290, %c0_291] : memref<8x64xf32, #tpu.memory_space<vmem>>, vector<8x32xf32>
    tpu.vector_store %arg13[%c0_290, %c0_291], %595 {strides = array<i32>} : memref<8x64xf32, #tpu.memory_space<vmem>>, vector<8x32xf32>,
    %c0_292 = arith.constant 0 : index
    %c0_293 = arith.constant 0 : index
    %598 = vector.load %arg13[%c0_292, %c0_293] : memref<8x64xf32, #tpu.memory_space<vmem>>, vector<8x64xf32>
    %c0_294 = arith.constant 0 : index
    %c0_295 = arith.constant 0 : index
    %c0_296 = arith.constant 0 : index
    %599 = vector.load %arg3[%c0_294, %c0_295, %c0_296] : memref<1x64x128xf32, #tpu.memory_space<vmem>>, vector<1x64x128xf32>
    %600 = vector.shape_cast %599 : vector<1x64x128xf32> to vector<64x128xf32>
    %cst_297 = arith.constant dense<0.000000e+00> : vector<8x128xf32>
    %601 = tpu.matmul %598, %600, %cst_297 {dimension_numbers = #tpu.dot_dimension_numbers<[1], [0], [0], [1], [0, 0, 1, 1], [], []>} : vector<8x64xf32>, vector<64x128xf32>, vector<8x128xf32> -> vector<8x128xf32>
    %c0_298 = arith.constant 0 : index
    %c0_299 = arith.constant 0 : index
    %c0_300 = arith.constant 0 : index
    %602 = vector.load %arg4[%c0_298, %c0_299, %c0_300] : memref<1x1x128xf32, #tpu.memory_space<vmem>>, vector<1x1x128xf32>
    %603 = vector.shape_cast %602 : vector<1x1x128xf32> to vector<1x128xf32>
    %604 = vector.broadcast %603 : vector<1x128xf32> to vector<8x128xf32>
    %605 = arith.addf %601, %604 : vector<8x128xf32>
    %606 = vector.extract_strided_slice %605 {offsets = [0, 0], sizes = [8, 32], strides = [1, 1]} : vector<8x128xf32> to vector<8x32xf32>
    %607 = arith.negf %606 : vector<8x32xf32>
    %608 = math.exp %607 : vector<8x32xf32>
    %cst_301 = arith.constant 1.000000e+00 : f32
    %609 = vector.broadcast %cst_301 : f32 to vector<8x32xf32>
    %610 = arith.addf %609, %608 : vector<8x32xf32>
    %611 = arith.divf %609, %610 : vector<8x32xf32>
    %612 = vector.extract_strided_slice %605 {offsets = [0, 32], sizes = [8, 32], strides = [1, 1]} : vector<8x128xf32> to vector<8x32xf32>
    %613 = arith.negf %612 : vector<8x32xf32>
    %614 = math.exp %613 : vector<8x32xf32>
    %cst_302 = arith.constant 1.000000e+00 : f32
    %615 = vector.broadcast %cst_302 : f32 to vector<8x32xf32>
    %616 = arith.addf %615, %614 : vector<8x32xf32>
    %617 = arith.divf %615, %616 : vector<8x32xf32>
    %618 = vector.extract_strided_slice %605 {offsets = [0, 64], sizes = [8, 32], strides = [1, 1]} : vector<8x128xf32> to vector<8x32xf32>
    %619 = math.tanh %618 : vector<8x32xf32>
    %620 = vector.extract_strided_slice %605 {offsets = [0, 96], sizes = [8, 32], strides = [1, 1]} : vector<8x128xf32> to vector<8x32xf32>
    %621 = arith.negf %620 : vector<8x32xf32>
    %622 = math.exp %621 : vector<8x32xf32>
    %cst_303 = arith.constant 1.000000e+00 : f32
    %623 = vector.broadcast %cst_303 : f32 to vector<8x32xf32>
    %624 = arith.addf %623, %622 : vector<8x32xf32>
    %625 = arith.divf %623, %624 : vector<8x32xf32>
    %c0_304 = arith.constant 0 : index
    %c32_305 = arith.constant 32 : index
    %626 = vector.load %arg14[%c0_304, %c32_305] : memref<8x64xf32, #tpu.memory_space<vmem>>, vector<8x32xf32>
    %627 = arith.mulf %617, %626 : vector<8x32xf32>
    %628 = arith.mulf %611, %619 : vector<8x32xf32>
    %629 = arith.addf %627, %628 : vector<8x32xf32>
    %630 = math.tanh %629 : vector<8x32xf32>
    %631 = arith.mulf %625, %630 : vector<8x32xf32>
    %c0_306 = arith.constant 0 : index
    %c32_307 = arith.constant 32 : index
    %632 = vector.load %arg14[%c0_306, %c32_307] : memref<8x64xf32, #tpu.memory_space<vmem>>, vector<8x32xf32>
    tpu.vector_store %arg14[%c0_306, %c32_307], %629 {strides = array<i32>} : memref<8x64xf32, #tpu.memory_space<vmem>>, vector<8x32xf32>,
    %c0_308 = arith.constant 0 : index
    %c32_309 = arith.constant 32 : index
    %633 = vector.load %arg13[%c0_308, %c32_309] : memref<8x64xf32, #tpu.memory_space<vmem>>, vector<8x32xf32>
    tpu.vector_store %arg13[%c0_308, %c32_309], %631 {strides = array<i32>} : memref<8x64xf32, #tpu.memory_space<vmem>>, vector<8x32xf32>,
    %c9 = arith.constant 9 : index
    %c0_310 = arith.constant 0 : index
    %c0_311 = arith.constant 0 : index
    %634 = vector.load %arg1[%c9, %c0_310, %c0_311] : memref<10x8x128xf32, #tpu.memory_space<vmem>>, vector<1x8x128xf32>
    %635 = vector.shape_cast %634 : vector<1x8x128xf32> to vector<8x128xf32>
    %c0_312 = arith.constant 0 : index
    %c0_313 = arith.constant 0 : index
    %636 = vector.load %arg13[%c0_312, %c0_313] : memref<8x64xf32, #tpu.memory_space<vmem>>, vector<8x32xf32>
    %c0_314 = arith.constant 0 : index
    %c0_315 = arith.constant 0 : index
    %637 = vector.load %arg2[%c0_314, %c0_315] : memref<32x128xf32, #tpu.memory_space<vmem>>, vector<32x128xf32>
    %cst_316 = arith.constant dense<0.000000e+00> : vector<8x128xf32>
    %638 = tpu.matmul %636, %637, %cst_316 {dimension_numbers = #tpu.dot_dimension_numbers<[1], [0], [0], [1], [0, 0, 1, 1], [], []>} : vector<8x32xf32>, vector<32x128xf32>, vector<8x128xf32> -> vector<8x128xf32>
    %639 = arith.addf %635, %638 : vector<8x128xf32>
    %640 = vector.extract_strided_slice %639 {offsets = [0, 0], sizes = [8, 32], strides = [1, 1]} : vector<8x128xf32> to vector<8x32xf32>
    %641 = arith.negf %640 : vector<8x32xf32>
    %642 = math.exp %641 : vector<8x32xf32>
    %cst_317 = arith.constant 1.000000e+00 : f32
    %643 = vector.broadcast %cst_317 : f32 to vector<8x32xf32>
    %644 = arith.addf %643, %642 : vector<8x32xf32>
    %645 = arith.divf %643, %644 : vector<8x32xf32>
    %646 = vector.extract_strided_slice %639 {offsets = [0, 32], sizes = [8, 32], strides = [1, 1]} : vector<8x128xf32> to vector<8x32xf32>
    %647 = arith.negf %646 : vector<8x32xf32>
    %648 = math.exp %647 : vector<8x32xf32>
    %cst_318 = arith.constant 1.000000e+00 : f32
    %649 = vector.broadcast %cst_318 : f32 to vector<8x32xf32>
    %650 = arith.addf %649, %648 : vector<8x32xf32>
    %651 = arith.divf %649, %650 : vector<8x32xf32>
    %652 = vector.extract_strided_slice %639 {offsets = [0, 64], sizes = [8, 32], strides = [1, 1]} : vector<8x128xf32> to vector<8x32xf32>
    %653 = math.tanh %652 : vector<8x32xf32>
    %654 = vector.extract_strided_slice %639 {offsets = [0, 96], sizes = [8, 32], strides = [1, 1]} : vector<8x128xf32> to vector<8x32xf32>
    %655 = arith.negf %654 : vector<8x32xf32>
    %656 = math.exp %655 : vector<8x32xf32>
    %cst_319 = arith.constant 1.000000e+00 : f32
    %657 = vector.broadcast %cst_319 : f32 to vector<8x32xf32>
    %658 = arith.addf %657, %656 : vector<8x32xf32>
    %659 = arith.divf %657, %658 : vector<8x32xf32>
    %c0_320 = arith.constant 0 : index
    %c0_321 = arith.constant 0 : index
    %660 = vector.load %arg14[%c0_320, %c0_321] : memref<8x64xf32, #tpu.memory_space<vmem>>, vector<8x32xf32>
    %661 = arith.mulf %651, %660 : vector<8x32xf32>
    %662 = arith.mulf %645, %653 : vector<8x32xf32>
    %663 = arith.addf %661, %662 : vector<8x32xf32>
    %664 = math.tanh %663 : vector<8x32xf32>
    %665 = arith.mulf %659, %664 : vector<8x32xf32>
    %c0_322 = arith.constant 0 : index
    %c0_323 = arith.constant 0 : index
    %666 = vector.load %arg14[%c0_322, %c0_323] : memref<8x64xf32, #tpu.memory_space<vmem>>, vector<8x32xf32>
    tpu.vector_store %arg14[%c0_322, %c0_323], %663 {strides = array<i32>} : memref<8x64xf32, #tpu.memory_space<vmem>>, vector<8x32xf32>,
    %c0_324 = arith.constant 0 : index
    %c0_325 = arith.constant 0 : index
    %667 = vector.load %arg13[%c0_324, %c0_325] : memref<8x64xf32, #tpu.memory_space<vmem>>, vector<8x32xf32>
    tpu.vector_store %arg13[%c0_324, %c0_325], %665 {strides = array<i32>} : memref<8x64xf32, #tpu.memory_space<vmem>>, vector<8x32xf32>,
    %c0_326 = arith.constant 0 : index
    %c0_327 = arith.constant 0 : index
    %668 = vector.load %arg13[%c0_326, %c0_327] : memref<8x64xf32, #tpu.memory_space<vmem>>, vector<8x64xf32>
    %c0_328 = arith.constant 0 : index
    %c0_329 = arith.constant 0 : index
    %c0_330 = arith.constant 0 : index
    %669 = vector.load %arg3[%c0_328, %c0_329, %c0_330] : memref<1x64x128xf32, #tpu.memory_space<vmem>>, vector<1x64x128xf32>
    %670 = vector.shape_cast %669 : vector<1x64x128xf32> to vector<64x128xf32>
    %cst_331 = arith.constant dense<0.000000e+00> : vector<8x128xf32>
    %671 = tpu.matmul %668, %670, %cst_331 {dimension_numbers = #tpu.dot_dimension_numbers<[1], [0], [0], [1], [0, 0, 1, 1], [], []>} : vector<8x64xf32>, vector<64x128xf32>, vector<8x128xf32> -> vector<8x128xf32>
    %c0_332 = arith.constant 0 : index
    %c0_333 = arith.constant 0 : index
    %c0_334 = arith.constant 0 : index
    %672 = vector.load %arg4[%c0_332, %c0_333, %c0_334] : memref<1x1x128xf32, #tpu.memory_space<vmem>>, vector<1x1x128xf32>
    %673 = vector.shape_cast %672 : vector<1x1x128xf32> to vector<1x128xf32>
    %674 = vector.broadcast %673 : vector<1x128xf32> to vector<8x128xf32>
    %675 = arith.addf %671, %674 : vector<8x128xf32>
    %676 = vector.extract_strided_slice %675 {offsets = [0, 0], sizes = [8, 32], strides = [1, 1]} : vector<8x128xf32> to vector<8x32xf32>
    %677 = arith.negf %676 : vector<8x32xf32>
    %678 = math.exp %677 : vector<8x32xf32>
    %cst_335 = arith.constant 1.000000e+00 : f32
    %679 = vector.broadcast %cst_335 : f32 to vector<8x32xf32>
    %680 = arith.addf %679, %678 : vector<8x32xf32>
    %681 = arith.divf %679, %680 : vector<8x32xf32>
    %682 = vector.extract_strided_slice %675 {offsets = [0, 32], sizes = [8, 32], strides = [1, 1]} : vector<8x128xf32> to vector<8x32xf32>
    %683 = arith.negf %682 : vector<8x32xf32>
    %684 = math.exp %683 : vector<8x32xf32>
    %cst_336 = arith.constant 1.000000e+00 : f32
    %685 = vector.broadcast %cst_336 : f32 to vector<8x32xf32>
    %686 = arith.addf %685, %684 : vector<8x32xf32>
    %687 = arith.divf %685, %686 : vector<8x32xf32>
    %688 = vector.extract_strided_slice %675 {offsets = [0, 64], sizes = [8, 32], strides = [1, 1]} : vector<8x128xf32> to vector<8x32xf32>
    %689 = math.tanh %688 : vector<8x32xf32>
    %690 = vector.extract_strided_slice %675 {offsets = [0, 96], sizes = [8, 32], strides = [1, 1]} : vector<8x128xf32> to vector<8x32xf32>
    %691 = arith.negf %690 : vector<8x32xf32>
    %692 = math.exp %691 : vector<8x32xf32>
    %cst_337 = arith.constant 1.000000e+00 : f32
    %693 = vector.broadcast %cst_337 : f32 to vector<8x32xf32>
    %694 = arith.addf %693, %692 : vector<8x32xf32>
    %695 = arith.divf %693, %694 : vector<8x32xf32>
    %c0_338 = arith.constant 0 : index
    %c32_339 = arith.constant 32 : index
    %696 = vector.load %arg14[%c0_338, %c32_339] : memref<8x64xf32, #tpu.memory_space<vmem>>, vector<8x32xf32>
    %697 = arith.mulf %687, %696 : vector<8x32xf32>
    %698 = arith.mulf %681, %689 : vector<8x32xf32>
    %699 = arith.addf %697, %698 : vector<8x32xf32>
    %700 = math.tanh %699 : vector<8x32xf32>
    %701 = arith.mulf %695, %700 : vector<8x32xf32>
    %c0_340 = arith.constant 0 : index
    %c32_341 = arith.constant 32 : index
    %702 = vector.load %arg14[%c0_340, %c32_341] : memref<8x64xf32, #tpu.memory_space<vmem>>, vector<8x32xf32>
    tpu.vector_store %arg14[%c0_340, %c32_341], %699 {strides = array<i32>} : memref<8x64xf32, #tpu.memory_space<vmem>>, vector<8x32xf32>,
    %c0_342 = arith.constant 0 : index
    %c32_343 = arith.constant 32 : index
    %703 = vector.load %arg13[%c0_342, %c32_343] : memref<8x64xf32, #tpu.memory_space<vmem>>, vector<8x32xf32>
    tpu.vector_store %arg13[%c0_342, %c32_343], %701 {strides = array<i32>} : memref<8x64xf32, #tpu.memory_space<vmem>>, vector<8x32xf32>,
    %cst_344 = arith.constant 0.000000e+00 : f32
    %704 = vector.broadcast %cst_344 : f32 to vector<8x128xf32>
    %c0_345 = arith.constant 0 : index
    %c0_346 = arith.constant 0 : index
    %c0_347 = arith.constant 0 : index
    %705 = vector.load %arg12[%c0_345, %c0_346, %c0_347] : memref<8x8x128xf32, #tpu.memory_space<vmem>>, vector<1x8x128xf32>
    %706 = vector.shape_cast %705 : vector<1x8x128xf32> to vector<8x128xf32>
    %707 = vector.shape_cast %704 : vector<8x128xf32> to vector<1x8x128xf32>
    tpu.vector_store %arg12[%c0_345, %c0_346, %c0_347], %707 {strides = array<i32>} : memref<8x8x128xf32, #tpu.memory_space<vmem>>, vector<1x8x128xf32>,
    %708 = tpu.iota {dimensions = array<i32: 1>} : vector<8x128xi32>
    %c0_348 = arith.constant 0 : index
    %c0_349 = arith.constant 0 : index
    %c0_350 = arith.constant 0 : index
    %709 = vector.load %arg9[%c0_348, %c0_349, %c0_350] : memref<8x8x128xf32, #tpu.memory_space<vmem>>, vector<1x8x128xf32>
    %710 = vector.shape_cast %709 : vector<1x8x128xf32> to vector<8x128xf32>
    %c0_351 = arith.constant 0 : index
    %c0_352 = arith.constant 0 : index
    %711 = vector.load %arg13[%c0_351, %c0_352] : memref<8x64xf32, #tpu.memory_space<vmem>>, vector<8x32xf32>
    %c0_353 = arith.constant 0 : index
    %c0_354 = arith.constant 0 : index
    %712 = vector.load %arg6[%c0_353, %c0_354] : memref<32x128xf32, #tpu.memory_space<vmem>>, vector<32x128xf32>
    %cst_355 = arith.constant dense<0.000000e+00> : vector<8x128xf32>
    %713 = tpu.matmul %711, %712, %cst_355 {dimension_numbers = #tpu.dot_dimension_numbers<[1], [0], [0], [1], [0, 0, 1, 1], [], []>} : vector<8x32xf32>, vector<32x128xf32>, vector<8x128xf32> -> vector<8x128xf32>
    %714 = arith.addf %710, %713 : vector<8x128xf32>
    %715 = vector.extract_strided_slice %714 {offsets = [0, 0], sizes = [8, 32], strides = [1, 1]} : vector<8x128xf32> to vector<8x32xf32>
    %716 = arith.negf %715 : vector<8x32xf32>
    %717 = math.exp %716 : vector<8x32xf32>
    %cst_356 = arith.constant 1.000000e+00 : f32
    %718 = vector.broadcast %cst_356 : f32 to vector<8x32xf32>
    %719 = arith.addf %718, %717 : vector<8x32xf32>
    %720 = arith.divf %718, %719 : vector<8x32xf32>
    %721 = vector.extract_strided_slice %714 {offsets = [0, 32], sizes = [8, 32], strides = [1, 1]} : vector<8x128xf32> to vector<8x32xf32>
    %722 = arith.negf %721 : vector<8x32xf32>
    %723 = math.exp %722 : vector<8x32xf32>
    %cst_357 = arith.constant 1.000000e+00 : f32
    %724 = vector.broadcast %cst_357 : f32 to vector<8x32xf32>
    %725 = arith.addf %724, %723 : vector<8x32xf32>
    %726 = arith.divf %724, %725 : vector<8x32xf32>
    %727 = vector.extract_strided_slice %714 {offsets = [0, 64], sizes = [8, 32], strides = [1, 1]} : vector<8x128xf32> to vector<8x32xf32>
    %728 = math.tanh %727 : vector<8x32xf32>
    %729 = vector.extract_strided_slice %714 {offsets = [0, 96], sizes = [8, 32], strides = [1, 1]} : vector<8x128xf32> to vector<8x32xf32>
    %730 = arith.negf %729 : vector<8x32xf32>
    %731 = math.exp %730 : vector<8x32xf32>
    %cst_358 = arith.constant 1.000000e+00 : f32
    %732 = vector.broadcast %cst_358 : f32 to vector<8x32xf32>
    %733 = arith.addf %732, %731 : vector<8x32xf32>
    %734 = arith.divf %732, %733 : vector<8x32xf32>
    %c0_359 = arith.constant 0 : index
    %c0_360 = arith.constant 0 : index
    %735 = vector.load %arg14[%c0_359, %c0_360] : memref<8x64xf32, #tpu.memory_space<vmem>>, vector<8x32xf32>
    %736 = arith.mulf %726, %735 : vector<8x32xf32>
    %737 = arith.mulf %720, %728 : vector<8x32xf32>
    %738 = arith.addf %736, %737 : vector<8x32xf32>
    %739 = math.tanh %738 : vector<8x32xf32>
    %740 = arith.mulf %734, %739 : vector<8x32xf32>
    %c0_361 = arith.constant 0 : index
    %c0_362 = arith.constant 0 : index
    %741 = vector.load %arg14[%c0_361, %c0_362] : memref<8x64xf32, #tpu.memory_space<vmem>>, vector<8x32xf32>
    tpu.vector_store %arg14[%c0_361, %c0_362], %738 {strides = array<i32>} : memref<8x64xf32, #tpu.memory_space<vmem>>, vector<8x32xf32>,
    %c0_363 = arith.constant 0 : index
    %c0_364 = arith.constant 0 : index
    %742 = vector.load %arg13[%c0_363, %c0_364] : memref<8x64xf32, #tpu.memory_space<vmem>>, vector<8x32xf32>
    tpu.vector_store %arg13[%c0_363, %c0_364], %740 {strides = array<i32>} : memref<8x64xf32, #tpu.memory_space<vmem>>, vector<8x32xf32>,
    %c0_365 = arith.constant 0 : index
    %c0_366 = arith.constant 0 : index
    %743 = vector.load %arg13[%c0_365, %c0_366] : memref<8x64xf32, #tpu.memory_space<vmem>>, vector<8x64xf32>
    %c0_367 = arith.constant 0 : index
    %c0_368 = arith.constant 0 : index
    %c0_369 = arith.constant 0 : index
    %744 = vector.load %arg7[%c0_367, %c0_368, %c0_369] : memref<1x64x128xf32, #tpu.memory_space<vmem>>, vector<1x64x128xf32>
    %745 = vector.shape_cast %744 : vector<1x64x128xf32> to vector<64x128xf32>
    %cst_370 = arith.constant dense<0.000000e+00> : vector<8x128xf32>
    %746 = tpu.matmul %743, %745, %cst_370 {dimension_numbers = #tpu.dot_dimension_numbers<[1], [0], [0], [1], [0, 0, 1, 1], [], []>} : vector<8x64xf32>, vector<64x128xf32>, vector<8x128xf32> -> vector<8x128xf32>
    %c0_371 = arith.constant 0 : index
    %c0_372 = arith.constant 0 : index
    %c0_373 = arith.constant 0 : index
    %747 = vector.load %arg8[%c0_371, %c0_372, %c0_373] : memref<1x1x128xf32, #tpu.memory_space<vmem>>, vector<1x1x128xf32>
    %748 = vector.shape_cast %747 : vector<1x1x128xf32> to vector<1x128xf32>
    %749 = vector.broadcast %748 : vector<1x128xf32> to vector<8x128xf32>
    %750 = arith.addf %746, %749 : vector<8x128xf32>
    %751 = vector.extract_strided_slice %750 {offsets = [0, 0], sizes = [8, 32], strides = [1, 1]} : vector<8x128xf32> to vector<8x32xf32>
    %752 = arith.negf %751 : vector<8x32xf32>
    %753 = math.exp %752 : vector<8x32xf32>
    %cst_374 = arith.constant 1.000000e+00 : f32
    %754 = vector.broadcast %cst_374 : f32 to vector<8x32xf32>
    %755 = arith.addf %754, %753 : vector<8x32xf32>
    %756 = arith.divf %754, %755 : vector<8x32xf32>
    %757 = vector.extract_strided_slice %750 {offsets = [0, 32], sizes = [8, 32], strides = [1, 1]} : vector<8x128xf32> to vector<8x32xf32>
    %758 = arith.negf %757 : vector<8x32xf32>
    %759 = math.exp %758 : vector<8x32xf32>
    %cst_375 = arith.constant 1.000000e+00 : f32
    %760 = vector.broadcast %cst_375 : f32 to vector<8x32xf32>
    %761 = arith.addf %760, %759 : vector<8x32xf32>
    %762 = arith.divf %760, %761 : vector<8x32xf32>
    %763 = vector.extract_strided_slice %750 {offsets = [0, 64], sizes = [8, 32], strides = [1, 1]} : vector<8x128xf32> to vector<8x32xf32>
    %764 = math.tanh %763 : vector<8x32xf32>
    %765 = vector.extract_strided_slice %750 {offsets = [0, 96], sizes = [8, 32], strides = [1, 1]} : vector<8x128xf32> to vector<8x32xf32>
    %766 = arith.negf %765 : vector<8x32xf32>
    %767 = math.exp %766 : vector<8x32xf32>
    %cst_376 = arith.constant 1.000000e+00 : f32
    %768 = vector.broadcast %cst_376 : f32 to vector<8x32xf32>
    %769 = arith.addf %768, %767 : vector<8x32xf32>
    %770 = arith.divf %768, %769 : vector<8x32xf32>
    %c0_377 = arith.constant 0 : index
    %c32_378 = arith.constant 32 : index
    %771 = vector.load %arg14[%c0_377, %c32_378] : memref<8x64xf32, #tpu.memory_space<vmem>>, vector<8x32xf32>
    %772 = arith.mulf %762, %771 : vector<8x32xf32>
    %773 = arith.mulf %756, %764 : vector<8x32xf32>
    %774 = arith.addf %772, %773 : vector<8x32xf32>
    %775 = math.tanh %774 : vector<8x32xf32>
    %776 = arith.mulf %770, %775 : vector<8x32xf32>
    %c0_379 = arith.constant 0 : index
    %c32_380 = arith.constant 32 : index
    %777 = vector.load %arg14[%c0_379, %c32_380] : memref<8x64xf32, #tpu.memory_space<vmem>>, vector<8x32xf32>
    tpu.vector_store %arg14[%c0_379, %c32_380], %774 {strides = array<i32>} : memref<8x64xf32, #tpu.memory_space<vmem>>, vector<8x32xf32>,
    %c0_381 = arith.constant 0 : index
    %c32_382 = arith.constant 32 : index
    %778 = vector.load %arg13[%c0_381, %c32_382] : memref<8x64xf32, #tpu.memory_space<vmem>>, vector<8x32xf32>
    tpu.vector_store %arg13[%c0_381, %c32_382], %776 {strides = array<i32>} : memref<8x64xf32, #tpu.memory_space<vmem>>, vector<8x32xf32>,
    %c0_383 = arith.constant 0 : index
    %c32_384 = arith.constant 32 : index
    %779 = vector.load %arg13[%c0_383, %c32_384] : memref<8x64xf32, #tpu.memory_space<vmem>>, vector<8x32xf32>
    %c0_385 = arith.constant 0 : index
    %c0_386 = arith.constant 0 : index
    %780 = vector.load %arg10[%c0_385, %c0_386] : memref<32x128xf32, #tpu.memory_space<vmem>>, vector<32x128xf32>
    %cst_387 = arith.constant dense<0.000000e+00> : vector<8x128xf32>
    %781 = tpu.matmul %779, %780, %cst_387 {dimension_numbers = #tpu.dot_dimension_numbers<[1], [0], [0], [1], [0, 0, 1, 1], [], []>} : vector<8x32xf32>, vector<32x128xf32>, vector<8x128xf32> -> vector<8x128xf32>
    %c0_388 = arith.constant 0 : index
    %c0_389 = arith.constant 0 : index
    %782 = vector.load %arg11[%c0_388, %c0_389] : memref<1x128xf32, #tpu.memory_space<vmem>>, vector<1x128xf32>
    %783 = vector.broadcast %782 : vector<1x128xf32> to vector<8x128xf32>
    %784 = arith.addf %781, %783 : vector<8x128xf32>
    %c1_390 = arith.constant 1 : index
    %c0_391 = arith.constant 0 : index
    %c0_392 = arith.constant 0 : index
    %785 = vector.load %arg12[%c1_390, %c0_391, %c0_392] : memref<8x8x128xf32, #tpu.memory_space<vmem>>, vector<1x8x128xf32>
    %786 = vector.shape_cast %785 : vector<1x8x128xf32> to vector<8x128xf32>
    %787 = vector.shape_cast %784 : vector<8x128xf32> to vector<1x8x128xf32>
    tpu.vector_store %arg12[%c1_390, %c0_391, %c0_392], %787 {strides = array<i32>} : memref<8x8x128xf32, #tpu.memory_space<vmem>>, vector<1x8x128xf32>,
    %cst_393 = arith.constant dense<0xFF800000> : vector<8xf32>
    %788 = vector.multi_reduction <maximumf>, %784, %cst_393 [1] : vector<8x128xf32> to vector<8xf32>
    %789 = vector.shape_cast %788 : vector<8xf32> to vector<8x1xf32>
    %790 = vector.broadcast %789 : vector<8x1xf32> to vector<8x128xf32>
    %791 = arith.cmpf oeq, %784, %790 : vector<8x128xf32>
    %c128_i32 = arith.constant 128 : i32
    %792 = vector.broadcast %c128_i32 : i32 to vector<8x128xi32>
    %793 = arith.select %791, %708, %792 : vector<8x128xi1>, vector<8x128xi32>
    %cst_394 = arith.constant dense<2147483647> : vector<8xi32>
    %794 = vector.multi_reduction <minsi>, %793, %cst_394 [1] : vector<8x128xi32> to vector<8xi32>
    %795 = vector.shape_cast %794 : vector<8xi32> to vector<8x1xi32>
    %796 = vector.broadcast %795 : vector<8x1xi32> to vector<8x128xi32>
    %797 = arith.cmpi eq, %708, %796 : vector<8x128xi32>
    %798 = arith.extui %797 : vector<8x128xi1> to vector<8x128xi32>
    %799 = arith.sitofp %798 : vector<8x128xi32> to vector<8x128xf32>
    %c0_395 = arith.constant 0 : index
    %c0_396 = arith.constant 0 : index
    %800 = vector.load %arg5[%c0_395, %c0_396] : memref<128x128xf32, #tpu.memory_space<vmem>>, vector<128x128xf32>
    %cst_397 = arith.constant dense<0.000000e+00> : vector<8x128xf32>
    %801 = tpu.matmul %799, %800, %cst_397 {dimension_numbers = #tpu.dot_dimension_numbers<[1], [0], [0], [1], [0, 0, 1, 1], [], []>} : vector<8x128xf32>, vector<128x128xf32>, vector<8x128xf32> -> vector<8x128xf32>
    %c1_398 = arith.constant 1 : index
    %c0_399 = arith.constant 0 : index
    %c0_400 = arith.constant 0 : index
    %802 = vector.load %arg0[%c1_398, %c0_399, %c0_400] : memref<8x1x1xf32, #tpu.memory_space<vmem>>, vector<1x1x1xf32>
    %803 = vector.shape_cast %802 : vector<1x1x1xf32> to vector<1x1xf32>
    %c1_401 = arith.constant 1 : index
    %c0_402 = arith.constant 0 : index
    %c0_403 = arith.constant 0 : index
    %804 = vector.load %arg9[%c1_401, %c0_402, %c0_403] : memref<8x8x128xf32, #tpu.memory_space<vmem>>, vector<1x8x128xf32>
    %805 = vector.shape_cast %804 : vector<1x8x128xf32> to vector<8x128xf32>
    %806 = vector.broadcast %803 : vector<1x1xf32> to vector<8x128xf32>
    %807 = arith.mulf %806, %805 : vector<8x128xf32>
    %cst_404 = arith.constant 1.000000e+00 : f32
    %808 = vector.broadcast %cst_404 : f32 to vector<1x1xf32>
    %809 = arith.subf %808, %803 : vector<1x1xf32>
    %810 = vector.broadcast %809 : vector<1x1xf32> to vector<8x128xf32>
    %811 = arith.mulf %810, %801 : vector<8x128xf32>
    %812 = arith.addf %807, %811 : vector<8x128xf32>
    %c0_405 = arith.constant 0 : index
    %c0_406 = arith.constant 0 : index
    %813 = vector.load %arg13[%c0_405, %c0_406] : memref<8x64xf32, #tpu.memory_space<vmem>>, vector<8x32xf32>
    %c0_407 = arith.constant 0 : index
    %c0_408 = arith.constant 0 : index
    %814 = vector.load %arg6[%c0_407, %c0_408] : memref<32x128xf32, #tpu.memory_space<vmem>>, vector<32x128xf32>
    %cst_409 = arith.constant dense<0.000000e+00> : vector<8x128xf32>
    %815 = tpu.matmul %813, %814, %cst_409 {dimension_numbers = #tpu.dot_dimension_numbers<[1], [0], [0], [1], [0, 0, 1, 1], [], []>} : vector<8x32xf32>, vector<32x128xf32>, vector<8x128xf32> -> vector<8x128xf32>
    %816 = arith.addf %812, %815 : vector<8x128xf32>
    %817 = vector.extract_strided_slice %816 {offsets = [0, 0], sizes = [8, 32], strides = [1, 1]} : vector<8x128xf32> to vector<8x32xf32>
    %818 = arith.negf %817 : vector<8x32xf32>
    %819 = math.exp %818 : vector<8x32xf32>
    %cst_410 = arith.constant 1.000000e+00 : f32
    %820 = vector.broadcast %cst_410 : f32 to vector<8x32xf32>
    %821 = arith.addf %820, %819 : vector<8x32xf32>
    %822 = arith.divf %820, %821 : vector<8x32xf32>
    %823 = vector.extract_strided_slice %816 {offsets = [0, 32], sizes = [8, 32], strides = [1, 1]} : vector<8x128xf32> to vector<8x32xf32>
    %824 = arith.negf %823 : vector<8x32xf32>
    %825 = math.exp %824 : vector<8x32xf32>
    %cst_411 = arith.constant 1.000000e+00 : f32
    %826 = vector.broadcast %cst_411 : f32 to vector<8x32xf32>
    %827 = arith.addf %826, %825 : vector<8x32xf32>
    %828 = arith.divf %826, %827 : vector<8x32xf32>
    %829 = vector.extract_strided_slice %816 {offsets = [0, 64], sizes = [8, 32], strides = [1, 1]} : vector<8x128xf32> to vector<8x32xf32>
    %830 = math.tanh %829 : vector<8x32xf32>
    %831 = vector.extract_strided_slice %816 {offsets = [0, 96], sizes = [8, 32], strides = [1, 1]} : vector<8x128xf32> to vector<8x32xf32>
    %832 = arith.negf %831 : vector<8x32xf32>
    %833 = math.exp %832 : vector<8x32xf32>
    %cst_412 = arith.constant 1.000000e+00 : f32
    %834 = vector.broadcast %cst_412 : f32 to vector<8x32xf32>
    %835 = arith.addf %834, %833 : vector<8x32xf32>
    %836 = arith.divf %834, %835 : vector<8x32xf32>
    %c0_413 = arith.constant 0 : index
    %c0_414 = arith.constant 0 : index
    %837 = vector.load %arg14[%c0_413, %c0_414] : memref<8x64xf32, #tpu.memory_space<vmem>>, vector<8x32xf32>
    %838 = arith.mulf %828, %837 : vector<8x32xf32>
    %839 = arith.mulf %822, %830 : vector<8x32xf32>
    %840 = arith.addf %838, %839 : vector<8x32xf32>
    %841 = math.tanh %840 : vector<8x32xf32>
    %842 = arith.mulf %836, %841 : vector<8x32xf32>
    %c0_415 = arith.constant 0 : index
    %c0_416 = arith.constant 0 : index
    %843 = vector.load %arg14[%c0_415, %c0_416] : memref<8x64xf32, #tpu.memory_space<vmem>>, vector<8x32xf32>
    tpu.vector_store %arg14[%c0_415, %c0_416], %840 {strides = array<i32>} : memref<8x64xf32, #tpu.memory_space<vmem>>, vector<8x32xf32>,
    %c0_417 = arith.constant 0 : index
    %c0_418 = arith.constant 0 : index
    %844 = vector.load %arg13[%c0_417, %c0_418] : memref<8x64xf32, #tpu.memory_space<vmem>>, vector<8x32xf32>
    tpu.vector_store %arg13[%c0_417, %c0_418], %842 {strides = array<i32>} : memref<8x64xf32, #tpu.memory_space<vmem>>, vector<8x32xf32>,
    %c0_419 = arith.constant 0 : index
    %c0_420 = arith.constant 0 : index
    %845 = vector.load %arg13[%c0_419, %c0_420] : memref<8x64xf32, #tpu.memory_space<vmem>>, vector<8x64xf32>
    %c0_421 = arith.constant 0 : index
    %c0_422 = arith.constant 0 : index
    %c0_423 = arith.constant 0 : index
    %846 = vector.load %arg7[%c0_421, %c0_422, %c0_423] : memref<1x64x128xf32, #tpu.memory_space<vmem>>, vector<1x64x128xf32>
    %847 = vector.shape_cast %846 : vector<1x64x128xf32> to vector<64x128xf32>
    %cst_424 = arith.constant dense<0.000000e+00> : vector<8x128xf32>
    %848 = tpu.matmul %845, %847, %cst_424 {dimension_numbers = #tpu.dot_dimension_numbers<[1], [0], [0], [1], [0, 0, 1, 1], [], []>} : vector<8x64xf32>, vector<64x128xf32>, vector<8x128xf32> -> vector<8x128xf32>
    %c0_425 = arith.constant 0 : index
    %c0_426 = arith.constant 0 : index
    %c0_427 = arith.constant 0 : index
    %849 = vector.load %arg8[%c0_425, %c0_426, %c0_427] : memref<1x1x128xf32, #tpu.memory_space<vmem>>, vector<1x1x128xf32>
    %850 = vector.shape_cast %849 : vector<1x1x128xf32> to vector<1x128xf32>
    %851 = vector.broadcast %850 : vector<1x128xf32> to vector<8x128xf32>
    %852 = arith.addf %848, %851 : vector<8x128xf32>
    %853 = vector.extract_strided_slice %852 {offsets = [0, 0], sizes = [8, 32], strides = [1, 1]} : vector<8x128xf32> to vector<8x32xf32>
    %854 = arith.negf %853 : vector<8x32xf32>
    %855 = math.exp %854 : vector<8x32xf32>
    %cst_428 = arith.constant 1.000000e+00 : f32
    %856 = vector.broadcast %cst_428 : f32 to vector<8x32xf32>
    %857 = arith.addf %856, %855 : vector<8x32xf32>
    %858 = arith.divf %856, %857 : vector<8x32xf32>
    %859 = vector.extract_strided_slice %852 {offsets = [0, 32], sizes = [8, 32], strides = [1, 1]} : vector<8x128xf32> to vector<8x32xf32>
    %860 = arith.negf %859 : vector<8x32xf32>
    %861 = math.exp %860 : vector<8x32xf32>
    %cst_429 = arith.constant 1.000000e+00 : f32
    %862 = vector.broadcast %cst_429 : f32 to vector<8x32xf32>
    %863 = arith.addf %862, %861 : vector<8x32xf32>
    %864 = arith.divf %862, %863 : vector<8x32xf32>
    %865 = vector.extract_strided_slice %852 {offsets = [0, 64], sizes = [8, 32], strides = [1, 1]} : vector<8x128xf32> to vector<8x32xf32>
    %866 = math.tanh %865 : vector<8x32xf32>
    %867 = vector.extract_strided_slice %852 {offsets = [0, 96], sizes = [8, 32], strides = [1, 1]} : vector<8x128xf32> to vector<8x32xf32>
    %868 = arith.negf %867 : vector<8x32xf32>
    %869 = math.exp %868 : vector<8x32xf32>
    %cst_430 = arith.constant 1.000000e+00 : f32
    %870 = vector.broadcast %cst_430 : f32 to vector<8x32xf32>
    %871 = arith.addf %870, %869 : vector<8x32xf32>
    %872 = arith.divf %870, %871 : vector<8x32xf32>
    %c0_431 = arith.constant 0 : index
    %c32_432 = arith.constant 32 : index
    %873 = vector.load %arg14[%c0_431, %c32_432] : memref<8x64xf32, #tpu.memory_space<vmem>>, vector<8x32xf32>
    %874 = arith.mulf %864, %873 : vector<8x32xf32>
    %875 = arith.mulf %858, %866 : vector<8x32xf32>
    %876 = arith.addf %874, %875 : vector<8x32xf32>
    %877 = math.tanh %876 : vector<8x32xf32>
    %878 = arith.mulf %872, %877 : vector<8x32xf32>
    %c0_433 = arith.constant 0 : index
    %c32_434 = arith.constant 32 : index
    %879 = vector.load %arg14[%c0_433, %c32_434] : memref<8x64xf32, #tpu.memory_space<vmem>>, vector<8x32xf32>
    tpu.vector_store %arg14[%c0_433, %c32_434], %876 {strides = array<i32>} : memref<8x64xf32, #tpu.memory_space<vmem>>, vector<8x32xf32>,
    %c0_435 = arith.constant 0 : index
    %c32_436 = arith.constant 32 : index
    %880 = vector.load %arg13[%c0_435, %c32_436] : memref<8x64xf32, #tpu.memory_space<vmem>>, vector<8x32xf32>
    tpu.vector_store %arg13[%c0_435, %c32_436], %878 {strides = array<i32>} : memref<8x64xf32, #tpu.memory_space<vmem>>, vector<8x32xf32>,
    %c0_437 = arith.constant 0 : index
    %c32_438 = arith.constant 32 : index
    %881 = vector.load %arg13[%c0_437, %c32_438] : memref<8x64xf32, #tpu.memory_space<vmem>>, vector<8x32xf32>
    %c0_439 = arith.constant 0 : index
    %c0_440 = arith.constant 0 : index
    %882 = vector.load %arg10[%c0_439, %c0_440] : memref<32x128xf32, #tpu.memory_space<vmem>>, vector<32x128xf32>
    %cst_441 = arith.constant dense<0.000000e+00> : vector<8x128xf32>
    %883 = tpu.matmul %881, %882, %cst_441 {dimension_numbers = #tpu.dot_dimension_numbers<[1], [0], [0], [1], [0, 0, 1, 1], [], []>} : vector<8x32xf32>, vector<32x128xf32>, vector<8x128xf32> -> vector<8x128xf32>
    %c0_442 = arith.constant 0 : index
    %c0_443 = arith.constant 0 : index
    %884 = vector.load %arg11[%c0_442, %c0_443] : memref<1x128xf32, #tpu.memory_space<vmem>>, vector<1x128xf32>
    %885 = vector.broadcast %884 : vector<1x128xf32> to vector<8x128xf32>
    %886 = arith.addf %883, %885 : vector<8x128xf32>
    %c2_444 = arith.constant 2 : index
    %c0_445 = arith.constant 0 : index
    %c0_446 = arith.constant 0 : index
    %887 = vector.load %arg12[%c2_444, %c0_445, %c0_446] : memref<8x8x128xf32, #tpu.memory_space<vmem>>, vector<1x8x128xf32>
    %888 = vector.shape_cast %887 : vector<1x8x128xf32> to vector<8x128xf32>
    %889 = vector.shape_cast %886 : vector<8x128xf32> to vector<1x8x128xf32>
    tpu.vector_store %arg12[%c2_444, %c0_445, %c0_446], %889 {strides = array<i32>} : memref<8x8x128xf32, #tpu.memory_space<vmem>>, vector<1x8x128xf32>,
    %cst_447 = arith.constant dense<0xFF800000> : vector<8xf32>
    %890 = vector.multi_reduction <maximumf>, %886, %cst_447 [1] : vector<8x128xf32> to vector<8xf32>
    %891 = vector.shape_cast %890 : vector<8xf32> to vector<8x1xf32>
    %892 = vector.broadcast %891 : vector<8x1xf32> to vector<8x128xf32>
    %893 = arith.cmpf oeq, %886, %892 : vector<8x128xf32>
    %c128_i32_448 = arith.constant 128 : i32
    %894 = vector.broadcast %c128_i32_448 : i32 to vector<8x128xi32>
    %895 = arith.select %893, %708, %894 : vector<8x128xi1>, vector<8x128xi32>
    %cst_449 = arith.constant dense<2147483647> : vector<8xi32>
    %896 = vector.multi_reduction <minsi>, %895, %cst_449 [1] : vector<8x128xi32> to vector<8xi32>
    %897 = vector.shape_cast %896 : vector<8xi32> to vector<8x1xi32>
    %898 = vector.broadcast %897 : vector<8x1xi32> to vector<8x128xi32>
    %899 = arith.cmpi eq, %708, %898 : vector<8x128xi32>
    %900 = arith.extui %899 : vector<8x128xi1> to vector<8x128xi32>
    %901 = arith.sitofp %900 : vector<8x128xi32> to vector<8x128xf32>
    %c0_450 = arith.constant 0 : index
    %c0_451 = arith.constant 0 : index
    %902 = vector.load %arg5[%c0_450, %c0_451] : memref<128x128xf32, #tpu.memory_space<vmem>>, vector<128x128xf32>
    %cst_452 = arith.constant dense<0.000000e+00> : vector<8x128xf32>
    %903 = tpu.matmul %901, %902, %cst_452 {dimension_numbers = #tpu.dot_dimension_numbers<[1], [0], [0], [1], [0, 0, 1, 1], [], []>} : vector<8x128xf32>, vector<128x128xf32>, vector<8x128xf32> -> vector<8x128xf32>
    %c2_453 = arith.constant 2 : index
    %c0_454 = arith.constant 0 : index
    %c0_455 = arith.constant 0 : index
    %904 = vector.load %arg0[%c2_453, %c0_454, %c0_455] : memref<8x1x1xf32, #tpu.memory_space<vmem>>, vector<1x1x1xf32>
    %905 = vector.shape_cast %904 : vector<1x1x1xf32> to vector<1x1xf32>
    %c2_456 = arith.constant 2 : index
    %c0_457 = arith.constant 0 : index
    %c0_458 = arith.constant 0 : index
    %906 = vector.load %arg9[%c2_456, %c0_457, %c0_458] : memref<8x8x128xf32, #tpu.memory_space<vmem>>, vector<1x8x128xf32>
    %907 = vector.shape_cast %906 : vector<1x8x128xf32> to vector<8x128xf32>
    %908 = vector.broadcast %905 : vector<1x1xf32> to vector<8x128xf32>
    %909 = arith.mulf %908, %907 : vector<8x128xf32>
    %cst_459 = arith.constant 1.000000e+00 : f32
    %910 = vector.broadcast %cst_459 : f32 to vector<1x1xf32>
    %911 = arith.subf %910, %905 : vector<1x1xf32>
    %912 = vector.broadcast %911 : vector<1x1xf32> to vector<8x128xf32>
    %913 = arith.mulf %912, %903 : vector<8x128xf32>
    %914 = arith.addf %909, %913 : vector<8x128xf32>
    %c0_460 = arith.constant 0 : index
    %c0_461 = arith.constant 0 : index
    %915 = vector.load %arg13[%c0_460, %c0_461] : memref<8x64xf32, #tpu.memory_space<vmem>>, vector<8x32xf32>
    %c0_462 = arith.constant 0 : index
    %c0_463 = arith.constant 0 : index
    %916 = vector.load %arg6[%c0_462, %c0_463] : memref<32x128xf32, #tpu.memory_space<vmem>>, vector<32x128xf32>
    %cst_464 = arith.constant dense<0.000000e+00> : vector<8x128xf32>
    %917 = tpu.matmul %915, %916, %cst_464 {dimension_numbers = #tpu.dot_dimension_numbers<[1], [0], [0], [1], [0, 0, 1, 1], [], []>} : vector<8x32xf32>, vector<32x128xf32>, vector<8x128xf32> -> vector<8x128xf32>
    %918 = arith.addf %914, %917 : vector<8x128xf32>
    %919 = vector.extract_strided_slice %918 {offsets = [0, 0], sizes = [8, 32], strides = [1, 1]} : vector<8x128xf32> to vector<8x32xf32>
    %920 = arith.negf %919 : vector<8x32xf32>
    %921 = math.exp %920 : vector<8x32xf32>
    %cst_465 = arith.constant 1.000000e+00 : f32
    %922 = vector.broadcast %cst_465 : f32 to vector<8x32xf32>
    %923 = arith.addf %922, %921 : vector<8x32xf32>
    %924 = arith.divf %922, %923 : vector<8x32xf32>
    %925 = vector.extract_strided_slice %918 {offsets = [0, 32], sizes = [8, 32], strides = [1, 1]} : vector<8x128xf32> to vector<8x32xf32>
    %926 = arith.negf %925 : vector<8x32xf32>
    %927 = math.exp %926 : vector<8x32xf32>
    %cst_466 = arith.constant 1.000000e+00 : f32
    %928 = vector.broadcast %cst_466 : f32 to vector<8x32xf32>
    %929 = arith.addf %928, %927 : vector<8x32xf32>
    %930 = arith.divf %928, %929 : vector<8x32xf32>
    %931 = vector.extract_strided_slice %918 {offsets = [0, 64], sizes = [8, 32], strides = [1, 1]} : vector<8x128xf32> to vector<8x32xf32>
    %932 = math.tanh %931 : vector<8x32xf32>
    %933 = vector.extract_strided_slice %918 {offsets = [0, 96], sizes = [8, 32], strides = [1, 1]} : vector<8x128xf32> to vector<8x32xf32>
    %934 = arith.negf %933 : vector<8x32xf32>
    %935 = math.exp %934 : vector<8x32xf32>
    %cst_467 = arith.constant 1.000000e+00 : f32
    %936 = vector.broadcast %cst_467 : f32 to vector<8x32xf32>
    %937 = arith.addf %936, %935 : vector<8x32xf32>
    %938 = arith.divf %936, %937 : vector<8x32xf32>
    %c0_468 = arith.constant 0 : index
    %c0_469 = arith.constant 0 : index
    %939 = vector.load %arg14[%c0_468, %c0_469] : memref<8x64xf32, #tpu.memory_space<vmem>>, vector<8x32xf32>
    %940 = arith.mulf %930, %939 : vector<8x32xf32>
    %941 = arith.mulf %924, %932 : vector<8x32xf32>
    %942 = arith.addf %940, %941 : vector<8x32xf32>
    %943 = math.tanh %942 : vector<8x32xf32>
    %944 = arith.mulf %938, %943 : vector<8x32xf32>
    %c0_470 = arith.constant 0 : index
    %c0_471 = arith.constant 0 : index
    %945 = vector.load %arg14[%c0_470, %c0_471] : memref<8x64xf32, #tpu.memory_space<vmem>>, vector<8x32xf32>
    tpu.vector_store %arg14[%c0_470, %c0_471], %942 {strides = array<i32>} : memref<8x64xf32, #tpu.memory_space<vmem>>, vector<8x32xf32>,
    %c0_472 = arith.constant 0 : index
    %c0_473 = arith.constant 0 : index
    %946 = vector.load %arg13[%c0_472, %c0_473] : memref<8x64xf32, #tpu.memory_space<vmem>>, vector<8x32xf32>
    tpu.vector_store %arg13[%c0_472, %c0_473], %944 {strides = array<i32>} : memref<8x64xf32, #tpu.memory_space<vmem>>, vector<8x32xf32>,
    %c0_474 = arith.constant 0 : index
    %c0_475 = arith.constant 0 : index
    %947 = vector.load %arg13[%c0_474, %c0_475] : memref<8x64xf32, #tpu.memory_space<vmem>>, vector<8x64xf32>
    %c0_476 = arith.constant 0 : index
    %c0_477 = arith.constant 0 : index
    %c0_478 = arith.constant 0 : index
    %948 = vector.load %arg7[%c0_476, %c0_477, %c0_478] : memref<1x64x128xf32, #tpu.memory_space<vmem>>, vector<1x64x128xf32>
    %949 = vector.shape_cast %948 : vector<1x64x128xf32> to vector<64x128xf32>
    %cst_479 = arith.constant dense<0.000000e+00> : vector<8x128xf32>
    %950 = tpu.matmul %947, %949, %cst_479 {dimension_numbers = #tpu.dot_dimension_numbers<[1], [0], [0], [1], [0, 0, 1, 1], [], []>} : vector<8x64xf32>, vector<64x128xf32>, vector<8x128xf32> -> vector<8x128xf32>
    %c0_480 = arith.constant 0 : index
    %c0_481 = arith.constant 0 : index
    %c0_482 = arith.constant 0 : index
    %951 = vector.load %arg8[%c0_480, %c0_481, %c0_482] : memref<1x1x128xf32, #tpu.memory_space<vmem>>, vector<1x1x128xf32>
    %952 = vector.shape_cast %951 : vector<1x1x128xf32> to vector<1x128xf32>
    %953 = vector.broadcast %952 : vector<1x128xf32> to vector<8x128xf32>
    %954 = arith.addf %950, %953 : vector<8x128xf32>
    %955 = vector.extract_strided_slice %954 {offsets = [0, 0], sizes = [8, 32], strides = [1, 1]} : vector<8x128xf32> to vector<8x32xf32>
    %956 = arith.negf %955 : vector<8x32xf32>
    %957 = math.exp %956 : vector<8x32xf32>
    %cst_483 = arith.constant 1.000000e+00 : f32
    %958 = vector.broadcast %cst_483 : f32 to vector<8x32xf32>
    %959 = arith.addf %958, %957 : vector<8x32xf32>
    %960 = arith.divf %958, %959 : vector<8x32xf32>
    %961 = vector.extract_strided_slice %954 {offsets = [0, 32], sizes = [8, 32], strides = [1, 1]} : vector<8x128xf32> to vector<8x32xf32>
    %962 = arith.negf %961 : vector<8x32xf32>
    %963 = math.exp %962 : vector<8x32xf32>
    %cst_484 = arith.constant 1.000000e+00 : f32
    %964 = vector.broadcast %cst_484 : f32 to vector<8x32xf32>
    %965 = arith.addf %964, %963 : vector<8x32xf32>
    %966 = arith.divf %964, %965 : vector<8x32xf32>
    %967 = vector.extract_strided_slice %954 {offsets = [0, 64], sizes = [8, 32], strides = [1, 1]} : vector<8x128xf32> to vector<8x32xf32>
    %968 = math.tanh %967 : vector<8x32xf32>
    %969 = vector.extract_strided_slice %954 {offsets = [0, 96], sizes = [8, 32], strides = [1, 1]} : vector<8x128xf32> to vector<8x32xf32>
    %970 = arith.negf %969 : vector<8x32xf32>
    %971 = math.exp %970 : vector<8x32xf32>
    %cst_485 = arith.constant 1.000000e+00 : f32
    %972 = vector.broadcast %cst_485 : f32 to vector<8x32xf32>
    %973 = arith.addf %972, %971 : vector<8x32xf32>
    %974 = arith.divf %972, %973 : vector<8x32xf32>
    %c0_486 = arith.constant 0 : index
    %c32_487 = arith.constant 32 : index
    %975 = vector.load %arg14[%c0_486, %c32_487] : memref<8x64xf32, #tpu.memory_space<vmem>>, vector<8x32xf32>
    %976 = arith.mulf %966, %975 : vector<8x32xf32>
    %977 = arith.mulf %960, %968 : vector<8x32xf32>
    %978 = arith.addf %976, %977 : vector<8x32xf32>
    %979 = math.tanh %978 : vector<8x32xf32>
    %980 = arith.mulf %974, %979 : vector<8x32xf32>
    %c0_488 = arith.constant 0 : index
    %c32_489 = arith.constant 32 : index
    %981 = vector.load %arg14[%c0_488, %c32_489] : memref<8x64xf32, #tpu.memory_space<vmem>>, vector<8x32xf32>
    tpu.vector_store %arg14[%c0_488, %c32_489], %978 {strides = array<i32>} : memref<8x64xf32, #tpu.memory_space<vmem>>, vector<8x32xf32>,
    %c0_490 = arith.constant 0 : index
    %c32_491 = arith.constant 32 : index
    %982 = vector.load %arg13[%c0_490, %c32_491] : memref<8x64xf32, #tpu.memory_space<vmem>>, vector<8x32xf32>
    tpu.vector_store %arg13[%c0_490, %c32_491], %980 {strides = array<i32>} : memref<8x64xf32, #tpu.memory_space<vmem>>, vector<8x32xf32>,
    %c0_492 = arith.constant 0 : index
    %c32_493 = arith.constant 32 : index
    %983 = vector.load %arg13[%c0_492, %c32_493] : memref<8x64xf32, #tpu.memory_space<vmem>>, vector<8x32xf32>
    %c0_494 = arith.constant 0 : index
    %c0_495 = arith.constant 0 : index
    %984 = vector.load %arg10[%c0_494, %c0_495] : memref<32x128xf32, #tpu.memory_space<vmem>>, vector<32x128xf32>
    %cst_496 = arith.constant dense<0.000000e+00> : vector<8x128xf32>
    %985 = tpu.matmul %983, %984, %cst_496 {dimension_numbers = #tpu.dot_dimension_numbers<[1], [0], [0], [1], [0, 0, 1, 1], [], []>} : vector<8x32xf32>, vector<32x128xf32>, vector<8x128xf32> -> vector<8x128xf32>
    %c0_497 = arith.constant 0 : index
    %c0_498 = arith.constant 0 : index
    %986 = vector.load %arg11[%c0_497, %c0_498] : memref<1x128xf32, #tpu.memory_space<vmem>>, vector<1x128xf32>
    %987 = vector.broadcast %986 : vector<1x128xf32> to vector<8x128xf32>
    %988 = arith.addf %985, %987 : vector<8x128xf32>
    %c3_499 = arith.constant 3 : index
    %c0_500 = arith.constant 0 : index
    %c0_501 = arith.constant 0 : index
    %989 = vector.load %arg12[%c3_499, %c0_500, %c0_501] : memref<8x8x128xf32, #tpu.memory_space<vmem>>, vector<1x8x128xf32>
    %990 = vector.shape_cast %989 : vector<1x8x128xf32> to vector<8x128xf32>
    %991 = vector.shape_cast %988 : vector<8x128xf32> to vector<1x8x128xf32>
    tpu.vector_store %arg12[%c3_499, %c0_500, %c0_501], %991 {strides = array<i32>} : memref<8x8x128xf32, #tpu.memory_space<vmem>>, vector<1x8x128xf32>,
    %cst_502 = arith.constant dense<0xFF800000> : vector<8xf32>
    %992 = vector.multi_reduction <maximumf>, %988, %cst_502 [1] : vector<8x128xf32> to vector<8xf32>
    %993 = vector.shape_cast %992 : vector<8xf32> to vector<8x1xf32>
    %994 = vector.broadcast %993 : vector<8x1xf32> to vector<8x128xf32>
    %995 = arith.cmpf oeq, %988, %994 : vector<8x128xf32>
    %c128_i32_503 = arith.constant 128 : i32
    %996 = vector.broadcast %c128_i32_503 : i32 to vector<8x128xi32>
    %997 = arith.select %995, %708, %996 : vector<8x128xi1>, vector<8x128xi32>
    %cst_504 = arith.constant dense<2147483647> : vector<8xi32>
    %998 = vector.multi_reduction <minsi>, %997, %cst_504 [1] : vector<8x128xi32> to vector<8xi32>
    %999 = vector.shape_cast %998 : vector<8xi32> to vector<8x1xi32>
    %1000 = vector.broadcast %999 : vector<8x1xi32> to vector<8x128xi32>
    %1001 = arith.cmpi eq, %708, %1000 : vector<8x128xi32>
    %1002 = arith.extui %1001 : vector<8x128xi1> to vector<8x128xi32>
    %1003 = arith.sitofp %1002 : vector<8x128xi32> to vector<8x128xf32>
    %c0_505 = arith.constant 0 : index
    %c0_506 = arith.constant 0 : index
    %1004 = vector.load %arg5[%c0_505, %c0_506] : memref<128x128xf32, #tpu.memory_space<vmem>>, vector<128x128xf32>
    %cst_507 = arith.constant dense<0.000000e+00> : vector<8x128xf32>
    %1005 = tpu.matmul %1003, %1004, %cst_507 {dimension_numbers = #tpu.dot_dimension_numbers<[1], [0], [0], [1], [0, 0, 1, 1], [], []>} : vector<8x128xf32>, vector<128x128xf32>, vector<8x128xf32> -> vector<8x128xf32>
    %c3_508 = arith.constant 3 : index
    %c0_509 = arith.constant 0 : index
    %c0_510 = arith.constant 0 : index
    %1006 = vector.load %arg0[%c3_508, %c0_509, %c0_510] : memref<8x1x1xf32, #tpu.memory_space<vmem>>, vector<1x1x1xf32>
    %1007 = vector.shape_cast %1006 : vector<1x1x1xf32> to vector<1x1xf32>
    %c3_511 = arith.constant 3 : index
    %c0_512 = arith.constant 0 : index
    %c0_513 = arith.constant 0 : index
    %1008 = vector.load %arg9[%c3_511, %c0_512, %c0_513] : memref<8x8x128xf32, #tpu.memory_space<vmem>>, vector<1x8x128xf32>
    %1009 = vector.shape_cast %1008 : vector<1x8x128xf32> to vector<8x128xf32>
    %1010 = vector.broadcast %1007 : vector<1x1xf32> to vector<8x128xf32>
    %1011 = arith.mulf %1010, %1009 : vector<8x128xf32>
    %cst_514 = arith.constant 1.000000e+00 : f32
    %1012 = vector.broadcast %cst_514 : f32 to vector<1x1xf32>
    %1013 = arith.subf %1012, %1007 : vector<1x1xf32>
    %1014 = vector.broadcast %1013 : vector<1x1xf32> to vector<8x128xf32>
    %1015 = arith.mulf %1014, %1005 : vector<8x128xf32>
    %1016 = arith.addf %1011, %1015 : vector<8x128xf32>
    %c0_515 = arith.constant 0 : index
    %c0_516 = arith.constant 0 : index
    %1017 = vector.load %arg13[%c0_515, %c0_516] : memref<8x64xf32, #tpu.memory_space<vmem>>, vector<8x32xf32>
    %c0_517 = arith.constant 0 : index
    %c0_518 = arith.constant 0 : index
    %1018 = vector.load %arg6[%c0_517, %c0_518] : memref<32x128xf32, #tpu.memory_space<vmem>>, vector<32x128xf32>
    %cst_519 = arith.constant dense<0.000000e+00> : vector<8x128xf32>
    %1019 = tpu.matmul %1017, %1018, %cst_519 {dimension_numbers = #tpu.dot_dimension_numbers<[1], [0], [0], [1], [0, 0, 1, 1], [], []>} : vector<8x32xf32>, vector<32x128xf32>, vector<8x128xf32> -> vector<8x128xf32>
    %1020 = arith.addf %1016, %1019 : vector<8x128xf32>
    %1021 = vector.extract_strided_slice %1020 {offsets = [0, 0], sizes = [8, 32], strides = [1, 1]} : vector<8x128xf32> to vector<8x32xf32>
    %1022 = arith.negf %1021 : vector<8x32xf32>
    %1023 = math.exp %1022 : vector<8x32xf32>
    %cst_520 = arith.constant 1.000000e+00 : f32
    %1024 = vector.broadcast %cst_520 : f32 to vector<8x32xf32>
    %1025 = arith.addf %1024, %1023 : vector<8x32xf32>
    %1026 = arith.divf %1024, %1025 : vector<8x32xf32>
    %1027 = vector.extract_strided_slice %1020 {offsets = [0, 32], sizes = [8, 32], strides = [1, 1]} : vector<8x128xf32> to vector<8x32xf32>
    %1028 = arith.negf %1027 : vector<8x32xf32>
    %1029 = math.exp %1028 : vector<8x32xf32>
    %cst_521 = arith.constant 1.000000e+00 : f32
    %1030 = vector.broadcast %cst_521 : f32 to vector<8x32xf32>
    %1031 = arith.addf %1030, %1029 : vector<8x32xf32>
    %1032 = arith.divf %1030, %1031 : vector<8x32xf32>
    %1033 = vector.extract_strided_slice %1020 {offsets = [0, 64], sizes = [8, 32], strides = [1, 1]} : vector<8x128xf32> to vector<8x32xf32>
    %1034 = math.tanh %1033 : vector<8x32xf32>
    %1035 = vector.extract_strided_slice %1020 {offsets = [0, 96], sizes = [8, 32], strides = [1, 1]} : vector<8x128xf32> to vector<8x32xf32>
    %1036 = arith.negf %1035 : vector<8x32xf32>
    %1037 = math.exp %1036 : vector<8x32xf32>
    %cst_522 = arith.constant 1.000000e+00 : f32
    %1038 = vector.broadcast %cst_522 : f32 to vector<8x32xf32>
    %1039 = arith.addf %1038, %1037 : vector<8x32xf32>
    %1040 = arith.divf %1038, %1039 : vector<8x32xf32>
    %c0_523 = arith.constant 0 : index
    %c0_524 = arith.constant 0 : index
    %1041 = vector.load %arg14[%c0_523, %c0_524] : memref<8x64xf32, #tpu.memory_space<vmem>>, vector<8x32xf32>
    %1042 = arith.mulf %1032, %1041 : vector<8x32xf32>
    %1043 = arith.mulf %1026, %1034 : vector<8x32xf32>
    %1044 = arith.addf %1042, %1043 : vector<8x32xf32>
    %1045 = math.tanh %1044 : vector<8x32xf32>
    %1046 = arith.mulf %1040, %1045 : vector<8x32xf32>
    %c0_525 = arith.constant 0 : index
    %c0_526 = arith.constant 0 : index
    %1047 = vector.load %arg14[%c0_525, %c0_526] : memref<8x64xf32, #tpu.memory_space<vmem>>, vector<8x32xf32>
    tpu.vector_store %arg14[%c0_525, %c0_526], %1044 {strides = array<i32>} : memref<8x64xf32, #tpu.memory_space<vmem>>, vector<8x32xf32>,
    %c0_527 = arith.constant 0 : index
    %c0_528 = arith.constant 0 : index
    %1048 = vector.load %arg13[%c0_527, %c0_528] : memref<8x64xf32, #tpu.memory_space<vmem>>, vector<8x32xf32>
    tpu.vector_store %arg13[%c0_527, %c0_528], %1046 {strides = array<i32>} : memref<8x64xf32, #tpu.memory_space<vmem>>, vector<8x32xf32>,
    %c0_529 = arith.constant 0 : index
    %c0_530 = arith.constant 0 : index
    %1049 = vector.load %arg13[%c0_529, %c0_530] : memref<8x64xf32, #tpu.memory_space<vmem>>, vector<8x64xf32>
    %c0_531 = arith.constant 0 : index
    %c0_532 = arith.constant 0 : index
    %c0_533 = arith.constant 0 : index
    %1050 = vector.load %arg7[%c0_531, %c0_532, %c0_533] : memref<1x64x128xf32, #tpu.memory_space<vmem>>, vector<1x64x128xf32>
    %1051 = vector.shape_cast %1050 : vector<1x64x128xf32> to vector<64x128xf32>
    %cst_534 = arith.constant dense<0.000000e+00> : vector<8x128xf32>
    %1052 = tpu.matmul %1049, %1051, %cst_534 {dimension_numbers = #tpu.dot_dimension_numbers<[1], [0], [0], [1], [0, 0, 1, 1], [], []>} : vector<8x64xf32>, vector<64x128xf32>, vector<8x128xf32> -> vector<8x128xf32>
    %c0_535 = arith.constant 0 : index
    %c0_536 = arith.constant 0 : index
    %c0_537 = arith.constant 0 : index
    %1053 = vector.load %arg8[%c0_535, %c0_536, %c0_537] : memref<1x1x128xf32, #tpu.memory_space<vmem>>, vector<1x1x128xf32>
    %1054 = vector.shape_cast %1053 : vector<1x1x128xf32> to vector<1x128xf32>
    %1055 = vector.broadcast %1054 : vector<1x128xf32> to vector<8x128xf32>
    %1056 = arith.addf %1052, %1055 : vector<8x128xf32>
    %1057 = vector.extract_strided_slice %1056 {offsets = [0, 0], sizes = [8, 32], strides = [1, 1]} : vector<8x128xf32> to vector<8x32xf32>
    %1058 = arith.negf %1057 : vector<8x32xf32>
    %1059 = math.exp %1058 : vector<8x32xf32>
    %cst_538 = arith.constant 1.000000e+00 : f32
    %1060 = vector.broadcast %cst_538 : f32 to vector<8x32xf32>
    %1061 = arith.addf %1060, %1059 : vector<8x32xf32>
    %1062 = arith.divf %1060, %1061 : vector<8x32xf32>
    %1063 = vector.extract_strided_slice %1056 {offsets = [0, 32], sizes = [8, 32], strides = [1, 1]} : vector<8x128xf32> to vector<8x32xf32>
    %1064 = arith.negf %1063 : vector<8x32xf32>
    %1065 = math.exp %1064 : vector<8x32xf32>
    %cst_539 = arith.constant 1.000000e+00 : f32
    %1066 = vector.broadcast %cst_539 : f32 to vector<8x32xf32>
    %1067 = arith.addf %1066, %1065 : vector<8x32xf32>
    %1068 = arith.divf %1066, %1067 : vector<8x32xf32>
    %1069 = vector.extract_strided_slice %1056 {offsets = [0, 64], sizes = [8, 32], strides = [1, 1]} : vector<8x128xf32> to vector<8x32xf32>
    %1070 = math.tanh %1069 : vector<8x32xf32>
    %1071 = vector.extract_strided_slice %1056 {offsets = [0, 96], sizes = [8, 32], strides = [1, 1]} : vector<8x128xf32> to vector<8x32xf32>
    %1072 = arith.negf %1071 : vector<8x32xf32>
    %1073 = math.exp %1072 : vector<8x32xf32>
    %cst_540 = arith.constant 1.000000e+00 : f32
    %1074 = vector.broadcast %cst_540 : f32 to vector<8x32xf32>
    %1075 = arith.addf %1074, %1073 : vector<8x32xf32>
    %1076 = arith.divf %1074, %1075 : vector<8x32xf32>
    %c0_541 = arith.constant 0 : index
    %c32_542 = arith.constant 32 : index
    %1077 = vector.load %arg14[%c0_541, %c32_542] : memref<8x64xf32, #tpu.memory_space<vmem>>, vector<8x32xf32>
    %1078 = arith.mulf %1068, %1077 : vector<8x32xf32>
    %1079 = arith.mulf %1062, %1070 : vector<8x32xf32>
    %1080 = arith.addf %1078, %1079 : vector<8x32xf32>
    %1081 = math.tanh %1080 : vector<8x32xf32>
    %1082 = arith.mulf %1076, %1081 : vector<8x32xf32>
    %c0_543 = arith.constant 0 : index
    %c32_544 = arith.constant 32 : index
    %1083 = vector.load %arg14[%c0_543, %c32_544] : memref<8x64xf32, #tpu.memory_space<vmem>>, vector<8x32xf32>
    tpu.vector_store %arg14[%c0_543, %c32_544], %1080 {strides = array<i32>} : memref<8x64xf32, #tpu.memory_space<vmem>>, vector<8x32xf32>,
    %c0_545 = arith.constant 0 : index
    %c32_546 = arith.constant 32 : index
    %1084 = vector.load %arg13[%c0_545, %c32_546] : memref<8x64xf32, #tpu.memory_space<vmem>>, vector<8x32xf32>
    tpu.vector_store %arg13[%c0_545, %c32_546], %1082 {strides = array<i32>} : memref<8x64xf32, #tpu.memory_space<vmem>>, vector<8x32xf32>,
    %c0_547 = arith.constant 0 : index
    %c32_548 = arith.constant 32 : index
    %1085 = vector.load %arg13[%c0_547, %c32_548] : memref<8x64xf32, #tpu.memory_space<vmem>>, vector<8x32xf32>
    %c0_549 = arith.constant 0 : index
    %c0_550 = arith.constant 0 : index
    %1086 = vector.load %arg10[%c0_549, %c0_550] : memref<32x128xf32, #tpu.memory_space<vmem>>, vector<32x128xf32>
    %cst_551 = arith.constant dense<0.000000e+00> : vector<8x128xf32>
    %1087 = tpu.matmul %1085, %1086, %cst_551 {dimension_numbers = #tpu.dot_dimension_numbers<[1], [0], [0], [1], [0, 0, 1, 1], [], []>} : vector<8x32xf32>, vector<32x128xf32>, vector<8x128xf32> -> vector<8x128xf32>
    %c0_552 = arith.constant 0 : index
    %c0_553 = arith.constant 0 : index
    %1088 = vector.load %arg11[%c0_552, %c0_553] : memref<1x128xf32, #tpu.memory_space<vmem>>, vector<1x128xf32>
    %1089 = vector.broadcast %1088 : vector<1x128xf32> to vector<8x128xf32>
    %1090 = arith.addf %1087, %1089 : vector<8x128xf32>
    %c4_554 = arith.constant 4 : index
    %c0_555 = arith.constant 0 : index
    %c0_556 = arith.constant 0 : index
    %1091 = vector.load %arg12[%c4_554, %c0_555, %c0_556] : memref<8x8x128xf32, #tpu.memory_space<vmem>>, vector<1x8x128xf32>
    %1092 = vector.shape_cast %1091 : vector<1x8x128xf32> to vector<8x128xf32>
    %1093 = vector.shape_cast %1090 : vector<8x128xf32> to vector<1x8x128xf32>
    tpu.vector_store %arg12[%c4_554, %c0_555, %c0_556], %1093 {strides = array<i32>} : memref<8x8x128xf32, #tpu.memory_space<vmem>>, vector<1x8x128xf32>,
    %cst_557 = arith.constant dense<0xFF800000> : vector<8xf32>
    %1094 = vector.multi_reduction <maximumf>, %1090, %cst_557 [1] : vector<8x128xf32> to vector<8xf32>
    %1095 = vector.shape_cast %1094 : vector<8xf32> to vector<8x1xf32>
    %1096 = vector.broadcast %1095 : vector<8x1xf32> to vector<8x128xf32>
    %1097 = arith.cmpf oeq, %1090, %1096 : vector<8x128xf32>
    %c128_i32_558 = arith.constant 128 : i32
    %1098 = vector.broadcast %c128_i32_558 : i32 to vector<8x128xi32>
    %1099 = arith.select %1097, %708, %1098 : vector<8x128xi1>, vector<8x128xi32>
    %cst_559 = arith.constant dense<2147483647> : vector<8xi32>
    %1100 = vector.multi_reduction <minsi>, %1099, %cst_559 [1] : vector<8x128xi32> to vector<8xi32>
    %1101 = vector.shape_cast %1100 : vector<8xi32> to vector<8x1xi32>
    %1102 = vector.broadcast %1101 : vector<8x1xi32> to vector<8x128xi32>
    %1103 = arith.cmpi eq, %708, %1102 : vector<8x128xi32>
    %1104 = arith.extui %1103 : vector<8x128xi1> to vector<8x128xi32>
    %1105 = arith.sitofp %1104 : vector<8x128xi32> to vector<8x128xf32>
    %c0_560 = arith.constant 0 : index
    %c0_561 = arith.constant 0 : index
    %1106 = vector.load %arg5[%c0_560, %c0_561] : memref<128x128xf32, #tpu.memory_space<vmem>>, vector<128x128xf32>
    %cst_562 = arith.constant dense<0.000000e+00> : vector<8x128xf32>
    %1107 = tpu.matmul %1105, %1106, %cst_562 {dimension_numbers = #tpu.dot_dimension_numbers<[1], [0], [0], [1], [0, 0, 1, 1], [], []>} : vector<8x128xf32>, vector<128x128xf32>, vector<8x128xf32> -> vector<8x128xf32>
    %c4_563 = arith.constant 4 : index
    %c0_564 = arith.constant 0 : index
    %c0_565 = arith.constant 0 : index
    %1108 = vector.load %arg0[%c4_563, %c0_564, %c0_565] : memref<8x1x1xf32, #tpu.memory_space<vmem>>, vector<1x1x1xf32>
    %1109 = vector.shape_cast %1108 : vector<1x1x1xf32> to vector<1x1xf32>
    %c4_566 = arith.constant 4 : index
    %c0_567 = arith.constant 0 : index
    %c0_568 = arith.constant 0 : index
    %1110 = vector.load %arg9[%c4_566, %c0_567, %c0_568] : memref<8x8x128xf32, #tpu.memory_space<vmem>>, vector<1x8x128xf32>
    %1111 = vector.shape_cast %1110 : vector<1x8x128xf32> to vector<8x128xf32>
    %1112 = vector.broadcast %1109 : vector<1x1xf32> to vector<8x128xf32>
    %1113 = arith.mulf %1112, %1111 : vector<8x128xf32>
    %cst_569 = arith.constant 1.000000e+00 : f32
    %1114 = vector.broadcast %cst_569 : f32 to vector<1x1xf32>
    %1115 = arith.subf %1114, %1109 : vector<1x1xf32>
    %1116 = vector.broadcast %1115 : vector<1x1xf32> to vector<8x128xf32>
    %1117 = arith.mulf %1116, %1107 : vector<8x128xf32>
    %1118 = arith.addf %1113, %1117 : vector<8x128xf32>
    %c0_570 = arith.constant 0 : index
    %c0_571 = arith.constant 0 : index
    %1119 = vector.load %arg13[%c0_570, %c0_571] : memref<8x64xf32, #tpu.memory_space<vmem>>, vector<8x32xf32>
    %c0_572 = arith.constant 0 : index
    %c0_573 = arith.constant 0 : index
    %1120 = vector.load %arg6[%c0_572, %c0_573] : memref<32x128xf32, #tpu.memory_space<vmem>>, vector<32x128xf32>
    %cst_574 = arith.constant dense<0.000000e+00> : vector<8x128xf32>
    %1121 = tpu.matmul %1119, %1120, %cst_574 {dimension_numbers = #tpu.dot_dimension_numbers<[1], [0], [0], [1], [0, 0, 1, 1], [], []>} : vector<8x32xf32>, vector<32x128xf32>, vector<8x128xf32> -> vector<8x128xf32>
    %1122 = arith.addf %1118, %1121 : vector<8x128xf32>
    %1123 = vector.extract_strided_slice %1122 {offsets = [0, 0], sizes = [8, 32], strides = [1, 1]} : vector<8x128xf32> to vector<8x32xf32>
    %1124 = arith.negf %1123 : vector<8x32xf32>
    %1125 = math.exp %1124 : vector<8x32xf32>
    %cst_575 = arith.constant 1.000000e+00 : f32
    %1126 = vector.broadcast %cst_575 : f32 to vector<8x32xf32>
    %1127 = arith.addf %1126, %1125 : vector<8x32xf32>
    %1128 = arith.divf %1126, %1127 : vector<8x32xf32>
    %1129 = vector.extract_strided_slice %1122 {offsets = [0, 32], sizes = [8, 32], strides = [1, 1]} : vector<8x128xf32> to vector<8x32xf32>
    %1130 = arith.negf %1129 : vector<8x32xf32>
    %1131 = math.exp %1130 : vector<8x32xf32>
    %cst_576 = arith.constant 1.000000e+00 : f32
    %1132 = vector.broadcast %cst_576 : f32 to vector<8x32xf32>
    %1133 = arith.addf %1132, %1131 : vector<8x32xf32>
    %1134 = arith.divf %1132, %1133 : vector<8x32xf32>
    %1135 = vector.extract_strided_slice %1122 {offsets = [0, 64], sizes = [8, 32], strides = [1, 1]} : vector<8x128xf32> to vector<8x32xf32>
    %1136 = math.tanh %1135 : vector<8x32xf32>
    %1137 = vector.extract_strided_slice %1122 {offsets = [0, 96], sizes = [8, 32], strides = [1, 1]} : vector<8x128xf32> to vector<8x32xf32>
    %1138 = arith.negf %1137 : vector<8x32xf32>
    %1139 = math.exp %1138 : vector<8x32xf32>
    %cst_577 = arith.constant 1.000000e+00 : f32
    %1140 = vector.broadcast %cst_577 : f32 to vector<8x32xf32>
    %1141 = arith.addf %1140, %1139 : vector<8x32xf32>
    %1142 = arith.divf %1140, %1141 : vector<8x32xf32>
    %c0_578 = arith.constant 0 : index
    %c0_579 = arith.constant 0 : index
    %1143 = vector.load %arg14[%c0_578, %c0_579] : memref<8x64xf32, #tpu.memory_space<vmem>>, vector<8x32xf32>
    %1144 = arith.mulf %1134, %1143 : vector<8x32xf32>
    %1145 = arith.mulf %1128, %1136 : vector<8x32xf32>
    %1146 = arith.addf %1144, %1145 : vector<8x32xf32>
    %1147 = math.tanh %1146 : vector<8x32xf32>
    %1148 = arith.mulf %1142, %1147 : vector<8x32xf32>
    %c0_580 = arith.constant 0 : index
    %c0_581 = arith.constant 0 : index
    %1149 = vector.load %arg14[%c0_580, %c0_581] : memref<8x64xf32, #tpu.memory_space<vmem>>, vector<8x32xf32>
    tpu.vector_store %arg14[%c0_580, %c0_581], %1146 {strides = array<i32>} : memref<8x64xf32, #tpu.memory_space<vmem>>, vector<8x32xf32>,
    %c0_582 = arith.constant 0 : index
    %c0_583 = arith.constant 0 : index
    %1150 = vector.load %arg13[%c0_582, %c0_583] : memref<8x64xf32, #tpu.memory_space<vmem>>, vector<8x32xf32>
    tpu.vector_store %arg13[%c0_582, %c0_583], %1148 {strides = array<i32>} : memref<8x64xf32, #tpu.memory_space<vmem>>, vector<8x32xf32>,
    %c0_584 = arith.constant 0 : index
    %c0_585 = arith.constant 0 : index
    %1151 = vector.load %arg13[%c0_584, %c0_585] : memref<8x64xf32, #tpu.memory_space<vmem>>, vector<8x64xf32>
    %c0_586 = arith.constant 0 : index
    %c0_587 = arith.constant 0 : index
    %c0_588 = arith.constant 0 : index
    %1152 = vector.load %arg7[%c0_586, %c0_587, %c0_588] : memref<1x64x128xf32, #tpu.memory_space<vmem>>, vector<1x64x128xf32>
    %1153 = vector.shape_cast %1152 : vector<1x64x128xf32> to vector<64x128xf32>
    %cst_589 = arith.constant dense<0.000000e+00> : vector<8x128xf32>
    %1154 = tpu.matmul %1151, %1153, %cst_589 {dimension_numbers = #tpu.dot_dimension_numbers<[1], [0], [0], [1], [0, 0, 1, 1], [], []>} : vector<8x64xf32>, vector<64x128xf32>, vector<8x128xf32> -> vector<8x128xf32>
    %c0_590 = arith.constant 0 : index
    %c0_591 = arith.constant 0 : index
    %c0_592 = arith.constant 0 : index
    %1155 = vector.load %arg8[%c0_590, %c0_591, %c0_592] : memref<1x1x128xf32, #tpu.memory_space<vmem>>, vector<1x1x128xf32>
    %1156 = vector.shape_cast %1155 : vector<1x1x128xf32> to vector<1x128xf32>
    %1157 = vector.broadcast %1156 : vector<1x128xf32> to vector<8x128xf32>
    %1158 = arith.addf %1154, %1157 : vector<8x128xf32>
    %1159 = vector.extract_strided_slice %1158 {offsets = [0, 0], sizes = [8, 32], strides = [1, 1]} : vector<8x128xf32> to vector<8x32xf32>
    %1160 = arith.negf %1159 : vector<8x32xf32>
    %1161 = math.exp %1160 : vector<8x32xf32>
    %cst_593 = arith.constant 1.000000e+00 : f32
    %1162 = vector.broadcast %cst_593 : f32 to vector<8x32xf32>
    %1163 = arith.addf %1162, %1161 : vector<8x32xf32>
    %1164 = arith.divf %1162, %1163 : vector<8x32xf32>
    %1165 = vector.extract_strided_slice %1158 {offsets = [0, 32], sizes = [8, 32], strides = [1, 1]} : vector<8x128xf32> to vector<8x32xf32>
    %1166 = arith.negf %1165 : vector<8x32xf32>
    %1167 = math.exp %1166 : vector<8x32xf32>
    %cst_594 = arith.constant 1.000000e+00 : f32
    %1168 = vector.broadcast %cst_594 : f32 to vector<8x32xf32>
    %1169 = arith.addf %1168, %1167 : vector<8x32xf32>
    %1170 = arith.divf %1168, %1169 : vector<8x32xf32>
    %1171 = vector.extract_strided_slice %1158 {offsets = [0, 64], sizes = [8, 32], strides = [1, 1]} : vector<8x128xf32> to vector<8x32xf32>
    %1172 = math.tanh %1171 : vector<8x32xf32>
    %1173 = vector.extract_strided_slice %1158 {offsets = [0, 96], sizes = [8, 32], strides = [1, 1]} : vector<8x128xf32> to vector<8x32xf32>
    %1174 = arith.negf %1173 : vector<8x32xf32>
    %1175 = math.exp %1174 : vector<8x32xf32>
    %cst_595 = arith.constant 1.000000e+00 : f32
    %1176 = vector.broadcast %cst_595 : f32 to vector<8x32xf32>
    %1177 = arith.addf %1176, %1175 : vector<8x32xf32>
    %1178 = arith.divf %1176, %1177 : vector<8x32xf32>
    %c0_596 = arith.constant 0 : index
    %c32_597 = arith.constant 32 : index
    %1179 = vector.load %arg14[%c0_596, %c32_597] : memref<8x64xf32, #tpu.memory_space<vmem>>, vector<8x32xf32>
    %1180 = arith.mulf %1170, %1179 : vector<8x32xf32>
    %1181 = arith.mulf %1164, %1172 : vector<8x32xf32>
    %1182 = arith.addf %1180, %1181 : vector<8x32xf32>
    %1183 = math.tanh %1182 : vector<8x32xf32>
    %1184 = arith.mulf %1178, %1183 : vector<8x32xf32>
    %c0_598 = arith.constant 0 : index
    %c32_599 = arith.constant 32 : index
    %1185 = vector.load %arg14[%c0_598, %c32_599] : memref<8x64xf32, #tpu.memory_space<vmem>>, vector<8x32xf32>
    tpu.vector_store %arg14[%c0_598, %c32_599], %1182 {strides = array<i32>} : memref<8x64xf32, #tpu.memory_space<vmem>>, vector<8x32xf32>,
    %c0_600 = arith.constant 0 : index
    %c32_601 = arith.constant 32 : index
    %1186 = vector.load %arg13[%c0_600, %c32_601] : memref<8x64xf32, #tpu.memory_space<vmem>>, vector<8x32xf32>
    tpu.vector_store %arg13[%c0_600, %c32_601], %1184 {strides = array<i32>} : memref<8x64xf32, #tpu.memory_space<vmem>>, vector<8x32xf32>,
    %c0_602 = arith.constant 0 : index
    %c32_603 = arith.constant 32 : index
    %1187 = vector.load %arg13[%c0_602, %c32_603] : memref<8x64xf32, #tpu.memory_space<vmem>>, vector<8x32xf32>
    %c0_604 = arith.constant 0 : index
    %c0_605 = arith.constant 0 : index
    %1188 = vector.load %arg10[%c0_604, %c0_605] : memref<32x128xf32, #tpu.memory_space<vmem>>, vector<32x128xf32>
    %cst_606 = arith.constant dense<0.000000e+00> : vector<8x128xf32>
    %1189 = tpu.matmul %1187, %1188, %cst_606 {dimension_numbers = #tpu.dot_dimension_numbers<[1], [0], [0], [1], [0, 0, 1, 1], [], []>} : vector<8x32xf32>, vector<32x128xf32>, vector<8x128xf32> -> vector<8x128xf32>
    %c0_607 = arith.constant 0 : index
    %c0_608 = arith.constant 0 : index
    %1190 = vector.load %arg11[%c0_607, %c0_608] : memref<1x128xf32, #tpu.memory_space<vmem>>, vector<1x128xf32>
    %1191 = vector.broadcast %1190 : vector<1x128xf32> to vector<8x128xf32>
    %1192 = arith.addf %1189, %1191 : vector<8x128xf32>
    %c5_609 = arith.constant 5 : index
    %c0_610 = arith.constant 0 : index
    %c0_611 = arith.constant 0 : index
    %1193 = vector.load %arg12[%c5_609, %c0_610, %c0_611] : memref<8x8x128xf32, #tpu.memory_space<vmem>>, vector<1x8x128xf32>
    %1194 = vector.shape_cast %1193 : vector<1x8x128xf32> to vector<8x128xf32>
    %1195 = vector.shape_cast %1192 : vector<8x128xf32> to vector<1x8x128xf32>
    tpu.vector_store %arg12[%c5_609, %c0_610, %c0_611], %1195 {strides = array<i32>} : memref<8x8x128xf32, #tpu.memory_space<vmem>>, vector<1x8x128xf32>,
    %cst_612 = arith.constant dense<0xFF800000> : vector<8xf32>
    %1196 = vector.multi_reduction <maximumf>, %1192, %cst_612 [1] : vector<8x128xf32> to vector<8xf32>
    %1197 = vector.shape_cast %1196 : vector<8xf32> to vector<8x1xf32>
    %1198 = vector.broadcast %1197 : vector<8x1xf32> to vector<8x128xf32>
    %1199 = arith.cmpf oeq, %1192, %1198 : vector<8x128xf32>
    %c128_i32_613 = arith.constant 128 : i32
    %1200 = vector.broadcast %c128_i32_613 : i32 to vector<8x128xi32>
    %1201 = arith.select %1199, %708, %1200 : vector<8x128xi1>, vector<8x128xi32>
    %cst_614 = arith.constant dense<2147483647> : vector<8xi32>
    %1202 = vector.multi_reduction <minsi>, %1201, %cst_614 [1] : vector<8x128xi32> to vector<8xi32>
    %1203 = vector.shape_cast %1202 : vector<8xi32> to vector<8x1xi32>
    %1204 = vector.broadcast %1203 : vector<8x1xi32> to vector<8x128xi32>
    %1205 = arith.cmpi eq, %708, %1204 : vector<8x128xi32>
    %1206 = arith.extui %1205 : vector<8x128xi1> to vector<8x128xi32>
    %1207 = arith.sitofp %1206 : vector<8x128xi32> to vector<8x128xf32>
    %c0_615 = arith.constant 0 : index
    %c0_616 = arith.constant 0 : index
    %1208 = vector.load %arg5[%c0_615, %c0_616] : memref<128x128xf32, #tpu.memory_space<vmem>>, vector<128x128xf32>
    %cst_617 = arith.constant dense<0.000000e+00> : vector<8x128xf32>
    %1209 = tpu.matmul %1207, %1208, %cst_617 {dimension_numbers = #tpu.dot_dimension_numbers<[1], [0], [0], [1], [0, 0, 1, 1], [], []>} : vector<8x128xf32>, vector<128x128xf32>, vector<8x128xf32> -> vector<8x128xf32>
    %c5_618 = arith.constant 5 : index
    %c0_619 = arith.constant 0 : index
    %c0_620 = arith.constant 0 : index
    %1210 = vector.load %arg0[%c5_618, %c0_619, %c0_620] : memref<8x1x1xf32, #tpu.memory_space<vmem>>, vector<1x1x1xf32>
    %1211 = vector.shape_cast %1210 : vector<1x1x1xf32> to vector<1x1xf32>
    %c5_621 = arith.constant 5 : index
    %c0_622 = arith.constant 0 : index
    %c0_623 = arith.constant 0 : index
    %1212 = vector.load %arg9[%c5_621, %c0_622, %c0_623] : memref<8x8x128xf32, #tpu.memory_space<vmem>>, vector<1x8x128xf32>
    %1213 = vector.shape_cast %1212 : vector<1x8x128xf32> to vector<8x128xf32>
    %1214 = vector.broadcast %1211 : vector<1x1xf32> to vector<8x128xf32>
    %1215 = arith.mulf %1214, %1213 : vector<8x128xf32>
    %cst_624 = arith.constant 1.000000e+00 : f32
    %1216 = vector.broadcast %cst_624 : f32 to vector<1x1xf32>
    %1217 = arith.subf %1216, %1211 : vector<1x1xf32>
    %1218 = vector.broadcast %1217 : vector<1x1xf32> to vector<8x128xf32>
    %1219 = arith.mulf %1218, %1209 : vector<8x128xf32>
    %1220 = arith.addf %1215, %1219 : vector<8x128xf32>
    %c0_625 = arith.constant 0 : index
    %c0_626 = arith.constant 0 : index
    %1221 = vector.load %arg13[%c0_625, %c0_626] : memref<8x64xf32, #tpu.memory_space<vmem>>, vector<8x32xf32>
    %c0_627 = arith.constant 0 : index
    %c0_628 = arith.constant 0 : index
    %1222 = vector.load %arg6[%c0_627, %c0_628] : memref<32x128xf32, #tpu.memory_space<vmem>>, vector<32x128xf32>
    %cst_629 = arith.constant dense<0.000000e+00> : vector<8x128xf32>
    %1223 = tpu.matmul %1221, %1222, %cst_629 {dimension_numbers = #tpu.dot_dimension_numbers<[1], [0], [0], [1], [0, 0, 1, 1], [], []>} : vector<8x32xf32>, vector<32x128xf32>, vector<8x128xf32> -> vector<8x128xf32>
    %1224 = arith.addf %1220, %1223 : vector<8x128xf32>
    %1225 = vector.extract_strided_slice %1224 {offsets = [0, 0], sizes = [8, 32], strides = [1, 1]} : vector<8x128xf32> to vector<8x32xf32>
    %1226 = arith.negf %1225 : vector<8x32xf32>
    %1227 = math.exp %1226 : vector<8x32xf32>
    %cst_630 = arith.constant 1.000000e+00 : f32
    %1228 = vector.broadcast %cst_630 : f32 to vector<8x32xf32>
    %1229 = arith.addf %1228, %1227 : vector<8x32xf32>
    %1230 = arith.divf %1228, %1229 : vector<8x32xf32>
    %1231 = vector.extract_strided_slice %1224 {offsets = [0, 32], sizes = [8, 32], strides = [1, 1]} : vector<8x128xf32> to vector<8x32xf32>
    %1232 = arith.negf %1231 : vector<8x32xf32>
    %1233 = math.exp %1232 : vector<8x32xf32>
    %cst_631 = arith.constant 1.000000e+00 : f32
    %1234 = vector.broadcast %cst_631 : f32 to vector<8x32xf32>
    %1235 = arith.addf %1234, %1233 : vector<8x32xf32>
    %1236 = arith.divf %1234, %1235 : vector<8x32xf32>
    %1237 = vector.extract_strided_slice %1224 {offsets = [0, 64], sizes = [8, 32], strides = [1, 1]} : vector<8x128xf32> to vector<8x32xf32>
    %1238 = math.tanh %1237 : vector<8x32xf32>
    %1239 = vector.extract_strided_slice %1224 {offsets = [0, 96], sizes = [8, 32], strides = [1, 1]} : vector<8x128xf32> to vector<8x32xf32>
    %1240 = arith.negf %1239 : vector<8x32xf32>
    %1241 = math.exp %1240 : vector<8x32xf32>
    %cst_632 = arith.constant 1.000000e+00 : f32
    %1242 = vector.broadcast %cst_632 : f32 to vector<8x32xf32>
    %1243 = arith.addf %1242, %1241 : vector<8x32xf32>
    %1244 = arith.divf %1242, %1243 : vector<8x32xf32>
    %c0_633 = arith.constant 0 : index
    %c0_634 = arith.constant 0 : index
    %1245 = vector.load %arg14[%c0_633, %c0_634] : memref<8x64xf32, #tpu.memory_space<vmem>>, vector<8x32xf32>
    %1246 = arith.mulf %1236, %1245 : vector<8x32xf32>
    %1247 = arith.mulf %1230, %1238 : vector<8x32xf32>
    %1248 = arith.addf %1246, %1247 : vector<8x32xf32>
    %1249 = math.tanh %1248 : vector<8x32xf32>
    %1250 = arith.mulf %1244, %1249 : vector<8x32xf32>
    %c0_635 = arith.constant 0 : index
    %c0_636 = arith.constant 0 : index
    %1251 = vector.load %arg14[%c0_635, %c0_636] : memref<8x64xf32, #tpu.memory_space<vmem>>, vector<8x32xf32>
    tpu.vector_store %arg14[%c0_635, %c0_636], %1248 {strides = array<i32>} : memref<8x64xf32, #tpu.memory_space<vmem>>, vector<8x32xf32>,
    %c0_637 = arith.constant 0 : index
    %c0_638 = arith.constant 0 : index
    %1252 = vector.load %arg13[%c0_637, %c0_638] : memref<8x64xf32, #tpu.memory_space<vmem>>, vector<8x32xf32>
    tpu.vector_store %arg13[%c0_637, %c0_638], %1250 {strides = array<i32>} : memref<8x64xf32, #tpu.memory_space<vmem>>, vector<8x32xf32>,
    %c0_639 = arith.constant 0 : index
    %c0_640 = arith.constant 0 : index
    %1253 = vector.load %arg13[%c0_639, %c0_640] : memref<8x64xf32, #tpu.memory_space<vmem>>, vector<8x64xf32>
    %c0_641 = arith.constant 0 : index
    %c0_642 = arith.constant 0 : index
    %c0_643 = arith.constant 0 : index
    %1254 = vector.load %arg7[%c0_641, %c0_642, %c0_643] : memref<1x64x128xf32, #tpu.memory_space<vmem>>, vector<1x64x128xf32>
    %1255 = vector.shape_cast %1254 : vector<1x64x128xf32> to vector<64x128xf32>
    %cst_644 = arith.constant dense<0.000000e+00> : vector<8x128xf32>
    %1256 = tpu.matmul %1253, %1255, %cst_644 {dimension_numbers = #tpu.dot_dimension_numbers<[1], [0], [0], [1], [0, 0, 1, 1], [], []>} : vector<8x64xf32>, vector<64x128xf32>, vector<8x128xf32> -> vector<8x128xf32>
    %c0_645 = arith.constant 0 : index
    %c0_646 = arith.constant 0 : index
    %c0_647 = arith.constant 0 : index
    %1257 = vector.load %arg8[%c0_645, %c0_646, %c0_647] : memref<1x1x128xf32, #tpu.memory_space<vmem>>, vector<1x1x128xf32>
    %1258 = vector.shape_cast %1257 : vector<1x1x128xf32> to vector<1x128xf32>
    %1259 = vector.broadcast %1258 : vector<1x128xf32> to vector<8x128xf32>
    %1260 = arith.addf %1256, %1259 : vector<8x128xf32>
    %1261 = vector.extract_strided_slice %1260 {offsets = [0, 0], sizes = [8, 32], strides = [1, 1]} : vector<8x128xf32> to vector<8x32xf32>
    %1262 = arith.negf %1261 : vector<8x32xf32>
    %1263 = math.exp %1262 : vector<8x32xf32>
    %cst_648 = arith.constant 1.000000e+00 : f32
    %1264 = vector.broadcast %cst_648 : f32 to vector<8x32xf32>
    %1265 = arith.addf %1264, %1263 : vector<8x32xf32>
    %1266 = arith.divf %1264, %1265 : vector<8x32xf32>
    %1267 = vector.extract_strided_slice %1260 {offsets = [0, 32], sizes = [8, 32], strides = [1, 1]} : vector<8x128xf32> to vector<8x32xf32>
    %1268 = arith.negf %1267 : vector<8x32xf32>
    %1269 = math.exp %1268 : vector<8x32xf32>
    %cst_649 = arith.constant 1.000000e+00 : f32
    %1270 = vector.broadcast %cst_649 : f32 to vector<8x32xf32>
    %1271 = arith.addf %1270, %1269 : vector<8x32xf32>
    %1272 = arith.divf %1270, %1271 : vector<8x32xf32>
    %1273 = vector.extract_strided_slice %1260 {offsets = [0, 64], sizes = [8, 32], strides = [1, 1]} : vector<8x128xf32> to vector<8x32xf32>
    %1274 = math.tanh %1273 : vector<8x32xf32>
    %1275 = vector.extract_strided_slice %1260 {offsets = [0, 96], sizes = [8, 32], strides = [1, 1]} : vector<8x128xf32> to vector<8x32xf32>
    %1276 = arith.negf %1275 : vector<8x32xf32>
    %1277 = math.exp %1276 : vector<8x32xf32>
    %cst_650 = arith.constant 1.000000e+00 : f32
    %1278 = vector.broadcast %cst_650 : f32 to vector<8x32xf32>
    %1279 = arith.addf %1278, %1277 : vector<8x32xf32>
    %1280 = arith.divf %1278, %1279 : vector<8x32xf32>
    %c0_651 = arith.constant 0 : index
    %c32_652 = arith.constant 32 : index
    %1281 = vector.load %arg14[%c0_651, %c32_652] : memref<8x64xf32, #tpu.memory_space<vmem>>, vector<8x32xf32>
    %1282 = arith.mulf %1272, %1281 : vector<8x32xf32>
    %1283 = arith.mulf %1266, %1274 : vector<8x32xf32>
    %1284 = arith.addf %1282, %1283 : vector<8x32xf32>
    %1285 = math.tanh %1284 : vector<8x32xf32>
    %1286 = arith.mulf %1280, %1285 : vector<8x32xf32>
    %c0_653 = arith.constant 0 : index
    %c32_654 = arith.constant 32 : index
    %1287 = vector.load %arg14[%c0_653, %c32_654] : memref<8x64xf32, #tpu.memory_space<vmem>>, vector<8x32xf32>
    tpu.vector_store %arg14[%c0_653, %c32_654], %1284 {strides = array<i32>} : memref<8x64xf32, #tpu.memory_space<vmem>>, vector<8x32xf32>,
    %c0_655 = arith.constant 0 : index
    %c32_656 = arith.constant 32 : index
    %1288 = vector.load %arg13[%c0_655, %c32_656] : memref<8x64xf32, #tpu.memory_space<vmem>>, vector<8x32xf32>
    tpu.vector_store %arg13[%c0_655, %c32_656], %1286 {strides = array<i32>} : memref<8x64xf32, #tpu.memory_space<vmem>>, vector<8x32xf32>,
    %c0_657 = arith.constant 0 : index
    %c32_658 = arith.constant 32 : index
    %1289 = vector.load %arg13[%c0_657, %c32_658] : memref<8x64xf32, #tpu.memory_space<vmem>>, vector<8x32xf32>
    %c0_659 = arith.constant 0 : index
    %c0_660 = arith.constant 0 : index
    %1290 = vector.load %arg10[%c0_659, %c0_660] : memref<32x128xf32, #tpu.memory_space<vmem>>, vector<32x128xf32>
    %cst_661 = arith.constant dense<0.000000e+00> : vector<8x128xf32>
    %1291 = tpu.matmul %1289, %1290, %cst_661 {dimension_numbers = #tpu.dot_dimension_numbers<[1], [0], [0], [1], [0, 0, 1, 1], [], []>} : vector<8x32xf32>, vector<32x128xf32>, vector<8x128xf32> -> vector<8x128xf32>
    %c0_662 = arith.constant 0 : index
    %c0_663 = arith.constant 0 : index
    %1292 = vector.load %arg11[%c0_662, %c0_663] : memref<1x128xf32, #tpu.memory_space<vmem>>, vector<1x128xf32>
    %1293 = vector.broadcast %1292 : vector<1x128xf32> to vector<8x128xf32>
    %1294 = arith.addf %1291, %1293 : vector<8x128xf32>
    %c6_664 = arith.constant 6 : index
    %c0_665 = arith.constant 0 : index
    %c0_666 = arith.constant 0 : index
    %1295 = vector.load %arg12[%c6_664, %c0_665, %c0_666] : memref<8x8x128xf32, #tpu.memory_space<vmem>>, vector<1x8x128xf32>
    %1296 = vector.shape_cast %1295 : vector<1x8x128xf32> to vector<8x128xf32>
    %1297 = vector.shape_cast %1294 : vector<8x128xf32> to vector<1x8x128xf32>
    tpu.vector_store %arg12[%c6_664, %c0_665, %c0_666], %1297 {strides = array<i32>} : memref<8x8x128xf32, #tpu.memory_space<vmem>>, vector<1x8x128xf32>,
    %cst_667 = arith.constant dense<0xFF800000> : vector<8xf32>
    %1298 = vector.multi_reduction <maximumf>, %1294, %cst_667 [1] : vector<8x128xf32> to vector<8xf32>
    %1299 = vector.shape_cast %1298 : vector<8xf32> to vector<8x1xf32>
    %1300 = vector.broadcast %1299 : vector<8x1xf32> to vector<8x128xf32>
    %1301 = arith.cmpf oeq, %1294, %1300 : vector<8x128xf32>
    %c128_i32_668 = arith.constant 128 : i32
    %1302 = vector.broadcast %c128_i32_668 : i32 to vector<8x128xi32>
    %1303 = arith.select %1301, %708, %1302 : vector<8x128xi1>, vector<8x128xi32>
    %cst_669 = arith.constant dense<2147483647> : vector<8xi32>
    %1304 = vector.multi_reduction <minsi>, %1303, %cst_669 [1] : vector<8x128xi32> to vector<8xi32>
    %1305 = vector.shape_cast %1304 : vector<8xi32> to vector<8x1xi32>
    %1306 = vector.broadcast %1305 : vector<8x1xi32> to vector<8x128xi32>
    %1307 = arith.cmpi eq, %708, %1306 : vector<8x128xi32>
    %1308 = arith.extui %1307 : vector<8x128xi1> to vector<8x128xi32>
    %1309 = arith.sitofp %1308 : vector<8x128xi32> to vector<8x128xf32>
    %c0_670 = arith.constant 0 : index
    %c0_671 = arith.constant 0 : index
    %1310 = vector.load %arg5[%c0_670, %c0_671] : memref<128x128xf32, #tpu.memory_space<vmem>>, vector<128x128xf32>
    %cst_672 = arith.constant dense<0.000000e+00> : vector<8x128xf32>
    %1311 = tpu.matmul %1309, %1310, %cst_672 {dimension_numbers = #tpu.dot_dimension_numbers<[1], [0], [0], [1], [0, 0, 1, 1], [], []>} : vector<8x128xf32>, vector<128x128xf32>, vector<8x128xf32> -> vector<8x128xf32>
    %c6_673 = arith.constant 6 : index
    %c0_674 = arith.constant 0 : index
    %c0_675 = arith.constant 0 : index
    %1312 = vector.load %arg0[%c6_673, %c0_674, %c0_675] : memref<8x1x1xf32, #tpu.memory_space<vmem>>, vector<1x1x1xf32>
    %1313 = vector.shape_cast %1312 : vector<1x1x1xf32> to vector<1x1xf32>
    %c6_676 = arith.constant 6 : index
    %c0_677 = arith.constant 0 : index
    %c0_678 = arith.constant 0 : index
    %1314 = vector.load %arg9[%c6_676, %c0_677, %c0_678] : memref<8x8x128xf32, #tpu.memory_space<vmem>>, vector<1x8x128xf32>
    %1315 = vector.shape_cast %1314 : vector<1x8x128xf32> to vector<8x128xf32>
    %1316 = vector.broadcast %1313 : vector<1x1xf32> to vector<8x128xf32>
    %1317 = arith.mulf %1316, %1315 : vector<8x128xf32>
    %cst_679 = arith.constant 1.000000e+00 : f32
    %1318 = vector.broadcast %cst_679 : f32 to vector<1x1xf32>
    %1319 = arith.subf %1318, %1313 : vector<1x1xf32>
    %1320 = vector.broadcast %1319 : vector<1x1xf32> to vector<8x128xf32>
    %1321 = arith.mulf %1320, %1311 : vector<8x128xf32>
    %1322 = arith.addf %1317, %1321 : vector<8x128xf32>
    %c0_680 = arith.constant 0 : index
    %c0_681 = arith.constant 0 : index
    %1323 = vector.load %arg13[%c0_680, %c0_681] : memref<8x64xf32, #tpu.memory_space<vmem>>, vector<8x32xf32>
    %c0_682 = arith.constant 0 : index
    %c0_683 = arith.constant 0 : index
    %1324 = vector.load %arg6[%c0_682, %c0_683] : memref<32x128xf32, #tpu.memory_space<vmem>>, vector<32x128xf32>
    %cst_684 = arith.constant dense<0.000000e+00> : vector<8x128xf32>
    %1325 = tpu.matmul %1323, %1324, %cst_684 {dimension_numbers = #tpu.dot_dimension_numbers<[1], [0], [0], [1], [0, 0, 1, 1], [], []>} : vector<8x32xf32>, vector<32x128xf32>, vector<8x128xf32> -> vector<8x128xf32>
    %1326 = arith.addf %1322, %1325 : vector<8x128xf32>
    %1327 = vector.extract_strided_slice %1326 {offsets = [0, 0], sizes = [8, 32], strides = [1, 1]} : vector<8x128xf32> to vector<8x32xf32>
    %1328 = arith.negf %1327 : vector<8x32xf32>
    %1329 = math.exp %1328 : vector<8x32xf32>
    %cst_685 = arith.constant 1.000000e+00 : f32
    %1330 = vector.broadcast %cst_685 : f32 to vector<8x32xf32>
    %1331 = arith.addf %1330, %1329 : vector<8x32xf32>
    %1332 = arith.divf %1330, %1331 : vector<8x32xf32>
    %1333 = vector.extract_strided_slice %1326 {offsets = [0, 32], sizes = [8, 32], strides = [1, 1]} : vector<8x128xf32> to vector<8x32xf32>
    %1334 = arith.negf %1333 : vector<8x32xf32>
    %1335 = math.exp %1334 : vector<8x32xf32>
    %cst_686 = arith.constant 1.000000e+00 : f32
    %1336 = vector.broadcast %cst_686 : f32 to vector<8x32xf32>
    %1337 = arith.addf %1336, %1335 : vector<8x32xf32>
    %1338 = arith.divf %1336, %1337 : vector<8x32xf32>
    %1339 = vector.extract_strided_slice %1326 {offsets = [0, 64], sizes = [8, 32], strides = [1, 1]} : vector<8x128xf32> to vector<8x32xf32>
    %1340 = math.tanh %1339 : vector<8x32xf32>
    %1341 = vector.extract_strided_slice %1326 {offsets = [0, 96], sizes = [8, 32], strides = [1, 1]} : vector<8x128xf32> to vector<8x32xf32>
    %1342 = arith.negf %1341 : vector<8x32xf32>
    %1343 = math.exp %1342 : vector<8x32xf32>
    %cst_687 = arith.constant 1.000000e+00 : f32
    %1344 = vector.broadcast %cst_687 : f32 to vector<8x32xf32>
    %1345 = arith.addf %1344, %1343 : vector<8x32xf32>
    %1346 = arith.divf %1344, %1345 : vector<8x32xf32>
    %c0_688 = arith.constant 0 : index
    %c0_689 = arith.constant 0 : index
    %1347 = vector.load %arg14[%c0_688, %c0_689] : memref<8x64xf32, #tpu.memory_space<vmem>>, vector<8x32xf32>
    %1348 = arith.mulf %1338, %1347 : vector<8x32xf32>
    %1349 = arith.mulf %1332, %1340 : vector<8x32xf32>
    %1350 = arith.addf %1348, %1349 : vector<8x32xf32>
    %1351 = math.tanh %1350 : vector<8x32xf32>
    %1352 = arith.mulf %1346, %1351 : vector<8x32xf32>
    %c0_690 = arith.constant 0 : index
    %c0_691 = arith.constant 0 : index
    %1353 = vector.load %arg14[%c0_690, %c0_691] : memref<8x64xf32, #tpu.memory_space<vmem>>, vector<8x32xf32>
    tpu.vector_store %arg14[%c0_690, %c0_691], %1350 {strides = array<i32>} : memref<8x64xf32, #tpu.memory_space<vmem>>, vector<8x32xf32>,
    %c0_692 = arith.constant 0 : index
    %c0_693 = arith.constant 0 : index
    %1354 = vector.load %arg13[%c0_692, %c0_693] : memref<8x64xf32, #tpu.memory_space<vmem>>, vector<8x32xf32>
    tpu.vector_store %arg13[%c0_692, %c0_693], %1352 {strides = array<i32>} : memref<8x64xf32, #tpu.memory_space<vmem>>, vector<8x32xf32>,
    %c0_694 = arith.constant 0 : index
    %c0_695 = arith.constant 0 : index
    %1355 = vector.load %arg13[%c0_694, %c0_695] : memref<8x64xf32, #tpu.memory_space<vmem>>, vector<8x64xf32>
    %c0_696 = arith.constant 0 : index
    %c0_697 = arith.constant 0 : index
    %c0_698 = arith.constant 0 : index
    %1356 = vector.load %arg7[%c0_696, %c0_697, %c0_698] : memref<1x64x128xf32, #tpu.memory_space<vmem>>, vector<1x64x128xf32>
    %1357 = vector.shape_cast %1356 : vector<1x64x128xf32> to vector<64x128xf32>
    %cst_699 = arith.constant dense<0.000000e+00> : vector<8x128xf32>
    %1358 = tpu.matmul %1355, %1357, %cst_699 {dimension_numbers = #tpu.dot_dimension_numbers<[1], [0], [0], [1], [0, 0, 1, 1], [], []>} : vector<8x64xf32>, vector<64x128xf32>, vector<8x128xf32> -> vector<8x128xf32>
    %c0_700 = arith.constant 0 : index
    %c0_701 = arith.constant 0 : index
    %c0_702 = arith.constant 0 : index
    %1359 = vector.load %arg8[%c0_700, %c0_701, %c0_702] : memref<1x1x128xf32, #tpu.memory_space<vmem>>, vector<1x1x128xf32>
    %1360 = vector.shape_cast %1359 : vector<1x1x128xf32> to vector<1x128xf32>
    %1361 = vector.broadcast %1360 : vector<1x128xf32> to vector<8x128xf32>
    %1362 = arith.addf %1358, %1361 : vector<8x128xf32>
    %1363 = vector.extract_strided_slice %1362 {offsets = [0, 0], sizes = [8, 32], strides = [1, 1]} : vector<8x128xf32> to vector<8x32xf32>
    %1364 = arith.negf %1363 : vector<8x32xf32>
    %1365 = math.exp %1364 : vector<8x32xf32>
    %cst_703 = arith.constant 1.000000e+00 : f32
    %1366 = vector.broadcast %cst_703 : f32 to vector<8x32xf32>
    %1367 = arith.addf %1366, %1365 : vector<8x32xf32>
    %1368 = arith.divf %1366, %1367 : vector<8x32xf32>
    %1369 = vector.extract_strided_slice %1362 {offsets = [0, 32], sizes = [8, 32], strides = [1, 1]} : vector<8x128xf32> to vector<8x32xf32>
    %1370 = arith.negf %1369 : vector<8x32xf32>
    %1371 = math.exp %1370 : vector<8x32xf32>
    %cst_704 = arith.constant 1.000000e+00 : f32
    %1372 = vector.broadcast %cst_704 : f32 to vector<8x32xf32>
    %1373 = arith.addf %1372, %1371 : vector<8x32xf32>
    %1374 = arith.divf %1372, %1373 : vector<8x32xf32>
    %1375 = vector.extract_strided_slice %1362 {offsets = [0, 64], sizes = [8, 32], strides = [1, 1]} : vector<8x128xf32> to vector<8x32xf32>
    %1376 = math.tanh %1375 : vector<8x32xf32>
    %1377 = vector.extract_strided_slice %1362 {offsets = [0, 96], sizes = [8, 32], strides = [1, 1]} : vector<8x128xf32> to vector<8x32xf32>
    %1378 = arith.negf %1377 : vector<8x32xf32>
    %1379 = math.exp %1378 : vector<8x32xf32>
    %cst_705 = arith.constant 1.000000e+00 : f32
    %1380 = vector.broadcast %cst_705 : f32 to vector<8x32xf32>
    %1381 = arith.addf %1380, %1379 : vector<8x32xf32>
    %1382 = arith.divf %1380, %1381 : vector<8x32xf32>
    %c0_706 = arith.constant 0 : index
    %c32_707 = arith.constant 32 : index
    %1383 = vector.load %arg14[%c0_706, %c32_707] : memref<8x64xf32, #tpu.memory_space<vmem>>, vector<8x32xf32>
    %1384 = arith.mulf %1374, %1383 : vector<8x32xf32>
    %1385 = arith.mulf %1368, %1376 : vector<8x32xf32>
    %1386 = arith.addf %1384, %1385 : vector<8x32xf32>
    %1387 = math.tanh %1386 : vector<8x32xf32>
    %1388 = arith.mulf %1382, %1387 : vector<8x32xf32>
    %c0_708 = arith.constant 0 : index
    %c32_709 = arith.constant 32 : index
    %1389 = vector.load %arg14[%c0_708, %c32_709] : memref<8x64xf32, #tpu.memory_space<vmem>>, vector<8x32xf32>
    tpu.vector_store %arg14[%c0_708, %c32_709], %1386 {strides = array<i32>} : memref<8x64xf32, #tpu.memory_space<vmem>>, vector<8x32xf32>,
    %c0_710 = arith.constant 0 : index
    %c32_711 = arith.constant 32 : index
    %1390 = vector.load %arg13[%c0_710, %c32_711] : memref<8x64xf32, #tpu.memory_space<vmem>>, vector<8x32xf32>
    tpu.vector_store %arg13[%c0_710, %c32_711], %1388 {strides = array<i32>} : memref<8x64xf32, #tpu.memory_space<vmem>>, vector<8x32xf32>,
    %c0_712 = arith.constant 0 : index
    %c32_713 = arith.constant 32 : index
    %1391 = vector.load %arg13[%c0_712, %c32_713] : memref<8x64xf32, #tpu.memory_space<vmem>>, vector<8x32xf32>
    %c0_714 = arith.constant 0 : index
    %c0_715 = arith.constant 0 : index
    %1392 = vector.load %arg10[%c0_714, %c0_715] : memref<32x128xf32, #tpu.memory_space<vmem>>, vector<32x128xf32>
    %cst_716 = arith.constant dense<0.000000e+00> : vector<8x128xf32>
    %1393 = tpu.matmul %1391, %1392, %cst_716 {dimension_numbers = #tpu.dot_dimension_numbers<[1], [0], [0], [1], [0, 0, 1, 1], [], []>} : vector<8x32xf32>, vector<32x128xf32>, vector<8x128xf32> -> vector<8x128xf32>
    %c0_717 = arith.constant 0 : index
    %c0_718 = arith.constant 0 : index
    %1394 = vector.load %arg11[%c0_717, %c0_718] : memref<1x128xf32, #tpu.memory_space<vmem>>, vector<1x128xf32>
    %1395 = vector.broadcast %1394 : vector<1x128xf32> to vector<8x128xf32>
    %1396 = arith.addf %1393, %1395 : vector<8x128xf32>
    %c7_719 = arith.constant 7 : index
    %c0_720 = arith.constant 0 : index
    %c0_721 = arith.constant 0 : index
    %1397 = vector.load %arg12[%c7_719, %c0_720, %c0_721] : memref<8x8x128xf32, #tpu.memory_space<vmem>>, vector<1x8x128xf32>
    %1398 = vector.shape_cast %1397 : vector<1x8x128xf32> to vector<8x128xf32>
    %1399 = vector.shape_cast %1396 : vector<8x128xf32> to vector<1x8x128xf32>
    tpu.vector_store %arg12[%c7_719, %c0_720, %c0_721], %1399 {strides = array<i32>} : memref<8x8x128xf32, #tpu.memory_space<vmem>>, vector<1x8x128xf32>,
    return
  }
}

</mosaic_0001>

<bundles_post_ra>
// kernel: seq2seq_forward.1
= control target key start
LH: loop header
LB: loop body
LE: loop exit
PB: predicated region body
PF: predicated region fallthrough
CT: control target
= control target key end

     0   :  { %v7661_v3 = vmov 0.0|0.0   ;;  %vm7662_vm0 = vmmov 0   ;;  %v7663_v6 = vmov 0.0   ;;  %vm42_vm1 = vcmask 523264   ;;  %s9017_s0 = inlined_call_operand.vmem [shape: f32[8,1,1], index: 0, kind: input, shape index: {}]   ;;  %s9018_s1 = inlined_call_operand.vmem [shape: f32[10,8,128], index: 1, kind: input, shape index: {}]   ;;  %s9019_s2 = inlined_call_operand.vmem [shape: f32[32,128], index: 2, kind: input, shape index: {}]   ;;  %s9020_s3 = inlined_call_operand.vmem [shape: f32[1,64,128], index: 3, kind: input, shape index: {}]   ;;  %s9021_s4 = inlined_call_operand.vmem [shape: f32[1,1,128], index: 4, kind: input, shape index: {}]   ;;  %s9022_s5 = inlined_call_operand.vmem [shape: f32[128,128], index: 5, kind: input, shape index: {}]   ;;  %s9023_s6 = inlined_call_operand.vmem [shape: f32[32,128], index: 6, kind: input, shape index: {}]   ;;  %s9024_s7 = inlined_call_operand.vmem [shape: f32[1,64,128], index: 7, kind: input, shape index: {}]   ;;  %s9025_s8 = inlined_call_operand.vmem [shape: f32[1,1,128], index: 8, kind: input, shape index: {}]   ;;  %s9026_s9 = inlined_call_operand.vmem [shape: f32[8,8,128], index: 9, kind: input, shape index: {}]   ;;  %s9027_s10 = inlined_call_operand.vmem [shape: f32[32,128], index: 10, kind: input, shape index: {}]   ;;  %s9028_s11 = inlined_call_operand.vmem [shape: f32[1,128], index: 11, kind: input, shape index: {}]   ;;  %s9029_s12 = inlined_call_operand.hbm [shape: f32[8,8,128], index: 12, kind: output, shape index: {}]  }
   0x1   :  { %v47_v0 = vld [vmem:[%s9019_s2] sm:$0xff]  ;;  %v48_v1 = vld [vmem:[%s9019_s2 + $0x8] sm:$0xff]  ;;  %v49_v2 = vld [vmem:[%s9019_s2 + $0x10] sm:$0xff]  ;;  %6857 = vmatprep.subr.bf16.mxu0 %v7661_v3  ;;  %6068 = vmatprep.mubr.msk.f32.mxu0 %vm7662_vm0, %v7663_v6  ;;  %2446 = vst [vmem:[#allocation4] sm:$0xff] %v7663_v6 }
   0x2   :  { %v7747_v4 = vpack.c.bf16 %v48_v1, %v47_v0  ;;  %v50_v5 = vld [vmem:[%s9019_s2 + $0x18] sm:$0xff] }
   0x3   :  { %17 = vsyncpa [#allocation5], 0  ;;  %43 = vst.msk [vmem:[#allocation2] sm:$0xff] %vm42_vm1, %v7663_v6  ;;  %6863 = vmatprep.subr.bf16.mxu1 %v7661_v3  ;;  %6087 = vmatprep.mubr.msk.f32.mxu1 %vm7662_vm0, %v7663_v6  ;;  %v7763_v7 = vpack.c.bf16 %v50_v5, %v49_v2  ;;  %vm51_vm2 = vcmask 261120   ;;  %v45_v9 = vld [vmem:[%s9018_s1] sm:$0xff]  ;;  %s7664_s13 = smov 64  }
   0x4   :  { %44 = vst.msk [vmem:[#allocation3] sm:$0xff] %vm42_vm1, %v7663_v6  ;;  %6859 = vmatpush3.bf16.msra.mxu0 %v7747_v4  ;;  %s7665_s14 = smov 32   ;;  %v166_v25 = vld [vmem:[%s9020_s3] sm:$0xff]  ;;  %v167_v26 = vld [vmem:[%s9020_s3 + $0x8] sm:$0xff]  ;;  %v168_v27 = vld [vmem:[%s9020_s3 + $0x10] sm:$0xff]  ;;  %s7666_s15 = smov 96  }
   0x5   :  { %6860 = vmatprep.subr.bf16.mxu0 %v7661_v3  ;;  %v7790_v28 = vpack.c.bf16 %v167_v26, %v166_v25  ;;  %v169_v29 = vld [vmem:[%s9020_s3 + $0x18] sm:$0xff]  ;;  %v170_v32 = vld [vmem:[%s9020_s3 + $0x20] sm:$0xff]  ;;  %v171_v33 = vld [vmem:[%s9020_s3 + $0x28] sm:$0xff]  ;;  %vm279_vm3 = vcmask 523520   ;;  %s7669_s17 = smov [#allocation4]  }
   0x6   :  { %v7796_v30 = vpack.c.bf16 %v169_v29, %v168_v27  ;;  %v7808_v34 = vpack.c.bf16 %v171_v33, %v170_v32  ;;  %v172_v35 = vld [vmem:[%s9020_s3 + $0x30] sm:$0xff]  ;;  %v173_v36 = vld [vmem:[%s9020_s3 + $0x38] sm:$0xff]  ;;  %v7836_v43 = vld [vmem:[%s9021_s4] ss:$0 sm:$0xff]  ;;  %s5542_s18 = sshll.u32 %s7669_s17, 4  ;;  %s5543_s18 = int_to_ptr.vmem [resolvable:$true] %s5542_s18 }
   0x7   :  { %6865 = vmatpush3.bf16.msra.mxu1 %v7790_v28  ;;  %v7818_v37 = vpack.c.bf16 %v173_v36, %v172_v35  ;;  %v5558_v0 = vld [vmem:[%s9018_s1 + $0x8] sm:$0xff]  ;;  %p7642_p1 = scmp.lt.s32.totalorder %s5543_s18, %s5543_s18 }
   0x8   :  { %6862 = vmatpush3.bf16.msra.mxu0 %v7763_v7  ;;  %6866 = vmatprep.subr.bf16.mxu1 %v7661_v3 }
   0x9   :  { %6875 = vmatprep.subr.bf16.mxu0 %v7661_v3 }
   0xa   :  { %v46_v8 = vld [vmem:[#allocation2] sm:$0xff] }
   0xb   :  { %6069 = vmatmul.mubr.msk.f32.vlgmr.msra.gmra.mrb[0].mxu0 %vm51_vm2, %v46_v8  ;;  %v133_v14 = vld [vmem:[#allocation3] sm:$0xff]  ;;  %6868 = vmatpush3.bf16.msra.mxu1 %v7796_v30 }
   0xc   :  { %6877 = vmatpush3.bf16.msra.mxu0 %v7747_v4  ;;  %6098 = vmatprep.mubr.msk.f32.mxu0 %vm7662_vm0, %v7663_v6 }
   0xd   :  { %6878 = vmatprep.subr.bf16.mxu0 %v7661_v3  ;;  %6869 = vmatprep.subr.bf16.mxu1 %v7661_v3 }
   0xf   :  { %6871 = vmatpush3.bf16.msra.mxu1 %v7808_v34 }
  0x10   :  { %6880 = vmatpush3.bf16.msra.mxu0 %v7763_v7  ;;  %6872 = vmatprep.subr.bf16.mxu1 %v7661_v3 }
  0x11   :  { %6881 = vmatprep.subr.bf16.mxu0 %v7661_v3 }
  0x13   :  { %6874 = vmatpush3.bf16.msra.mxu1 %v7818_v37 }
  0x14   :  { %6893 = vmatprep.subr.bf16.mxu1 %v7661_v3 }
  0xde   :  { %v121_v10 = vpop.f32.mrb[0].mxu0 }
  0xdf   :  { %v125_v11 = vadd.f32 %v121_v10, %v45_v9  ;;  %v6070_v12 = vpop.f32.mrb[1].mxu0 }
  0xe1   :  { %7362 = vtanh.f32 %v125_v11  ;;  %v5554_v15 = vmul.f32 -1.442695, %v125_v11 }
  0xe3   :  { %7364 = vpow2.f32 %v5554_v15 }
  0xeb   :  { %v7363_v13 = vpop.eup %7362 }
  0xec   :  { %140 = vrot.lane.b32.xlu0 %v7363_v13, %s7664_s13 }
  0xed   :  { %v7365_v16 = vpop.eup %7364 }
  0xee   :  { %v129_v17 = vadd.f32 1.0, %v7365_v16 }
  0xf0   :  { %135 = vrot.lane.b32.xlu0 %v133_v14, %s7665_s14  ;;  %7366 = vrcp.f32 %v129_v17 }
  0xfa   :  { %v7367_v18 = vpop.eup %7366 }
 0x15e   :  { %v141_v19 = vpop.permute.xlu0 %140 }
 0x15f   :  { %v143_v20 = vmul.f32 %v7367_v18, %v141_v19 }
 0x161   :  { %145 = vrot.lane.b32.xlu1 %v143_v20, %s7665_s14 }
 0x162   :  { %v136_v21 = vpop.permute.xlu0 %135 }
 0x163   :  { %v138_v22 = vmul.f32 %v7367_v18, %v136_v21 }
 0x1d3   :  { %v146_v23 = vpop.permute.xlu1 %145 }
 0x1d4   :  { %v148_v24 = vadd.f32 %v146_v23, %v138_v22 }
 0x1d6   :  { %7368 = vtanh.f32 %v148_v24 }
 0x1e0   :  { %v7369_v31 = vpop.eup %7368 }
 0x1e1   :  { %151 = vrot.lane.b32.xlu1 %v7369_v31, %s7664_s13 }
 0x253   :  { %v152_v38 = vpop.permute.xlu1 %151 }
 0x254   :  { %v154_v39 = vmul.f32 %v7367_v18, %v152_v38 }
 0x256   :  { %161 = vrot.lane.b32.xlu0 %v154_v39, %s7665_s14 }
 0x25a   :  { %156 = vrot.lane.b32.xlu0 %v148_v24, %s7666_s15 }
 0x2c8   :  { %v162_v40 = vpop.permute.xlu0 %161 }
 0x2c9   :  { %164 = vst.msk [vmem:[#allocation2] sm:$0xff] %vm51_vm2, %v162_v40 }
 0x2cc   :  { %v157_v41 = vpop.permute.xlu0 %156 }
 0x2cd   :  { %159 = vst.msk [vmem:[#allocation3] sm:$0xff] %vm51_vm2, %v157_v41 }
 0x2d0   :  { %v165_v42 = vld [vmem:[#allocation2] sm:$0xff] }
 0x2d1   :  { %6088 = vmatmul.mubr.msk.f32.vlgmr.msra.gmra.mrb[0].mxu1 %vm42_vm1, %v165_v42 }
 0x2d2   :  { %6895 = vmatpush3.bf16.msra.mxu1 %v7747_v4  ;;  %6128 = vmatprep.mubr.msk.f32.mxu1 %vm7662_vm0, %v7663_v6 }
 0x2d3   :  { %6896 = vmatprep.subr.bf16.mxu1 %v7661_v3 }
 0x2d4   :  { %v261_v54 = vld [vmem:[#allocation3] sm:$0xff] }
 0x2d6   :  { %6898 = vmatpush3.bf16.msra.mxu1 %v7763_v7 }
 0x2d7   :  { %6899 = vmatprep.subr.bf16.mxu1 %v7661_v3 }
 0x3a4   :  { %v250_v44 = vpop.f32.mrb[0].mxu1 }
 0x3a5   :  { %v251_v45 = vadd.f32 %v7836_v43, %v250_v44  ;;  %v6089_v46 = vpop.f32.mrb[1].mxu1 }
 0x3a7   :  { %7370 = vtanh.f32 %v251_v45  ;;  %v5557_v48 = vmul.f32 -1.442695, %v251_v45 }
 0x3a9   :  { %7372 = vpow2.f32 %v5557_v48 }
 0x3b1   :  { %v7371_v47 = vpop.eup %7370 }
 0x3b2   :  { %264 = vrot.lane.b32.xlu1 %v7371_v47, %s7664_s13 }
 0x3b3   :  { %v7373_v49 = vpop.eup %7372 }
 0x3b4   :  { %v257_v50 = vadd.f32 1.0, %v7373_v49 }
 0x3b6   :  { %7374 = vrcp.f32 %v257_v50  ;;  %v5564_v50 = vld [vmem:[%s9018_s1 + $0x10] sm:$0xff] }
 0x3c0   :  { %v7375_v51 = vpop.eup %7374 }
 0x3c1   :  { %v262_v55 = vmul.f32 %v7375_v51, %v261_v54 }
 0x424   :  { %v265_v52 = vpop.permute.xlu1 %264 }
 0x425   :  { %v267_v53 = vmul.f32 %v7375_v51, %v265_v52 }
 0x427   :  { %269 = vrot.lane.b32.xlu1 %v267_v53, %s7665_s14 }
 0x499   :  { %v270_v56 = vpop.permute.xlu1 %269 }
 0x49a   :  { %v272_v57 = vadd.f32 %v270_v56, %v262_v55 }
 0x49c   :  { %7376 = vtanh.f32 %v272_v57  ;;  %280 = vst.msk [vmem:[#allocation3] sm:$0xff] %vm279_vm3, %v272_v57 }
 0x4a3   :  { %v374_v61 = vld [vmem:[#allocation3] sm:$0xff] }
 0x4a6   :  { %v7377_v58 = vpop.eup %7376 }
 0x4a7   :  { %275 = vrot.lane.b32.xlu0 %v7377_v58, %s7664_s13 }
 0x519   :  { %v276_v59 = vpop.permute.xlu0 %275 }
 0x51a   :  { %v278_v60 = vmul.f32 %v7375_v51, %v276_v59 }
 0x51c   :  { %282 = vrot.lane.b32.xlu1 %v278_v60, %s7664_s13 }
 0x520   :  { %376 = vrot.lane.b32.xlu1 %v374_v61, %s7665_s14 }
 0x58e   :  { %v283_v62 = vpop.permute.xlu1 %282 }
 0x58f   :  { %285 = vst.msk [vmem:[#allocation2] sm:$0xff] %vm279_vm3, %v283_v62 }
 0x592   :  { %v377_v15 = vpop.permute.xlu1 %376 }
 0x596   :  { %v288_v63 = vld [vmem:[#allocation2] sm:$0xff] }
 0x597   :  { %6099 = vmatmul.mubr.msk.f32.vlgmr.msra.gmra.mrb[2].mxu0 %vm51_vm2, %v288_v63 }
 0x598   :  { %6883 = vmatpush3.bf16.msra.mxu0 %v7790_v28  ;;  %6117 = vmatprep.mubr.msk.f32.mxu0 %vm7662_vm0, %v7663_v6 }
 0x599   :  { %6884 = vmatprep.subr.bf16.mxu0 %v7661_v3 }
 0x59c   :  { %6886 = vmatpush3.bf16.msra.mxu0 %v7796_v30 }
 0x59d   :  { %6887 = vmatprep.subr.bf16.mxu0 %v7661_v3 }
 0x5a0   :  { %6889 = vmatpush3.bf16.msra.mxu0 %v7808_v34 }
 0x5a1   :  { %6890 = vmatprep.subr.bf16.mxu0 %v7661_v3 }
 0x5a4   :  { %6892 = vmatpush3.bf16.msra.mxu0 %v7818_v37 }
 0x5a5   :  { %6911 = vmatprep.subr.bf16.mxu0 %v7661_v3 }
 0x66a   :  { %v362_v1 = vpop.f32.mrb[2].mxu0 }
 0x66b   :  { %v366_v2 = vadd.f32 %v5558_v0, %v362_v1  ;;  %v6100_v5 = vpop.f32.mrb[3].mxu0 }
 0x66d   :  { %7378 = vtanh.f32 %v366_v2  ;;  %v5560_v9 = vmul.f32 -1.442695, %v366_v2 }
 0x66f   :  { %7380 = vpow2.f32 %v5560_v9 }
 0x677   :  { %v7379_v8 = vpop.eup %7378 }
 0x678   :  { %381 = vrot.lane.b32.xlu0 %v7379_v8, %s7664_s13 }
 0x679   :  { %v7381_v10 = vpop.eup %7380 }
 0x67a   :  { %v370_v11 = vadd.f32 1.0, %v7381_v10 }
 0x67c   :  { %7382 = vrcp.f32 %v370_v11 }
 0x686   :  { %v7383_v12 = vpop.eup %7382 }
 0x687   :  { %v379_v16 = vmul.f32 %v7383_v12, %v377_v15 }
 0x6ea   :  { %v382_v13 = vpop.permute.xlu0 %381 }
 0x6eb   :  { %v384_v14 = vmul.f32 %v7383_v12, %v382_v13 }
 0x6ed   :  { %386 = vrot.lane.b32.xlu0 %v384_v14, %s7665_s14 }
 0x75f   :  { %v387_v17 = vpop.permute.xlu0 %386 }
 0x760   :  { %v389_v18 = vadd.f32 %v387_v17, %v379_v16 }
 0x762   :  { %7384 = vtanh.f32 %v389_v18 }
 0x76c   :  { %v7385_v19 = vpop.eup %7384 }
 0x76d   :  { %392 = vrot.lane.b32.xlu1 %v7385_v19, %s7664_s13 }
 0x7df   :  { %v393_v20 = vpop.permute.xlu1 %392 }
 0x7e0   :  { %v395_v21 = vmul.f32 %v7383_v12, %v393_v20 }
 0x7e2   :  { %402 = vrot.lane.b32.xlu0 %v395_v21, %s7665_s14 }
 0x7e6   :  { %397 = vrot.lane.b32.xlu0 %v389_v18, %s7666_s15 }
 0x854   :  { %v403_v22 = vpop.permute.xlu0 %402 }
 0x855   :  { %405 = vst.msk [vmem:[#allocation2] sm:$0xff] %vm51_vm2, %v403_v22 }
 0x858   :  { %v398_v23 = vpop.permute.xlu0 %397 }
 0x859   :  { %400 = vst.msk [vmem:[#allocation3] sm:$0xff] %vm51_vm2, %v398_v23 }
 0x85c   :  { %v406_v24 = vld [vmem:[#allocation2] sm:$0xff] }
 0x85d   :  { %6118 = vmatmul.mubr.msk.f32.vlgmr.msra.gmra.mrb[4].mxu0 %vm42_vm1, %v406_v24 }
 0x85e   :  { %6913 = vmatpush3.bf16.msra.mxu0 %v7747_v4  ;;  %6158 = vmatprep.mubr.msk.f32.mxu0 %vm7662_vm0, %v7663_v6 }
 0x85f   :  { %6914 = vmatprep.subr.bf16.mxu0 %v7661_v3 }
 0x860   :  { %v502_v39 = vld [vmem:[#allocation3] sm:$0xff] }
 0x862   :  { %6916 = vmatpush3.bf16.msra.mxu0 %v7763_v7 }
 0x863   :  { %6917 = vmatprep.subr.bf16.mxu0 %v7661_v3 }
 0x930   :  { %v491_v25 = vpop.f32.mrb[4].mxu0 }
 0x931   :  { %v492_v26 = vadd.f32 %v7836_v43, %v491_v25  ;;  %v6119_v27 = vpop.f32.mrb[5].mxu0 }
 0x933   :  { %7386 = vtanh.f32 %v492_v26  ;;  %v5563_v31 = vmul.f32 -1.442695, %v492_v26 }
 0x935   :  { %7388 = vpow2.f32 %v5563_v31 }
 0x93d   :  { %v7387_v29 = vpop.eup %7386 }
 0x93e   :  { %505 = vrot.lane.b32.xlu1 %v7387_v29, %s7664_s13 }
 0x93f   :  { %v7389_v32 = vpop.eup %7388 }
 0x940   :  { %v498_v33 = vadd.f32 1.0, %v7389_v32 }
 0x942   :  { %7390 = vrcp.f32 %v498_v33  ;;  %v5570_v33 = vld [vmem:[%s9018_s1 + $0x18] sm:$0xff] }
 0x94c   :  { %v7391_v35 = vpop.eup %7390 }
 0x94d   :  { %v503_v40 = vmul.f32 %v7391_v35, %v502_v39 }
 0x9b0   :  { %v506_v36 = vpop.permute.xlu1 %505 }
 0x9b1   :  { %v508_v38 = vmul.f32 %v7391_v35, %v506_v36 }
 0x9b3   :  { %510 = vrot.lane.b32.xlu1 %v508_v38, %s7665_s14 }
 0xa25   :  { %v511_v41 = vpop.permute.xlu1 %510 }
 0xa26   :  { %v513_v42 = vadd.f32 %v511_v41, %v503_v40 }
 0xa28   :  { %7392 = vtanh.f32 %v513_v42  ;;  %520 = vst.msk [vmem:[#allocation3] sm:$0xff] %vm279_vm3, %v513_v42 }
 0xa2f   :  { %v614_v47 = vld [vmem:[#allocation3] sm:$0xff] }
 0xa32   :  { %v7393_v44 = vpop.eup %7392 }
 0xa33   :  { %516 = vrot.lane.b32.xlu0 %v7393_v44, %s7664_s13 }
 0xaa5   :  { %v517_v45 = vpop.permute.xlu0 %516 }
 0xaa6   :  { %v519_v46 = vmul.f32 %v7391_v35, %v517_v45 }
 0xaa8   :  { %522 = vrot.lane.b32.xlu1 %v519_v46, %s7664_s13 }
 0xaac   :  { %616 = vrot.lane.b32.xlu1 %v614_v47, %s7665_s14 }
 0xb1a   :  { %v523_v48 = vpop.permute.xlu1 %522 }
 0xb1b   :  { %525 = vst.msk [vmem:[#allocation2] sm:$0xff] %vm279_vm3, %v523_v48 }
 0xb1e   :  { %v617_v61 = vpop.permute.xlu1 %616 }
 0xb22   :  { %v528_v49 = vld [vmem:[#allocation2] sm:$0xff] }
 0xb23   :  { %6129 = vmatmul.mubr.msk.f32.vlgmr.msra.gmra.mrb[2].mxu1 %vm51_vm2, %v528_v49 }
 0xb24   :  { %6901 = vmatpush3.bf16.msra.mxu1 %v7790_v28  ;;  %6147 = vmatprep.mubr.msk.f32.mxu1 %vm7662_vm0, %v7663_v6 }
 0xb25   :  { %6902 = vmatprep.subr.bf16.mxu1 %v7661_v3 }
 0xb28   :  { %6904 = vmatpush3.bf16.msra.mxu1 %v7796_v30 }
 0xb29   :  { %6905 = vmatprep.subr.bf16.mxu1 %v7661_v3 }
 0xb2c   :  { %6907 = vmatpush3.bf16.msra.mxu1 %v7808_v34 }
 0xb2d   :  { %6908 = vmatprep.subr.bf16.mxu1 %v7661_v3 }
 0xb30   :  { %6910 = vmatpush3.bf16.msra.mxu1 %v7818_v37 }
 0xb31   :  { %6929 = vmatprep.subr.bf16.mxu1 %v7661_v3 }
 0xbf6   :  { %v602_v51 = vpop.f32.mrb[2].mxu1 }
 0xbf7   :  { %v606_v52 = vadd.f32 %v5564_v50, %v602_v51  ;;  %v6130_v53 = vpop.f32.mrb[3].mxu1 }
 0xbf9   :  { %7394 = vtanh.f32 %v606_v52  ;;  %v5566_v55 = vmul.f32 -1.442695, %v606_v52 }
 0xbfb   :  { %7396 = vpow2.f32 %v5566_v55 }
 0xc03   :  { %v7395_v54 = vpop.eup %7394 }
 0xc04   :  { %621 = vrot.lane.b32.xlu0 %v7395_v54, %s7664_s13 }
 0xc05   :  { %v7397_v56 = vpop.eup %7396 }
 0xc06   :  { %v610_v57 = vadd.f32 1.0, %v7397_v56 }
 0xc08   :  { %7398 = vrcp.f32 %v610_v57 }
 0xc12   :  { %v7399_v58 = vpop.eup %7398 }
 0xc13   :  { %v619_v62 = vmul.f32 %v7399_v58, %v617_v61 }
 0xc76   :  { %v622_v59 = vpop.permute.xlu0 %621 }
 0xc77   :  { %v624_v60 = vmul.f32 %v7399_v58, %v622_v59 }
 0xc79   :  { %626 = vrot.lane.b32.xlu0 %v624_v60, %s7665_s14 }
 0xceb   :  { %v627_v63 = vpop.permute.xlu0 %626 }
 0xcec   :  { %v629_v0 = vadd.f32 %v627_v63, %v619_v62 }
 0xcee   :  { %7400 = vtanh.f32 %v629_v0 }
 0xcf8   :  { %v7401_v1 = vpop.eup %7400 }
 0xcf9   :  { %632 = vrot.lane.b32.xlu1 %v7401_v1, %s7664_s13 }
 0xd6b   :  { %v633_v2 = vpop.permute.xlu1 %632 }
 0xd6c   :  { %v635_v5 = vmul.f32 %v7399_v58, %v633_v2 }
 0xd6e   :  { %642 = vrot.lane.b32.xlu0 %v635_v5, %s7665_s14 }
 0xd72   :  { %637 = vrot.lane.b32.xlu0 %v629_v0, %s7666_s15 }
 0xde0   :  { %v643_v8 = vpop.permute.xlu0 %642 }
 0xde1   :  { %645 = vst.msk [vmem:[#allocation2] sm:$0xff] %vm51_vm2, %v643_v8 }
 0xde4   :  { %v638_v9 = vpop.permute.xlu0 %637 }
 0xde5   :  { %640 = vst.msk [vmem:[#allocation3] sm:$0xff] %vm51_vm2, %v638_v9 }
 0xde8   :  { %v646_v10 = vld [vmem:[#allocation2] sm:$0xff] }
 0xde9   :  { %6148 = vmatmul.mubr.msk.f32.vlgmr.msra.gmra.mrb[4].mxu1 %vm42_vm1, %v646_v10 }
 0xdea   :  { %6931 = vmatpush3.bf16.msra.mxu1 %v7747_v4  ;;  %6188 = vmatprep.mubr.msk.f32.mxu1 %vm7662_vm0, %v7663_v6 }
 0xdeb   :  { %6932 = vmatprep.subr.bf16.mxu1 %v7661_v3 }
 0xdec   :  { %v742_v21 = vld [vmem:[#allocation3] sm:$0xff] }
 0xdee   :  { %6934 = vmatpush3.bf16.msra.mxu1 %v7763_v7 }
 0xdef   :  { %6935 = vmatprep.subr.bf16.mxu1 %v7661_v3 }
 0xebc   :  { %v731_v11 = vpop.f32.mrb[4].mxu1 }
 0xebd   :  { %v732_v12 = vadd.f32 %v7836_v43, %v731_v11  ;;  %v6149_v13 = vpop.f32.mrb[5].mxu1 }
 0xebf   :  { %7402 = vtanh.f32 %v732_v12  ;;  %v5569_v15 = vmul.f32 -1.442695, %v732_v12 }
 0xec1   :  { %7404 = vpow2.f32 %v5569_v15  ;;  %v5576_v15 = vld [vmem:[%s9018_s1 + $0x20] sm:$0xff] }
 0xec9   :  { %v7403_v14 = vpop.eup %7402 }
 0xeca   :  { %745 = vrot.lane.b32.xlu1 %v7403_v14, %s7664_s13 }
 0xecb   :  { %v7405_v16 = vpop.eup %7404 }
 0xecc   :  { %v738_v17 = vadd.f32 1.0, %v7405_v16 }
 0xece   :  { %7406 = vrcp.f32 %v738_v17 }
 0xed8   :  { %v7407_v18 = vpop.eup %7406 }
 0xed9   :  { %v743_v22 = vmul.f32 %v7407_v18, %v742_v21 }
 0xf3c   :  { %v746_v19 = vpop.permute.xlu1 %745 }
 0xf3d   :  { %v748_v20 = vmul.f32 %v7407_v18, %v746_v19 }
 0xf3f   :  { %750 = vrot.lane.b32.xlu1 %v748_v20, %s7665_s14 }
 0xfb1   :  { %v751_v23 = vpop.permute.xlu1 %750 }
 0xfb2   :  { %v753_v24 = vadd.f32 %v751_v23, %v743_v22 }
 0xfb4   :  { %7408 = vtanh.f32 %v753_v24  ;;  %760 = vst.msk [vmem:[#allocation3] sm:$0xff] %vm279_vm3, %v753_v24 }
 0xfbb   :  { %v854_v29 = vld [vmem:[#allocation3] sm:$0xff] }
 0xfbe   :  { %v7409_v25 = vpop.eup %7408 }
 0xfbf   :  { %756 = vrot.lane.b32.xlu0 %v7409_v25, %s7664_s13 }
0x1031   :  { %v757_v26 = vpop.permute.xlu0 %756 }
0x1032   :  { %v759_v27 = vmul.f32 %v7407_v18, %v757_v26 }
0x1034   :  { %762 = vrot.lane.b32.xlu1 %v759_v27, %s7664_s13 }
0x1038   :  { %856 = vrot.lane.b32.xlu1 %v854_v29, %s7665_s14 }
0x10a6   :  { %v763_v31 = vpop.permute.xlu1 %762 }
0x10a7   :  { %765 = vst.msk [vmem:[#allocation2] sm:$0xff] %vm279_vm3, %v763_v31 }
0x10aa   :  { %v857_v47 = vpop.permute.xlu1 %856 }
0x10ae   :  { %v768_v32 = vld [vmem:[#allocation2] sm:$0xff] }
0x10af   :  { %6159 = vmatmul.mubr.msk.f32.vlgmr.msra.gmra.mrb[6].mxu0 %vm51_vm2, %v768_v32 }
0x10b0   :  { %6919 = vmatpush3.bf16.msra.mxu0 %v7790_v28  ;;  %6177 = vmatprep.mubr.msk.f32.mxu0 %vm7662_vm0, %v7663_v6 }
0x10b1   :  { %6920 = vmatprep.subr.bf16.mxu0 %v7661_v3 }
0x10b4   :  { %6922 = vmatpush3.bf16.msra.mxu0 %v7796_v30 }
0x10b5   :  { %6923 = vmatprep.subr.bf16.mxu0 %v7661_v3 }
0x10b8   :  { %6925 = vmatpush3.bf16.msra.mxu0 %v7808_v34 }
0x10b9   :  { %6926 = vmatprep.subr.bf16.mxu0 %v7661_v3 }
0x10bc   :  { %6928 = vmatpush3.bf16.msra.mxu0 %v7818_v37 }
0x10bd   :  { %6947 = vmatprep.subr.bf16.mxu0 %v7661_v3 }
0x1182   :  { %v842_v35 = vpop.f32.mrb[6].mxu0 }
0x1183   :  { %v846_v36 = vadd.f32 %v5570_v33, %v842_v35  ;;  %v6160_v38 = vpop.f32.mrb[7].mxu0 }
0x1185   :  { %7410 = vtanh.f32 %v846_v36  ;;  %v5572_v40 = vmul.f32 -1.442695, %v846_v36 }
0x1187   :  { %7412 = vpow2.f32 %v5572_v40 }
0x118f   :  { %v7411_v39 = vpop.eup %7410 }
0x1190   :  { %861 = vrot.lane.b32.xlu0 %v7411_v39, %s7664_s13 }
0x1191   :  { %v7413_v41 = vpop.eup %7412 }
0x1192   :  { %v850_v42 = vadd.f32 1.0, %v7413_v41 }
0x1194   :  { %7414 = vrcp.f32 %v850_v42 }
0x119e   :  { %v7415_v44 = vpop.eup %7414 }
0x119f   :  { %v859_v48 = vmul.f32 %v7415_v44, %v857_v47 }
0x1202   :  { %v862_v45 = vpop.permute.xlu0 %861 }
0x1203   :  { %v864_v46 = vmul.f32 %v7415_v44, %v862_v45 }
0x1205   :  { %866 = vrot.lane.b32.xlu0 %v864_v46, %s7665_s14 }
0x1277   :  { %v867_v49 = vpop.permute.xlu0 %866 }
0x1278   :  { %v869_v50 = vadd.f32 %v867_v49, %v859_v48 }
0x127a   :  { %7416 = vtanh.f32 %v869_v50 }
0x1284   :  { %v7417_v51 = vpop.eup %7416 }
0x1285   :  { %872 = vrot.lane.b32.xlu1 %v7417_v51, %s7664_s13 }
0x12f7   :  { %v873_v52 = vpop.permute.xlu1 %872 }
0x12f8   :  { %v875_v53 = vmul.f32 %v7415_v44, %v873_v52 }
0x12fa   :  { %882 = vrot.lane.b32.xlu0 %v875_v53, %s7665_s14 }
0x12fe   :  { %877 = vrot.lane.b32.xlu0 %v869_v50, %s7666_s15 }
0x136c   :  { %v883_v54 = vpop.permute.xlu0 %882 }
0x136d   :  { %885 = vst.msk [vmem:[#allocation2] sm:$0xff] %vm51_vm2, %v883_v54 }
0x1370   :  { %v878_v55 = vpop.permute.xlu0 %877 }
0x1371   :  { %880 = vst.msk [vmem:[#allocation3] sm:$0xff] %vm51_vm2, %v878_v55 }
0x1374   :  { %v886_v56 = vld [vmem:[#allocation2] sm:$0xff] }
0x1375   :  { %6178 = vmatmul.mubr.msk.f32.vlgmr.msra.gmra.mrb[8].mxu0 %vm42_vm1, %v886_v56 }
0x1376   :  { %6949 = vmatpush3.bf16.msra.mxu0 %v7747_v4  ;;  %6218 = vmatprep.mubr.msk.f32.mxu0 %vm7662_vm0, %v7663_v6 }
0x1377   :  { %6950 = vmatprep.subr.bf16.mxu0 %v7661_v3 }
0x137a   :  { %6952 = vmatpush3.bf16.msra.mxu0 %v7763_v7  ;;  %v982_v7 = vld [vmem:[#allocation3] sm:$0xff] }
0x137b   :  { %6953 = vmatprep.subr.bf16.mxu0 %v7661_v3 }
0x1448   :  { %v971_v57 = vpop.f32.mrb[8].mxu0 }
0x1449   :  { %v972_v58 = vadd.f32 %v7836_v43, %v971_v57  ;;  %v6179_v59 = vpop.f32.mrb[9].mxu0 }
0x144b   :  { %7418 = vtanh.f32 %v972_v58  ;;  %v5575_v61 = vmul.f32 -1.442695, %v972_v58 }
0x144d   :  { %7420 = vpow2.f32 %v5575_v61 }
0x1455   :  { %v7419_v60 = vpop.eup %7418 }
0x1456   :  { %985 = vrot.lane.b32.xlu1 %v7419_v60, %s7664_s13 }
0x1457   :  { %v7421_v4 = vpop.eup %7420 }
0x1458   :  { %v978_v62 = vadd.f32 1.0, %v7421_v4 }
0x145a   :  { %7422 = vrcp.f32 %v978_v62 }
0x1464   :  { %v7423_v63 = vpop.eup %7422 }
0x1465   :  { %v983_v2 = vmul.f32 %v7423_v63, %v982_v7 }
0x14c8   :  { %v986_v0 = vpop.permute.xlu1 %985 }
0x14c9   :  { %v988_v1 = vmul.f32 %v7423_v63, %v986_v0 }
0x14cb   :  { %990 = vrot.lane.b32.xlu1 %v988_v1, %s7665_s14 }
0x153d   :  { %v991_v5 = vpop.permute.xlu1 %990 }
0x153e   :  { %v993_v8 = vadd.f32 %v991_v5, %v983_v2 }
0x1540   :  { %7424 = vtanh.f32 %v993_v8  ;;  %1000 = vst.msk [vmem:[#allocation3] sm:$0xff] %vm279_vm3, %v993_v8 }
0x1547   :  { %v1094_v12 = vld [vmem:[#allocation3] sm:$0xff] }
0x154a   :  { %v7425_v9 = vpop.eup %7424 }
0x154b   :  { %996 = vrot.lane.b32.xlu0 %v7425_v9, %s7664_s13 }
0x15bd   :  { %v997_v10 = vpop.permute.xlu0 %996 }
0x15be   :  { %v999_v11 = vmul.f32 %v7423_v63, %v997_v10 }
0x15c0   :  { %1002 = vrot.lane.b32.xlu1 %v999_v11, %s7664_s13 }
0x15c4   :  { %1096 = vrot.lane.b32.xlu1 %v1094_v12, %s7665_s14 }
0x1632   :  { %v1003_v13 = vpop.permute.xlu1 %1002 }
0x1633   :  { %1005 = vst.msk [vmem:[#allocation2] sm:$0xff] %vm279_vm3, %v1003_v13 }
0x1636   :  { %v1097_v26 = vpop.permute.xlu1 %1096 }
0x163a   :  { %v1008_v14 = vld [vmem:[#allocation2] sm:$0xff] }
0x163b   :  { %6189 = vmatmul.mubr.msk.f32.vlgmr.msra.gmra.mrb[6].mxu1 %vm51_vm2, %v1008_v14 }
0x163c   :  { %6937 = vmatpush3.bf16.msra.mxu1 %v7790_v28  ;;  %6207 = vmatprep.mubr.msk.f32.mxu1 %vm7662_vm0, %v7663_v6 }
0x163d   :  { %6938 = vmatprep.subr.bf16.mxu1 %v7661_v3 }
0x1640   :  { %6940 = vmatpush3.bf16.msra.mxu1 %v7796_v30 }
0x1641   :  { %6941 = vmatprep.subr.bf16.mxu1 %v7661_v3 }
0x1644   :  { %6943 = vmatpush3.bf16.msra.mxu1 %v7808_v34 }
0x1645   :  { %6944 = vmatprep.subr.bf16.mxu1 %v7661_v3 }
0x1648   :  { %6946 = vmatpush3.bf16.msra.mxu1 %v7818_v37 }
0x1649   :  { %6965 = vmatprep.subr.bf16.mxu1 %v7661_v3 }
0x170e   :  { %v1082_v16 = vpop.f32.mrb[6].mxu1 }
0x170f   :  { %v1086_v17 = vadd.f32 %v5576_v15, %v1082_v16  ;;  %v6190_v18 = vpop.f32.mrb[7].mxu1 }
0x1711   :  { %7426 = vtanh.f32 %v1086_v17  ;;  %v5578_v20 = vmul.f32 -1.442695, %v1086_v17 }
0x1713   :  { %7428 = vpow2.f32 %v5578_v20 }
0x171b   :  { %v7427_v19 = vpop.eup %7426 }
0x171c   :  { %1101 = vrot.lane.b32.xlu0 %v7427_v19, %s7664_s13 }
0x171d   :  { %v7429_v21 = vpop.eup %7428 }
0x171e   :  { %v1090_v22 = vadd.f32 1.0, %v7429_v21 }
0x1720   :  { %7430 = vrcp.f32 %v1090_v22 }
0x172a   :  { %v7431_v23 = vpop.eup %7430 }
0x172b   :  { %v1099_v27 = vmul.f32 %v7431_v23, %v1097_v26 }
0x178e   :  { %v1102_v24 = vpop.permute.xlu0 %1101 }
0x178f   :  { %v1104_v25 = vmul.f32 %v7431_v23, %v1102_v24 }
0x1791   :  { %1106 = vrot.lane.b32.xlu0 %v1104_v25, %s7665_s14 }
0x1803   :  { %v1107_v29 = vpop.permute.xlu0 %1106 }
0x1804   :  { %v1109_v31 = vadd.f32 %v1107_v29, %v1099_v27 }
0x1806   :  { %7432 = vtanh.f32 %v1109_v31 }
0x1810   :  { %v7433_v32 = vpop.eup %7432 }
0x1811   :  { %1112 = vrot.lane.b32.xlu1 %v7433_v32, %s7664_s13  ;;  %v1490_v32 = vld [vmem:[%s9019_s2 + $0x8] sm:$0xff] }
0x1883   :  { %v1113_v33 = vpop.permute.xlu1 %1112 }
0x1884   :  { %v1115_v35 = vmul.f32 %v7431_v23, %v1113_v33 }
0x1886   :  { %1122 = vrot.lane.b32.xlu0 %v1115_v35, %s7665_s14  ;;  %v1491_v35 = vld [vmem:[%s9019_s2 + $0x10] sm:$0xff] }
0x188a   :  { %1117 = vrot.lane.b32.xlu0 %v1109_v31, %s7666_s15  ;;  %v1489_v31 = vld [vmem:[%s9019_s2] sm:$0xff] }
0x188b   :  { %v8021_v33 = vpack.c.bf16 %v1490_v32, %v1489_v31 }
0x18f8   :  { %v1123_v36 = vpop.permute.xlu0 %1122 }
0x18f9   :  { %1125 = vst.msk [vmem:[#allocation2] sm:$0xff] %vm51_vm2, %v1123_v36  ;;  %v1492_v36 = vld [vmem:[%s9019_s2 + $0x18] sm:$0xff] }
0x18fc   :  { %v1118_v38 = vpop.permute.xlu0 %1117 }
0x18fd   :  { %1120 = vst.msk [vmem:[#allocation3] sm:$0xff] %vm51_vm2, %v1118_v38  ;;  %v8033_v38 = vpack.c.bf16 %v1492_v36, %v1491_v35  ;;  %v5594_v36 = vld [vmem:[%s9018_s1 + $0x38] sm:$0xff] }
0x1900   :  { %v1126_v39 = vld [vmem:[#allocation2] sm:$0xff] }
0x1901   :  { %6208 = vmatmul.mubr.msk.f32.vlgmr.msra.gmra.mrb[8].mxu1 %vm42_vm1, %v1126_v39 }
0x1902   :  { %6248 = vmatprep.mubr.msk.f32.mxu1 %vm7662_vm0, %v7663_v6  ;;  %6967 = vmatpush3.bf16.msra.mxu1 %v8021_v33 }
0x1903   :  { %6968 = vmatprep.subr.bf16.mxu1 %v7661_v3 }
0x1904   :  { %v1222_v51 = vld [vmem:[#allocation3] sm:$0xff] }
0x1906   :  { %6970 = vmatpush3.bf16.msra.mxu1 %v8033_v38 }
0x1907   :  { %6971 = vmatprep.subr.bf16.mxu1 %v7661_v3 }
0x19d4   :  { %v1211_v40 = vpop.f32.mrb[8].mxu1 }
0x19d5   :  { %v1212_v41 = vadd.f32 %v7836_v43, %v1211_v40  ;;  %v6209_v42 = vpop.f32.mrb[9].mxu1 }
0x19d7   :  { %7434 = vtanh.f32 %v1212_v41  ;;  %v5581_v45 = vmul.f32 -1.442695, %v1212_v41 }
0x19d9   :  { %7436 = vpow2.f32 %v5581_v45  ;;  %v8043_v45 = vld [vmem:[#allocation4] sm:$0xff] }
0x19e1   :  { %v7435_v44 = vpop.eup %7434 }
0x19e2   :  { %1225 = vrot.lane.b32.xlu1 %v7435_v44, %s7664_s13 }
0x19e3   :  { %v7437_v46 = vpop.eup %7436 }
0x19e4   :  { %v1218_v47 = vadd.f32 1.0, %v7437_v46  ;;  %v5588_v46 = vld [vmem:[%s9018_s1 + $0x30] sm:$0xff] }
0x19e6   :  { %7438 = vrcp.f32 %v1218_v47 }
0x19f0   :  { %v7439_v48 = vpop.eup %7438 }
0x19f1   :  { %v1223_v52 = vmul.f32 %v7439_v48, %v1222_v51 }
0x1a54   :  { %v1226_v49 = vpop.permute.xlu1 %1225 }
0x1a55   :  { %v1228_v50 = vmul.f32 %v7439_v48, %v1226_v49 }
0x1a57   :  { %1230 = vrot.lane.b32.xlu1 %v1228_v50, %s7665_s14 }
0x1ac9   :  { %v1231_v53 = vpop.permute.xlu1 %1230 }
0x1aca   :  { %v1233_v54 = vadd.f32 %v1231_v53, %v1223_v52 }
0x1acc   :  { %7440 = vtanh.f32 %v1233_v54  ;;  %1240 = vst.msk [vmem:[#allocation3] sm:$0xff] %vm279_vm3, %v1233_v54 }
0x1ad3   :  { %v1334_v58 = vld [vmem:[#allocation3] sm:$0xff] }
0x1ad6   :  { %v7441_v55 = vpop.eup %7440 }
0x1ad7   :  { %1236 = vrot.lane.b32.xlu0 %v7441_v55, %s7664_s13 }
0x1b49   :  { %v1237_v56 = vpop.permute.xlu0 %1236 }
0x1b4a   :  { %v1239_v57 = vmul.f32 %v7439_v48, %v1237_v56 }
0x1b4c   :  { %1242 = vrot.lane.b32.xlu1 %v1239_v57, %s7664_s13 }
0x1b50   :  { %1336 = vrot.lane.b32.xlu1 %v1334_v58, %s7665_s14 }
0x1bbe   :  { %v1243_v59 = vpop.permute.xlu1 %1242 }
0x1bbf   :  { %1245 = vst.msk [vmem:[#allocation2] sm:$0xff] %vm279_vm3, %v1243_v59 }
0x1bc2   :  { %v1337_v2 = vpop.permute.xlu1 %1336 }
0x1bc6   :  { %v1248_v60 = vld [vmem:[#allocation2] sm:$0xff] }
0x1bc7   :  { %6219 = vmatmul.mubr.msk.f32.vlgmr.msra.gmra.mrb[10].mxu0 %vm51_vm2, %v1248_v60 }
0x1bc8   :  { %6955 = vmatpush3.bf16.msra.mxu0 %v7790_v28  ;;  %6237 = vmatprep.mubr.msk.f32.mxu0 %vm7662_vm0, %v7663_v6  ;;  %v5582_v28 = vld [vmem:[%s9018_s1 + $0x28] sm:$0xff] }
0x1bc9   :  { %6956 = vmatprep.subr.bf16.mxu0 %v7661_v3 }
0x1bcc   :  { %6958 = vmatpush3.bf16.msra.mxu0 %v7796_v30 }
0x1bcd   :  { %6959 = vmatprep.subr.bf16.mxu0 %v7661_v3 }
0x1bd0   :  { %6961 = vmatpush3.bf16.msra.mxu0 %v7808_v34 }
0x1bd1   :  { %6962 = vmatprep.subr.bf16.mxu0 %v7661_v3 }
0x1bd4   :  { %6964 = vmatpush3.bf16.msra.mxu0 %v7818_v37 }
0x1bd5   :  { %6983 = vmatprep.subr.bf16.mxu0 %v7661_v3 }
0x1c9a   :  { %v1322_v61 = vpop.f32.mrb[10].mxu0 }
0x1c9b   :  { %v1326_v4 = vadd.f32 %v5582_v28, %v1322_v61  ;;  %v6220_v62 = vpop.f32.mrb[11].mxu0  ;;  %v1607_v28 = vld [vmem:[%s9020_s3] sm:$0xff]  ;;  %v1608_v61 = vld [vmem:[%s9020_s3 + $0x8] sm:$0xff] }
0x1c9c   :  { %v8061_v62 = vpack.c.bf16 %v1608_v61, %v1607_v28 }
0x1c9d   :  { %7442 = vtanh.f32 %v1326_v4  ;;  %v5584_v30 = vmul.f32 -1.442695, %v1326_v4  ;;  %v1609_v4 = vld [vmem:[%s9020_s3 + $0x10] sm:$0xff] }
0x1c9f   :  { %7444 = vpow2.f32 %v5584_v30 }
0x1ca7   :  { %v7443_v63 = vpop.eup %7442 }
0x1ca8   :  { %1341 = vrot.lane.b32.xlu0 %v7443_v63, %s7664_s13  ;;  %v1610_v63 = vld [vmem:[%s9020_s3 + $0x18] sm:$0xff] }
0x1ca9   :  { %v7445_v34 = vpop.eup %7444  ;;  %v8067_v30 = vpack.c.bf16 %v1610_v63, %v1609_v4 }
0x1caa   :  { %v1330_v0 = vadd.f32 1.0, %v7445_v34 }
0x1cac   :  { %7446 = vrcp.f32 %v1330_v0  ;;  %v1611_v0 = vld [vmem:[%s9020_s3 + $0x20] sm:$0xff] }
0x1cb6   :  { %v7447_v1 = vpop.eup %7446 }
0x1cb7   :  { %v1339_v5 = vmul.f32 %v7447_v1, %v1337_v2  ;;  %v1614_v2 = vld [vmem:[%s9020_s3 + $0x38] sm:$0xff] }
0x1d1a   :  { %v1342_v37 = vpop.permute.xlu0 %1341 }
0x1d1b   :  { %v1344_v7 = vmul.f32 %v7447_v1, %v1342_v37 }
0x1d1d   :  { %1346 = vrot.lane.b32.xlu0 %v1344_v7, %s7665_s14  ;;  %v1613_v7 = vld [vmem:[%s9020_s3 + $0x30] sm:$0xff] }
0x1d8f   :  { %v1347_v8 = vpop.permute.xlu0 %1346 }
0x1d90   :  { %v1349_v9 = vadd.f32 %v1347_v8, %v1339_v5  ;;  %v8089_v5 = vpack.c.bf16 %v1614_v2, %v1613_v7 }
0x1d92   :  { %7448 = vtanh.f32 %v1349_v9 }
0x1d9c   :  { %v7449_v10 = vpop.eup %7448 }
0x1d9d   :  { %1352 = vrot.lane.b32.xlu1 %v7449_v10, %s7664_s13 }
0x1e0f   :  { %v1353_v11 = vpop.permute.xlu1 %1352 }
0x1e10   :  { %v1355_v12 = vmul.f32 %v7447_v1, %v1353_v11  ;;  %v1612_v1 = vld [vmem:[%s9020_s3 + $0x28] sm:$0xff] }
0x1e11   :  { %v8079_v37 = vpack.c.bf16 %v1612_v1, %v1611_v0 }
0x1e12   :  { %1362 = vrot.lane.b32.xlu0 %v1355_v12, %s7665_s14 }
0x1e16   :  { %1357 = vrot.lane.b32.xlu0 %v1349_v9, %s7666_s15 }
0x1e84   :  { %v1363_v13 = vpop.permute.xlu0 %1362 }
0x1e85   :  { %1365 = vst.msk [vmem:[#allocation2] sm:$0xff] %vm51_vm2, %v1363_v13  ;;  %v8107_v13 = vld [vmem:[%s9021_s4] ss:$0 sm:$0xff] }
0x1e88   :  { %v1358_v14 = vpop.permute.xlu0 %1357 }
0x1e89   :  { %1360 = vst.msk [vmem:[#allocation3] sm:$0xff] %vm51_vm2, %v1358_v14 }
0x1e8c   :  { %v1366_v15 = vld [vmem:[#allocation2] sm:$0xff] }
0x1e8d   :  { %6238 = vmatmul.mubr.msk.f32.vlgmr.msra.gmra.mrb[12].mxu0 %vm42_vm1, %v1366_v15 }
0x1e8e   :  { %6278 = vmatprep.mubr.msk.f32.mxu0 %vm7662_vm0, %v7663_v6  ;;  %6985 = vmatpush3.bf16.msra.mxu0 %v8021_v33 }
0x1e8f   :  { %6986 = vmatprep.subr.bf16.mxu0 %v7661_v3 }
0x1e90   :  { %v1462_v26 = vld [vmem:[#allocation3] sm:$0xff] }
0x1e92   :  { %6988 = vmatpush3.bf16.msra.mxu0 %v8033_v38 }
0x1e93   :  { %6989 = vmatprep.subr.bf16.mxu0 %v7661_v3 }
0x1f60   :  { %v1451_v16 = vpop.f32.mrb[12].mxu0 }
0x1f61   :  { %v1452_v17 = vadd.f32 %v7836_v43, %v1451_v16  ;;  %v6239_v18 = vpop.f32.mrb[13].mxu0 }
0x1f63   :  { %7450 = vtanh.f32 %v1452_v17  ;;  %v5587_v20 = vmul.f32 -1.442695, %v1452_v17 }
0x1f65   :  { %7452 = vpow2.f32 %v5587_v20 }
0x1f6d   :  { %v7451_v19 = vpop.eup %7450 }
0x1f6e   :  { %1465 = vrot.lane.b32.xlu1 %v7451_v19, %s7664_s13 }
0x1f6f   :  { %v7453_v21 = vpop.eup %7452 }
0x1f70   :  { %v1458_v22 = vadd.f32 1.0, %v7453_v21 }
0x1f72   :  { %7454 = vrcp.f32 %v1458_v22 }
0x1f7c   :  { %v7455_v23 = vpop.eup %7454 }
0x1f7d   :  { %v1463_v6 = vmul.f32 %v7455_v23, %v1462_v26 }
0x1fe0   :  { %v1466_v24 = vpop.permute.xlu1 %1465 }
0x1fe1   :  { %v1468_v25 = vmul.f32 %v7455_v23, %v1466_v24 }
0x1fe3   :  { %1470 = vrot.lane.b32.xlu1 %v1468_v25, %s7665_s14 }
0x2055   :  { %v1471_v27 = vpop.permute.xlu1 %1470 }
0x2056   :  { %v1473_v29 = vadd.f32 %v1471_v27, %v1463_v6 }
0x2058   :  { %7456 = vtanh.f32 %v1473_v29  ;;  %1480 = vst.msk [vmem:[#allocation3] sm:$0xff] %vm279_vm3, %v1473_v29 }
0x205f   :  { %v1574_v41 = vld [vmem:[#allocation3] sm:$0xff] }
0x2062   :  { %v7457_v43 = vpop.eup %7456 }
0x2063   :  { %1476 = vrot.lane.b32.xlu0 %v7457_v43, %s7664_s13 }
0x20d5   :  { %v1477_v39 = vpop.permute.xlu0 %1476 }
0x20d6   :  { %v1479_v40 = vmul.f32 %v7455_v23, %v1477_v39 }
0x20d8   :  { %1482 = vrot.lane.b32.xlu1 %v1479_v40, %s7664_s13 }
0x20dc   :  { %1576 = vrot.lane.b32.xlu1 %v1574_v41, %s7665_s14 }
0x214a   :  { %v1483_v42 = vpop.permute.xlu1 %1482 }
0x214b   :  { %1485 = vst.msk [vmem:[#allocation2] sm:$0xff] %vm279_vm3, %v1483_v42 }
0x214e   :  { %v1577_v57 = vpop.permute.xlu1 %1576 }
0x2152   :  { %v1488_v44 = vld [vmem:[#allocation2] sm:$0xff] }
0x2153   :  { %6249 = vmatmul.mubr.msk.f32.vlgmr.msra.gmra.mrb[10].mxu1 %vm51_vm2, %v1488_v44 }
0x2154   :  { %6267 = vmatprep.mubr.msk.f32.mxu1 %vm7662_vm0, %v8043_v45  ;;  %6973 = vmatpush3.bf16.msra.mxu1 %v8061_v62 }
0x2155   :  { %6974 = vmatprep.subr.bf16.mxu1 %v7661_v3 }
0x2158   :  { %6976 = vmatpush3.bf16.msra.mxu1 %v8067_v30 }
0x2159   :  { %6977 = vmatprep.subr.bf16.mxu1 %v7661_v3 }
0x215c   :  { %6979 = vmatpush3.bf16.msra.mxu1 %v8079_v37 }
0x215d   :  { %6980 = vmatprep.subr.bf16.mxu1 %v7661_v3 }
0x2160   :  { %6982 = vmatpush3.bf16.msra.mxu1 %v8089_v5 }
0x2161   :  { %7001 = vmatprep.subr.bf16.mxu1 %v7661_v3 }
0x2226   :  { %v1562_v47 = vpop.f32.mrb[10].mxu1 }
0x2227   :  { %v1566_v48 = vadd.f32 %v5588_v46, %v1562_v47  ;;  %v6250_v49 = vpop.f32.mrb[11].mxu1 }
0x2229   :  { %7458 = vtanh.f32 %v1566_v48  ;;  %v5590_v51 = vmul.f32 -1.442695, %v1566_v48 }
0x222b   :  { %7460 = vpow2.f32 %v5590_v51 }
0x2233   :  { %v7459_v50 = vpop.eup %7458 }
0x2234   :  { %1581 = vrot.lane.b32.xlu0 %v7459_v50, %s7664_s13 }
0x2235   :  { %v7461_v52 = vpop.eup %7460 }
0x2236   :  { %v1570_v53 = vadd.f32 1.0, %v7461_v52 }
0x2238   :  { %7462 = vrcp.f32 %v1570_v53 }
0x2242   :  { %v7463_v54 = vpop.eup %7462 }
0x2243   :  { %v1579_v58 = vmul.f32 %v7463_v54, %v1577_v57 }
0x22a6   :  { %v1582_v55 = vpop.permute.xlu0 %1581 }
0x22a7   :  { %v1584_v56 = vmul.f32 %v7463_v54, %v1582_v55 }
0x22a9   :  { %1586 = vrot.lane.b32.xlu0 %v1584_v56, %s7665_s14 }
0x231b   :  { %v1587_v59 = vpop.permute.xlu0 %1586 }
0x231c   :  { %v1589_v60 = vadd.f32 %v1587_v59, %v1579_v58 }
0x231e   :  { %7464 = vtanh.f32 %v1589_v60 }
0x2328   :  { %v7465_v34 = vpop.eup %7464 }
0x2329   :  { %1592 = vrot.lane.b32.xlu1 %v7465_v34, %s7664_s13 }
0x239b   :  { %v1593_v8 = vpop.permute.xlu1 %1592 }
0x239c   :  { %v1595_v9 = vmul.f32 %v7463_v54, %v1593_v8 }
0x239e   :  { %1602 = vrot.lane.b32.xlu0 %v1595_v9, %s7665_s14 }
0x23a2   :  { %1597 = vrot.lane.b32.xlu0 %v1589_v60, %s7666_s15 }
0x2410   :  { %v1603_v10 = vpop.permute.xlu0 %1602 }
0x2411   :  { %1605 = vst.msk [vmem:[#allocation2] sm:$0xff] %vm51_vm2, %v1603_v10 }
0x2414   :  { %v1598_v11 = vpop.permute.xlu0 %1597 }
0x2415   :  { %1600 = vst.msk [vmem:[#allocation3] sm:$0xff] %vm51_vm2, %v1598_v11 }
0x2418   :  { %v1606_v12 = vld [vmem:[#allocation2] sm:$0xff] }
0x2419   :  { %6268 = vmatmul.mubr.msk.f32.vlgmr.msra.gmra.mrb[12].mxu1 %vm42_vm1, %v1606_v12 }
0x241a   :  { %7003 = vmatpush3.bf16.msra.mxu1 %v8021_v33  ;;  %6308 = vmatprep.mubr.msk.f32.mxu1 %vm7662_vm0, %v8043_v45 }
0x241b   :  { %7004 = vmatprep.subr.bf16.mxu1 %v7661_v3 }
0x241c   :  { %v1702_v24 = vld [vmem:[#allocation3] sm:$0xff] }
0x241e   :  { %7006 = vmatpush3.bf16.msra.mxu1 %v8033_v38 }
0x241f   :  { %7007 = vmatprep.subr.bf16.mxu1 %v7661_v3 }
0x24ec   :  { %v1691_v14 = vpop.f32.mrb[12].mxu1 }
0x24ed   :  { %v1692_v15 = vadd.f32 %v8107_v13, %v1691_v14  ;;  %v6269_v16 = vpop.f32.mrb[13].mxu1 }
0x24ef   :  { %7466 = vtanh.f32 %v1692_v15  ;;  %v5593_v18 = vmul.f32 -1.442695, %v1692_v15 }
0x24f1   :  { %7468 = vpow2.f32 %v5593_v18  ;;  %v5600_v18 = vld [vmem:[%s9018_s1 + $0x40] sm:$0xff] }
0x24f9   :  { %v7467_v17 = vpop.eup %7466 }
0x24fa   :  { %1705 = vrot.lane.b32.xlu1 %v7467_v17, %s7664_s13 }
0x24fb   :  { %v7469_v19 = vpop.eup %7468 }
0x24fc   :  { %v1698_v20 = vadd.f32 1.0, %v7469_v19 }
0x24fe   :  { %7470 = vrcp.f32 %v1698_v20 }
0x2508   :  { %v7471_v21 = vpop.eup %7470 }
0x2509   :  { %v1703_v25 = vmul.f32 %v7471_v21, %v1702_v24 }
0x256c   :  { %v1706_v22 = vpop.permute.xlu1 %1705 }
0x256d   :  { %v1708_v23 = vmul.f32 %v7471_v21, %v1706_v22 }
0x256f   :  { %1710 = vrot.lane.b32.xlu1 %v1708_v23, %s7665_s14 }
0x25e1   :  { %v1711_v26 = vpop.permute.xlu1 %1710 }
0x25e2   :  { %v1713_v6 = vadd.f32 %v1711_v26, %v1703_v25 }
0x25e4   :  { %7472 = vtanh.f32 %v1713_v6  ;;  %1720 = vst.msk [vmem:[#allocation3] sm:$0xff] %vm279_vm3, %v1713_v6 }
0x25eb   :  { %v1814_v31 = vld [vmem:[#allocation3] sm:$0xff] }
0x25ee   :  { %v7473_v27 = vpop.eup %7472 }
0x25ef   :  { %1716 = vrot.lane.b32.xlu0 %v7473_v27, %s7664_s13 }
0x2661   :  { %v1717_v29 = vpop.permute.xlu0 %1716 }
0x2662   :  { %v1719_v43 = vmul.f32 %v7471_v21, %v1717_v29 }
0x2664   :  { %1722 = vrot.lane.b32.xlu1 %v1719_v43, %s7664_s13 }
0x2668   :  { %1816 = vrot.lane.b32.xlu1 %v1814_v31, %s7665_s14 }
0x26d6   :  { %v1723_v32 = vpop.permute.xlu1 %1722 }
0x26d7   :  { %1725 = vst.msk [vmem:[#allocation2] sm:$0xff] %vm279_vm3, %v1723_v32 }
0x26da   :  { %v1817_v51 = vpop.permute.xlu1 %1816 }
0x26de   :  { %v1728_v35 = vld [vmem:[#allocation2] sm:$0xff] }
0x26df   :  { %6279 = vmatmul.mubr.msk.f32.vlgmr.msra.gmra.mrb[14].mxu0 %vm51_vm2, %v1728_v35 }
0x26e0   :  { %6991 = vmatpush3.bf16.msra.mxu0 %v8061_v62  ;;  %6297 = vmatprep.mubr.msk.f32.mxu0 %vm7662_vm0, %v8043_v45 }
0x26e1   :  { %6992 = vmatprep.subr.bf16.mxu0 %v7661_v3 }
0x26e4   :  { %6994 = vmatpush3.bf16.msra.mxu0 %v8067_v30 }
0x26e5   :  { %6995 = vmatprep.subr.bf16.mxu0 %v7661_v3 }
0x26e8   :  { %6997 = vmatpush3.bf16.msra.mxu0 %v8079_v37 }
0x26e9   :  { %6998 = vmatprep.subr.bf16.mxu0 %v7661_v3 }
0x26ec   :  { %7000 = vmatpush3.bf16.msra.mxu0 %v8089_v5 }
0x26ed   :  { %7019 = vmatprep.subr.bf16.mxu0 %v7661_v3 }
0x27b2   :  { %v1802_v39 = vpop.f32.mrb[14].mxu0 }
0x27b3   :  { %v1806_v40 = vadd.f32 %v5594_v36, %v1802_v39  ;;  %v6280_v41 = vpop.f32.mrb[15].mxu0 }
0x27b5   :  { %7474 = vtanh.f32 %v1806_v40  ;;  %v5596_v44 = vmul.f32 -1.442695, %v1806_v40 }
0x27b7   :  { %7476 = vpow2.f32 %v5596_v44 }
0x27bf   :  { %v7475_v42 = vpop.eup %7474 }
0x27c0   :  { %1821 = vrot.lane.b32.xlu0 %v7475_v42, %s7664_s13 }
0x27c1   :  { %v7477_v46 = vpop.eup %7476 }
0x27c2   :  { %v1810_v47 = vadd.f32 1.0, %v7477_v46 }
0x27c4   :  { %7478 = vrcp.f32 %v1810_v47 }
0x27ce   :  { %v7479_v48 = vpop.eup %7478 }
0x27cf   :  { %v1819_v52 = vmul.f32 %v7479_v48, %v1817_v51 }
0x2832   :  { %v1822_v49 = vpop.permute.xlu0 %1821 }
0x2833   :  { %v1824_v50 = vmul.f32 %v7479_v48, %v1822_v49 }
0x2835   :  { %1826 = vrot.lane.b32.xlu0 %v1824_v50, %s7665_s14 }
0x28a7   :  { %v1827_v53 = vpop.permute.xlu0 %1826 }
0x28a8   :  { %v1829_v54 = vadd.f32 %v1827_v53, %v1819_v52 }
0x28aa   :  { %7480 = vtanh.f32 %v1829_v54 }
0x28b4   :  { %v7481_v55 = vpop.eup %7480 }
0x28b5   :  { %1832 = vrot.lane.b32.xlu1 %v7481_v55, %s7664_s13 }
0x2927   :  { %v1833_v56 = vpop.permute.xlu1 %1832 }
0x2928   :  { %v1835_v57 = vmul.f32 %v7479_v48, %v1833_v56 }
0x292a   :  { %1842 = vrot.lane.b32.xlu0 %v1835_v57, %s7665_s14 }
0x292e   :  { %1837 = vrot.lane.b32.xlu0 %v1829_v54, %s7666_s15 }
0x299c   :  { %v1843_v58 = vpop.permute.xlu0 %1842 }
0x299d   :  { %1845 = vst.msk [vmem:[#allocation2] sm:$0xff] %vm51_vm2, %v1843_v58 }
0x29a0   :  { %v1838_v59 = vpop.permute.xlu0 %1837 }
0x29a1   :  { %1840 = vst.msk [vmem:[#allocation3] sm:$0xff] %vm51_vm2, %v1838_v59 }
0x29a4   :  { %v1846_v60 = vld [vmem:[#allocation2] sm:$0xff] }
0x29a5   :  { %6298 = vmatmul.mubr.msk.f32.vlgmr.msra.gmra.mrb[16].mxu0 %vm42_vm1, %v1846_v60 }
0x29a6   :  { %7021 = vmatpush3.bf16.msra.mxu0 %v8021_v33  ;;  %6338 = vmatprep.mubr.msk.f32.mxu0 %vm7662_vm0, %v8043_v45 }
0x29a7   :  { %7022 = vmatprep.subr.bf16.mxu0 %v7661_v3 }
0x29aa   :  { %7024 = vmatpush3.bf16.msra.mxu0 %v8033_v38  ;;  %v1942_v38 = vld [vmem:[#allocation3] sm:$0xff] }
0x29ab   :  { %7025 = vmatprep.subr.bf16.mxu0 %v7661_v3 }
0x2a78   :  { %v1931_v28 = vpop.f32.mrb[16].mxu0 }
0x2a79   :  { %v1932_v61 = vadd.f32 %v8107_v13, %v1931_v28  ;;  %v6299_v4 = vpop.f32.mrb[17].mxu0 }
0x2a7b   :  { %7482 = vtanh.f32 %v1932_v61  ;;  %v5599_v34 = vmul.f32 -1.442695, %v1932_v61 }
0x2a7d   :  { %7484 = vpow2.f32 %v5599_v34 }
0x2a85   :  { %v7483_v63 = vpop.eup %7482 }
0x2a86   :  { %1945 = vrot.lane.b32.xlu1 %v7483_v63, %s7664_s13 }
0x2a87   :  { %v7485_v33 = vpop.eup %7484 }
0x2a88   :  { %v1938_v0 = vadd.f32 1.0, %v7485_v33 }
0x2a8a   :  { %7486 = vrcp.f32 %v1938_v0 }
0x2a94   :  { %v7487_v1 = vpop.eup %7486 }
0x2a95   :  { %v1943_v8 = vmul.f32 %v7487_v1, %v1942_v38 }
0x2af8   :  { %v1946_v7 = vpop.permute.xlu1 %1945 }
0x2af9   :  { %v1948_v2 = vmul.f32 %v7487_v1, %v1946_v7 }
0x2afb   :  { %1950 = vrot.lane.b32.xlu1 %v1948_v2, %s7665_s14 }
0x2b6d   :  { %v1951_v9 = vpop.permute.xlu1 %1950 }
0x2b6e   :  { %v1953_v10 = vadd.f32 %v1951_v9, %v1943_v8 }
0x2b70   :  { %7488 = vtanh.f32 %v1953_v10  ;;  %1960 = vst.msk [vmem:[#allocation3] sm:$0xff] %vm279_vm3, %v1953_v10 }
0x2b77   :  { %v2054_v15 = vld [vmem:[#allocation3] sm:$0xff] }
0x2b7a   :  { %v7489_v11 = vpop.eup %7488 }
0x2b7b   :  { %1956 = vrot.lane.b32.xlu0 %v7489_v11, %s7664_s13 }
0x2bed   :  { %v1957_v12 = vpop.permute.xlu0 %1956 }
0x2bee   :  { %v1959_v14 = vmul.f32 %v7487_v1, %v1957_v12 }
0x2bf0   :  { %1962 = vrot.lane.b32.xlu1 %v1959_v14, %s7664_s13 }
0x2bf4   :  { %2056 = vrot.lane.b32.xlu1 %v2054_v15, %s7665_s14 }
0x2c62   :  { %v1963_v16 = vpop.permute.xlu1 %1962 }
0x2c63   :  { %1965 = vst.msk [vmem:[#allocation2] sm:$0xff] %vm279_vm3, %v1963_v16 }
0x2c66   :  { %v2057_v29 = vpop.permute.xlu1 %2056 }
0x2c6a   :  { %v1968_v17 = vld [vmem:[#allocation2] sm:$0xff] }
0x2c6b   :  { %6309 = vmatmul.mubr.msk.f32.vlgmr.msra.gmra.mrb[14].mxu1 %vm51_vm2, %v1968_v17 }
0x2c6c   :  { %7009 = vmatpush3.bf16.msra.mxu1 %v8061_v62  ;;  %6327 = vmatprep.mubr.msk.f32.mxu1 %vm7662_vm0, %v8043_v45 }
0x2c6d   :  { %7010 = vmatprep.subr.bf16.mxu1 %v7661_v3 }
0x2c70   :  { %7012 = vmatpush3.bf16.msra.mxu1 %v8067_v30 }
0x2c71   :  { %7013 = vmatprep.subr.bf16.mxu1 %v7661_v3 }
0x2c74   :  { %7015 = vmatpush3.bf16.msra.mxu1 %v8079_v37 }
0x2c75   :  { %7016 = vmatprep.subr.bf16.mxu1 %v7661_v3 }
0x2c78   :  { %7018 = vmatpush3.bf16.msra.mxu1 %v8089_v5 }
0x2c79   :  { %7037 = vmatprep.subr.bf16.mxu1 %v7661_v3 }
0x2d3e   :  { %v2042_v19 = vpop.f32.mrb[14].mxu1 }
0x2d3f   :  { %v2046_v20 = vadd.f32 %v5600_v18, %v2042_v19  ;;  %v6310_v21 = vpop.f32.mrb[15].mxu1 }
0x2d41   :  { %7490 = vtanh.f32 %v2046_v20  ;;  %v5602_v23 = vmul.f32 -1.442695, %v2046_v20 }
0x2d43   :  { %7492 = vpow2.f32 %v5602_v23 }
0x2d4b   :  { %v7491_v22 = vpop.eup %7490 }
0x2d4c   :  { %2061 = vrot.lane.b32.xlu0 %v7491_v22, %s7664_s13 }
0x2d4d   :  { %v7493_v24 = vpop.eup %7492 }
0x2d4e   :  { %v2050_v25 = vadd.f32 1.0, %v7493_v24 }
0x2d50   :  { %7494 = vrcp.f32 %v2050_v25 }
0x2d5a   :  { %v7495_v26 = vpop.eup %7494 }
0x2d5b   :  { %v2059_v43 = vmul.f32 %v7495_v26, %v2057_v29 }
0x2dbe   :  { %v2062_v6 = vpop.permute.xlu0 %2061 }
0x2dbf   :  { %v2064_v27 = vmul.f32 %v7495_v26, %v2062_v6 }
0x2dc1   :  { %2066 = vrot.lane.b32.xlu0 %v2064_v27, %s7665_s14 }
0x2e33   :  { %v2067_v31 = vpop.permute.xlu0 %2066 }
0x2e34   :  { %v2069_v32 = vadd.f32 %v2067_v31, %v2059_v43 }
0x2e36   :  { %7496 = vtanh.f32 %v2069_v32 }
0x2e40   :  { %v7497_v35 = vpop.eup %7496 }
0x2e41   :  { %2072 = vrot.lane.b32.xlu1 %v7497_v35, %s7664_s13  ;;  %v2451_v35 = vld [vmem:[%s9023_s6] sm:$0xff] }
0x2eb3   :  { %v2073_v36 = vpop.permute.xlu1 %2072 }
0x2eb4   :  { %v2075_v39 = vmul.f32 %v7495_v26, %v2073_v36  ;;  %v2452_v36 = vld [vmem:[%s9023_s6 + $0x8] sm:$0xff] }
0x2eb6   :  { %2082 = vrot.lane.b32.xlu0 %v2075_v39, %s7665_s14  ;;  %v8220_v39 = vpack.c.bf16 %v2452_v36, %v2451_v35  ;;  %v2691_v35 = vld [vmem:[%s9027_s10 + $0x10] sm:$0xff] }
0x2eba   :  { %2077 = vrot.lane.b32.xlu0 %v2069_v32, %s7666_s15 }
0x2f28   :  { %v2083_v40 = vpop.permute.xlu0 %2082 }
0x2f29   :  { %2085 = vst.msk [vmem:[#allocation2] sm:$0xff] %vm51_vm2, %v2083_v40  ;;  %v2453_v40 = vld [vmem:[%s9023_s6 + $0x10] sm:$0xff] }
0x2f2c   :  { %v2078_v41 = vpop.permute.xlu0 %2077 }
0x2f2d   :  { %2080 = vst.msk [vmem:[#allocation3] sm:$0xff] %vm51_vm2, %v2078_v41  ;;  %v2454_v41 = vld [vmem:[%s9023_s6 + $0x18] sm:$0xff] }
0x2f30   :  { %v2086_v42 = vld [vmem:[#allocation2] sm:$0xff] }
0x2f31   :  { %6328 = vmatmul.mubr.msk.f32.vlgmr.msra.gmra.mrb[16].mxu1 %vm42_vm1, %v2086_v42  ;;  %v8230_v42 = vpack.c.bf16 %v2454_v41, %v2453_v40  ;;  %v2692_v40 = vld [vmem:[%s9027_s10 + $0x18] sm:$0xff] }
0x2f32   :  { %6368 = vmatprep.mubr.msk.f32.mxu1 %vm7662_vm0, %v8043_v45  ;;  %7039 = vmatpush3.bf16.msra.mxu1 %v8220_v39 }
0x2f33   :  { %7040 = vmatprep.subr.bf16.mxu1 %v7661_v3 }
0x2f34   :  { %v2182_v55 = vld [vmem:[#allocation3] sm:$0xff] }
0x2f36   :  { %7042 = vmatpush3.bf16.msra.mxu1 %v8230_v42 }
0x2f37   :  { %7043 = vmatprep.subr.bf16.mxu1 %v7661_v3 }
0x3004   :  { %v2171_v44 = vpop.f32.mrb[16].mxu1 }
0x3005   :  { %v2172_v46 = vadd.f32 %v8107_v13, %v2171_v44  ;;  %v6329_v47 = vpop.f32.mrb[17].mxu1 }
0x3007   :  { %7498 = vtanh.f32 %v2172_v46  ;;  %v5605_v49 = vmul.f32 -1.442695, %v2172_v46 }
0x3009   :  { %7500 = vpow2.f32 %v5605_v49 }
0x3011   :  { %v7499_v48 = vpop.eup %7498 }
0x3012   :  { %2185 = vrot.lane.b32.xlu1 %v7499_v48, %s7664_s13 }
0x3013   :  { %v7501_v50 = vpop.eup %7500 }
0x3014   :  { %v2178_v51 = vadd.f32 1.0, %v7501_v50  ;;  %v2449_v50 = vld [vmem:[%s9026_s9] sm:$0xff] }
0x3016   :  { %7502 = vrcp.f32 %v2178_v51 }
0x3020   :  { %v7503_v52 = vpop.eup %7502 }
0x3021   :  { %v2183_v56 = vmul.f32 %v7503_v52, %v2182_v55 }
0x3084   :  { %v2186_v53 = vpop.permute.xlu1 %2185 }
0x3085   :  { %v2188_v54 = vmul.f32 %v7503_v52, %v2186_v53 }
0x3087   :  { %2190 = vrot.lane.b32.xlu1 %v2188_v54, %s7665_s14 }
0x30f9   :  { %v2191_v57 = vpop.permute.xlu1 %2190 }
0x30fa   :  { %v2193_v58 = vadd.f32 %v2191_v57, %v2183_v56 }
0x30fc   :  { %7504 = vtanh.f32 %v2193_v58  ;;  %2200 = vst.msk [vmem:[#allocation3] sm:$0xff] %vm279_vm3, %v2193_v58 }
0x3103   :  { %v2294_v61 = vld [vmem:[#allocation3] sm:$0xff] }
0x3106   :  { %v7505_v59 = vpop.eup %7504 }
0x3107   :  { %2196 = vrot.lane.b32.xlu0 %v7505_v59, %s7664_s13 }
0x3179   :  { %v2197_v60 = vpop.permute.xlu0 %2196 }
0x317a   :  { %v2199_v28 = vmul.f32 %v7503_v52, %v2197_v60 }
0x317c   :  { %2202 = vrot.lane.b32.xlu1 %v2199_v28, %s7664_s13 }
0x3180   :  { %2296 = vrot.lane.b32.xlu1 %v2294_v61, %s7665_s14 }
0x31ee   :  { %v2203_v4 = vpop.permute.xlu1 %2202 }
0x31ef   :  { %2205 = vst.msk [vmem:[#allocation2] sm:$0xff] %vm279_vm3, %v2203_v4 }
0x31f2   :  { %v2297_v8 = vpop.permute.xlu1 %2296 }
0x31f6   :  { %v2208_v63 = vld [vmem:[#allocation2] sm:$0xff] }
0x31f7   :  { %6339 = vmatmul.mubr.msk.f32.vlgmr.msra.gmra.mrb[18].mxu0 %vm51_vm2, %v2208_v63 }
0x31f8   :  { %7027 = vmatpush3.bf16.msra.mxu0 %v8061_v62  ;;  %6357 = vmatprep.mubr.msk.f32.mxu0 %vm7662_vm0, %v8043_v45  ;;  %v5606_v62 = vld [vmem:[%s9018_s1 + $0x48] sm:$0xff] }
0x31f9   :  { %7028 = vmatprep.subr.bf16.mxu0 %v7661_v3 }
0x31fc   :  { %7030 = vmatpush3.bf16.msra.mxu0 %v8067_v30 }
0x31fd   :  { %7031 = vmatprep.subr.bf16.mxu0 %v7661_v3 }
0x3200   :  { %7033 = vmatpush3.bf16.msra.mxu0 %v8079_v37 }
0x3201   :  { %7034 = vmatprep.subr.bf16.mxu0 %v7661_v3 }
0x3204   :  { %7036 = vmatpush3.bf16.msra.mxu0 %v8089_v5 }
0x3205   :  { %7055 = vmatprep.subr.bf16.mxu0 %v7661_v3 }
0x32ca   :  { %v2282_v34 = vpop.f32.mrb[18].mxu0 }
0x32cb   :  { %v2286_v33 = vadd.f32 %v5606_v62, %v2282_v34  ;;  %v6340_v0 = vpop.f32.mrb[19].mxu0  ;;  %v2569_v62 = vld [vmem:[%s9024_s7] sm:$0xff]  ;;  %v2570_v34 = vld [vmem:[%s9024_s7 + $0x8] sm:$0xff] }
0x32cc   :  { %v8254_v0 = vpack.c.bf16 %v2570_v34, %v2569_v62  ;;  %v2801_v62 = vld [vmem:[%s9022_s5 + $0x18] sm:$0xff] }
0x32cd   :  { %7506 = vtanh.f32 %v2286_v33  ;;  %v5608_v30 = vmul.f32 -1.442695, %v2286_v33  ;;  %v2571_v33 = vld [vmem:[%s9024_s7 + $0x10] sm:$0xff] }
0x32cf   :  { %7508 = vpow2.f32 %v5608_v30 }
0x32d7   :  { %v7507_v1 = vpop.eup %7506 }
0x32d8   :  { %2301 = vrot.lane.b32.xlu0 %v7507_v1, %s7664_s13  ;;  %v2572_v1 = vld [vmem:[%s9024_s7 + $0x18] sm:$0xff] }
0x32d9   :  { %v7509_v37 = vpop.eup %7508  ;;  %v8260_v30 = vpack.c.bf16 %v2572_v1, %v2571_v33  ;;  %v2802_v33 = vld [vmem:[%s9022_s5 + $0x20] sm:$0xff]  ;;  %v2803_v1 = vld [vmem:[%s9022_s5 + $0x28] sm:$0xff] }
0x32da   :  { %v2290_v7 = vadd.f32 1.0, %v7509_v37 }
0x32dc   :  { %7510 = vrcp.f32 %v2290_v7  ;;  %v2573_v7 = vld [vmem:[%s9024_s7 + $0x20] sm:$0xff] }
0x32e6   :  { %v7511_v2 = vpop.eup %7510 }
0x32e7   :  { %v2299_v9 = vmul.f32 %v7511_v2, %v2297_v8  ;;  %v2576_v8 = vld [vmem:[%s9024_s7 + $0x38] sm:$0xff] }
0x334a   :  { %v2302_v5 = vpop.permute.xlu0 %2301 }
0x334b   :  { %v2304_v38 = vmul.f32 %v7511_v2, %v2302_v5 }
0x334d   :  { %2306 = vrot.lane.b32.xlu0 %v2304_v38, %s7665_s14  ;;  %v2575_v38 = vld [vmem:[%s9024_s7 + $0x30] sm:$0xff] }
0x33bf   :  { %v2307_v10 = vpop.permute.xlu0 %2306 }
0x33c0   :  { %v2309_v11 = vadd.f32 %v2307_v10, %v2299_v9  ;;  %v8282_v9 = vpack.c.bf16 %v2576_v8, %v2575_v38  ;;  %v2806_v8 = vld [vmem:[%s9022_s5 + $0x40] sm:$0xff] }
0x33c2   :  { %7512 = vtanh.f32 %v2309_v11 }
0x33cc   :  { %v7513_v12 = vpop.eup %7512 }
0x33cd   :  { %2312 = vrot.lane.b32.xlu1 %v7513_v12, %s7664_s13 }
0x343f   :  { %v2313_v14 = vpop.permute.xlu1 %2312 }
0x3440   :  { %v2315_v15 = vmul.f32 %v7511_v2, %v2313_v14  ;;  %v2574_v2 = vld [vmem:[%s9024_s7 + $0x28] sm:$0xff] }
0x3441   :  { %v8272_v5 = vpack.c.bf16 %v2574_v2, %v2573_v7  ;;  %v2804_v7 = vld [vmem:[%s9022_s5 + $0x30] sm:$0xff]  ;;  %v2805_v2 = vld [vmem:[%s9022_s5 + $0x38] sm:$0xff] }
0x3442   :  { %2322 = vrot.lane.b32.xlu0 %v2315_v15, %s7665_s14  ;;  %v8390_v38 = vpack.c.bf16 %v2805_v2, %v2804_v7 }
0x3446   :  { %2317 = vrot.lane.b32.xlu0 %v2309_v11, %s7666_s15 }
0x34b4   :  { %v2323_v16 = vpop.permute.xlu0 %2322 }
0x34b5   :  { %2325 = vst.msk [vmem:[#allocation2] sm:$0xff] %vm51_vm2, %v2323_v16  ;;  %v8300_v16 = vld [vmem:[%s9025_s8] ss:$0 sm:$0xff] }
0x34b8   :  { %v2318_v17 = vpop.permute.xlu0 %2317 }
0x34b9   :  { %2320 = vst.msk [vmem:[#allocation3] sm:$0xff] %vm51_vm2, %v2318_v17 }
0x34bc   :  { %v2326_v18 = vld [vmem:[#allocation2] sm:$0xff] }
0x34bd   :  { %6358 = vmatmul.mubr.msk.f32.vlgmr.msra.gmra.mrb[20].mxu0 %vm42_vm1, %v2326_v18 }
0x34be   :  { %6398 = vmatprep.mubr.msk.f32.mxu0 %vm7662_vm0, %v8043_v45 }
0x34c0   :  { %v2422_v29 = vld [vmem:[#allocation3] sm:$0xff] }
0x3590   :  { %v2411_v19 = vpop.f32.mrb[20].mxu0 }
0x3591   :  { %v2412_v20 = vadd.f32 %v8107_v13, %v2411_v19  ;;  %v6359_v21 = vpop.f32.mrb[21].mxu0 }
0x3593   :  { %7514 = vtanh.f32 %v2412_v20  ;;  %v5611_v23 = vmul.f32 -1.442695, %v2412_v20 }
0x3595   :  { %7516 = vpow2.f32 %v5611_v23 }
0x359d   :  { %v7515_v22 = vpop.eup %7514 }
0x359e   :  { %2425 = vrot.lane.b32.xlu1 %v7515_v22, %s7664_s13 }
0x359f   :  { %v7517_v24 = vpop.eup %7516 }
0x35a0   :  { %v2418_v25 = vadd.f32 1.0, %v7517_v24 }
0x35a2   :  { %7518 = vrcp.f32 %v2418_v25 }
0x35ac   :  { %v7519_v26 = vpop.eup %7518 }
0x35ad   :  { %v2423_v43 = vmul.f32 %v7519_v26, %v2422_v29 }
0x3610   :  { %v2426_v6 = vpop.permute.xlu1 %2425 }
0x3611   :  { %v2428_v27 = vmul.f32 %v7519_v26, %v2426_v6 }
0x3613   :  { %2430 = vrot.lane.b32.xlu1 %v2428_v27, %s7665_s14 }
0x3685   :  { %v2431_v31 = vpop.permute.xlu1 %2430 }
0x3686   :  { %v2433_v32 = vadd.f32 %v2431_v31, %v2423_v43 }
0x3688   :  { %7520 = vtanh.f32 %v2433_v32  ;;  %2440 = vst.msk [vmem:[#allocation3] sm:$0xff] %vm279_vm3, %v2433_v32  ;;  %v2689_v32 = vld [vmem:[%s9027_s10] sm:$0xff] }
0x368f   :  { %v2536_v47 = vld [vmem:[#allocation3] sm:$0xff] }
0x3692   :  { %v7521_v13 = vpop.eup %7520 }
0x3693   :  { %2436 = vrot.lane.b32.xlu0 %v7521_v13, %s7664_s13  ;;  %v2690_v13 = vld [vmem:[%s9027_s10 + $0x8] sm:$0xff] }
0x3694   :  { %v8316_v36 = vpack.c.bf16 %v2690_v13, %v2689_v32 }
0x3696   :  { %7057 = vmatpush3.bf16.msra.mxu0 %v8316_v36 }
0x3697   :  { %7058 = vmatprep.subr.bf16.mxu0 %v7661_v3 }
0x3705   :  { %v2437_v44 = vpop.permute.xlu0 %2436 }
0x3706   :  { %v2439_v46 = vmul.f32 %v7519_v26, %v2437_v44 }
0x3708   :  { %2442 = vrot.lane.b32.xlu1 %v2439_v46, %s7664_s13  ;;  %v8322_v46 = vpack.c.bf16 %v2692_v40, %v2691_v35 }
0x370a   :  { %7060 = vmatpush3.bf16.msra.mxu0 %v8322_v46 }
0x370b   :  { %7061 = vmatprep.subr.bf16.mxu0 %v7661_v3 }
0x370c   :  { %2538 = vrot.lane.b32.xlu1 %v2536_v47, %s7665_s14 }
0x377a   :  { %v2443_v48 = vpop.permute.xlu1 %2442 }
0x377b   :  { %2445 = vst.msk [vmem:[#allocation2] sm:$0xff] %vm279_vm3, %v2443_v48 }
0x377e   :  { %v2539_v28 = vpop.permute.xlu1 %2538 }
0x3782   :  { %v2450_v49 = vld [vmem:[#allocation2] sm:$0xff] }
0x3783   :  { %6369 = vmatmul.mubr.msk.f32.vlgmr.msra.gmra.mrb[18].mxu1 %vm51_vm2, %v2450_v49 }
0x3784   :  { %6387 = vmatprep.mubr.msk.f32.mxu1 %vm7662_vm0, %v8043_v45  ;;  %7045 = vmatpush3.bf16.msra.mxu1 %v8254_v0 }
0x3785   :  { %7046 = vmatprep.subr.bf16.mxu1 %v7661_v3 }
0x3788   :  { %7048 = vmatpush3.bf16.msra.mxu1 %v8260_v30 }
0x3789   :  { %7049 = vmatprep.subr.bf16.mxu1 %v7661_v3 }
0x378c   :  { %7051 = vmatpush3.bf16.msra.mxu1 %v8272_v5 }
0x378d   :  { %7052 = vmatprep.subr.bf16.mxu1 %v7661_v3 }
0x3790   :  { %7054 = vmatpush3.bf16.msra.mxu1 %v8282_v9 }
0x3791   :  { %7085 = vmatprep.subr.bf16.mxu1 %v7661_v3 }
0x3856   :  { %v2524_v51 = vpop.f32.mrb[18].mxu1 }
0x3857   :  { %v2528_v52 = vadd.f32 %v2524_v51, %v2449_v50  ;;  %v6370_v53 = vpop.f32.mrb[19].mxu1 }
0x3859   :  { %7522 = vtanh.f32 %v2528_v52  ;;  %v5613_v55 = vmul.f32 -1.442695, %v2528_v52  ;;  %v8349_v52 = vld [vmem:[%s9028_s11] ss:$0 sm:$0xff] }
0x385b   :  { %7524 = vpow2.f32 %v5613_v55 }
0x3863   :  { %v7523_v54 = vpop.eup %7522 }
0x3864   :  { %2543 = vrot.lane.b32.xlu0 %v7523_v54, %s7664_s13 }
0x3865   :  { %v7525_v56 = vpop.eup %7524 }
0x3866   :  { %v2532_v57 = vadd.f32 1.0, %v7525_v56  ;;  %v2447_v56 = vlaneseq }
0x3868   :  { %7526 = vrcp.f32 %v2532_v57  ;;  %v8352_v57 = vand.u32 127, %v2447_v56 }
0x3872   :  { %v7527_v58 = vpop.eup %7526 }
0x3873   :  { %v2541_v61 = vmul.f32 %v7527_v58, %v2539_v28  ;;  %v2798_v28 = vld [vmem:[%s9022_s5] sm:$0xff] }
0x38d6   :  { %v2544_v59 = vpop.permute.xlu0 %2543 }
0x38d7   :  { %v2546_v60 = vmul.f32 %v7527_v58, %v2544_v59 }
0x38d9   :  { %2548 = vrot.lane.b32.xlu0 %v2546_v60, %s7665_s14 }
0x394b   :  { %v2549_v4 = vpop.permute.xlu0 %2548 }
0x394c   :  { %v2551_v63 = vadd.f32 %v2549_v4, %v2541_v61  ;;  %v2799_v61 = vld [vmem:[%s9022_s5 + $0x8] sm:$0xff]  ;;  %v2800_v4 = vld [vmem:[%s9022_s5 + $0x10] sm:$0xff] }
0x394d   :  { %v8370_v34 = vpack.c.bf16 %v2801_v62, %v2800_v4 }
0x394e   :  { %7528 = vtanh.f32 %v2551_v63 }
0x3958   :  { %v7529_v37 = vpop.eup %7528 }
0x3959   :  { %2554 = vrot.lane.b32.xlu1 %v7529_v37, %s7664_s13  ;;  %v8380_v37 = vpack.c.bf16 %v2803_v1, %v2802_v33 }
0x39cb   :  { %v2555_v10 = vpop.permute.xlu1 %2554 }
0x39cc   :  { %v2557_v11 = vmul.f32 %v7527_v58, %v2555_v10  ;;  %v2807_v10 = vld [vmem:[%s9022_s5 + $0x48] sm:$0xff] }
0x39ce   :  { %2564 = vrot.lane.b32.xlu0 %v2557_v11, %s7665_s14  ;;  %v8400_v11 = vpack.c.bf16 %v2807_v10, %v2806_v8 }
0x39d2   :  { %2559 = vrot.lane.b32.xlu0 %v2551_v63, %s7666_s15  ;;  %v8364_v63 = vpack.c.bf16 %v2799_v61, %v2798_v28 }
0x3a40   :  { %v2565_v12 = vpop.permute.xlu0 %2564 }
0x3a41   :  { %2567 = vst.msk [vmem:[#allocation2] sm:$0xff] %vm51_vm2, %v2565_v12  ;;  %v2808_v12 = vld [vmem:[%s9022_s5 + $0x50] sm:$0xff] }
0x3a44   :  { %v2560_v14 = vpop.permute.xlu0 %2559 }
0x3a45   :  { %2562 = vst.msk [vmem:[#allocation3] sm:$0xff] %vm51_vm2, %v2560_v14  ;;  %v2809_v14 = vld [vmem:[%s9022_s5 + $0x58] sm:$0xff] }
0x3a48   :  { %v2568_v15 = vld [vmem:[#allocation2] sm:$0xff] }
0x3a49   :  { %6388 = vmatmul.mubr.msk.f32.vlgmr.msra.gmra.mrb[20].mxu1 %vm42_vm1, %v2568_v15  ;;  %v8410_v15 = vpack.c.bf16 %v2809_v14, %v2808_v12 }
0x3a4a   :  { %7087 = vmatpush3.bf16.msra.mxu1 %v8220_v39  ;;  %6444 = vmatprep.mubr.msk.f32.mxu1 %vm7662_vm0, %v8043_v45 }
0x3a4b   :  { %7088 = vmatprep.subr.bf16.mxu1 %v7661_v3 }
0x3a4c   :  { %v2664_v6 = vld [vmem:[#allocation3] sm:$0xff] }
0x3a4e   :  { %7090 = vmatpush3.bf16.msra.mxu1 %v8230_v42 }
0x3a4f   :  { %7091 = vmatprep.subr.bf16.mxu1 %v7661_v3 }
0x3b1c   :  { %v2653_v17 = vpop.f32.mrb[20].mxu1 }
0x3b1d   :  { %v2654_v18 = vadd.f32 %v8300_v16, %v2653_v17  ;;  %v6389_v19 = vpop.f32.mrb[21].mxu1  ;;  %v2810_v17 = vld [vmem:[%s9022_s5 + $0x60] sm:$0xff] }
0x3b1f   :  { %7530 = vtanh.f32 %v2654_v18  ;;  %v5616_v21 = vmul.f32 -1.442695, %v2654_v18  ;;  %v2811_v18 = vld [vmem:[%s9022_s5 + $0x68] sm:$0xff] }
0x3b20   :  { %v8420_v19 = vpack.c.bf16 %v2811_v18, %v2810_v17 }
0x3b21   :  { %7532 = vpow2.f32 %v5616_v21 }
0x3b29   :  { %v7531_v20 = vpop.eup %7530 }
0x3b2a   :  { %2667 = vrot.lane.b32.xlu1 %v7531_v20, %s7664_s13 }
0x3b2b   :  { %v7533_v22 = vpop.eup %7532 }
0x3b2c   :  { %v2660_v23 = vadd.f32 1.0, %v7533_v22 }
0x3b2e   :  { %7534 = vrcp.f32 %v2660_v23 }
0x3b38   :  { %v7535_v24 = vpop.eup %7534 }
0x3b39   :  { %v2665_v27 = vmul.f32 %v7535_v24, %v2664_v6 }
0x3b9c   :  { %v2668_v25 = vpop.permute.xlu1 %2667 }
0x3b9d   :  { %v2670_v26 = vmul.f32 %v7535_v24, %v2668_v25  ;;  %v2812_v25 = vld [vmem:[%s9022_s5 + $0x70] sm:$0xff] }
0x3b9f   :  { %2672 = vrot.lane.b32.xlu1 %v2670_v26, %s7665_s14  ;;  %v2813_v26 = vld [vmem:[%s9022_s5 + $0x78] sm:$0xff] }
0x3ba0   :  { %v8431_v6 = vpack.c.bf16 %v2813_v26, %v2812_v25 }
0x3c11   :  { %v2673_v29 = vpop.permute.xlu1 %2672 }
0x3c12   :  { %v2675_v43 = vadd.f32 %v2673_v29, %v2665_v27  ;;  %v5621_v29 = vld [vmem:[%s9017_s0 + $0x1] sm:$0x1] }
0x3c13   :  { %v2898_v32 = vsub.f32 1.0, %v5621_v29 }
0x3c14   :  { %7536 = vtanh.f32 %v2675_v43  ;;  %2682 = vst.msk [vmem:[#allocation3] sm:$0xff] %vm279_vm3, %v2675_v43  ;;  %v7667_v43 = vmov 0  }
0x3c15   :  { %7361 = vset.pattern.permute.xlu0 %v7667_v43  ;;  %7360 = vset.pattern.permute.xlu1 %v7667_v43 }
0x3c1b   :  { %v2996_v61 = vld [vmem:[#allocation3] sm:$0xff] }
0x3c1e   :  { %v7537_v31 = vpop.eup %7536 }
0x3c1f   :  { %2678 = vrot.lane.b32.xlu0 %v7537_v31, %s7664_s13 }
0x3c91   :  { %v2679_v41 = vpop.permute.xlu0 %2678 }
0x3c92   :  { %v2681_v44 = vmul.f32 %v7535_v24, %v2679_v41  ;;  %v2890_v24 = vshrl.u32 %v2447_v56, 7 }
0x3c94   :  { %2684 = vrot.lane.b32.xlu1 %v2681_v44, %s7664_s13  ;;  %v8433_v27 = vsub.s32 0, %v2890_v24 }
0x3c96   :  { %v2892_v31 = vrot.slane %v5621_v29, %v8433_v27  ;;  %v2903_v13 = vrot.slane %v2898_v32, %v8433_v27 }
0x3d06   :  { %v2685_v47 = vpop.permute.xlu1 %2684 }
0x3d07   :  { %2687 = vst.msk [vmem:[#allocation2] sm:$0xff] %vm279_vm3, %v2685_v47 }
0x3d0e   :  { %v2910_v48 = vld [vmem:[#allocation2] sm:$0xff] }
0x3d0f   :  { %6445 = vmatmul.mubr.msk.f32.vlgmr.msra.gmra.mrb[22].mxu1 %vm51_vm2, %v2910_v48  ;;  %2701 = vrot.lane.b32.xlu0 %v2910_v48, %s7666_s15  ;;  %v7668_v48 = vmov 1.0  }
0x3d10   :  { %7093 = vmatpush3.bf16.msra.mxu1 %v8254_v0  ;;  %6463 = vmatprep.mubr.msk.f32.mxu1 %vm7662_vm0, %v8043_v45 }
0x3d11   :  { %7094 = vmatprep.subr.bf16.mxu1 %v7661_v3 }
0x3d14   :  { %7096 = vmatpush3.bf16.msra.mxu1 %v8260_v30 }
0x3d15   :  { %7097 = vmatprep.subr.bf16.mxu1 %v7661_v3 }
0x3d18   :  { %7099 = vmatpush3.bf16.msra.mxu1 %v8272_v5 }
0x3d19   :  { %7100 = vmatprep.subr.bf16.mxu1 %v7661_v3 }
0x3d1c   :  { %7102 = vmatpush3.bf16.msra.mxu1 %v8282_v9 }
0x3d1d   :  { %7103 = vmatprep.subr.bf16.mxu1 %v7661_v3 }
0x3d81   :  { %v2702_v49 = vpop.permute.xlu0 %2701 }
0x3d82   :  { %6399 = vmatmul.mubr.msk.f32.vlgmr.msra.gmra.mrb[22].mxu0 %vm51_vm2, %v2702_v49  ;;  %v8445_v49 = vld [vmem:[#allocation4] sm:$0xff] }
0x3d83   :  { %6433 = vmatprep.mubr.msk.f32.mxu0 %vm7662_vm0, %v8043_v45  ;;  %7063 = vmatpush3.bf16.msra.mxu0 %v8364_v63 }
0x3d84   :  { %7064 = vmatprep.subr.bf16.mxu0 %v7661_v3 }
0x3d87   :  { %7066 = vmatpush3.bf16.msra.mxu0 %v8370_v34 }
0x3d88   :  { %7067 = vmatprep.subr.bf16.mxu0 %v7661_v3 }
0x3d8b   :  { %7069 = vmatpush3.bf16.msra.mxu0 %v8380_v37 }
0x3d8c   :  { %7070 = vmatprep.subr.bf16.mxu0 %v7661_v3 }
0x3d8f   :  { %7072 = vmatpush3.bf16.msra.mxu0 %v8390_v38 }
0x3d90   :  { %7073 = vmatprep.subr.bf16.mxu0 %v7661_v3 }
0x3d93   :  { %7075 = vmatpush3.bf16.msra.mxu0 %v8400_v11 }
0x3d94   :  { %7076 = vmatprep.subr.bf16.mxu0 %v7661_v3 }
0x3d97   :  { %7078 = vmatpush3.bf16.msra.mxu0 %v8410_v15 }
0x3d98   :  { %7079 = vmatprep.subr.bf16.mxu0 %v7661_v3 }
0x3d9b   :  { %7081 = vmatpush3.bf16.msra.mxu0 %v8420_v19 }
0x3d9c   :  { %7082 = vmatprep.subr.bf16.mxu0 %v7661_v3 }
0x3d9f   :  { %7084 = vmatpush3.bf16.msra.mxu0 %v8431_v6 }
0x3da0   :  { %7109 = vmatprep.subr.bf16.mxu0 %v7661_v3 }
0x3de2   :  { %v8344_v50 = vpop.f32.mrb[22].mxu1 }
0x3de3   :  { %v6446_v51 = vpop.f32.mrb[23].mxu1 }
0x3de4   :  { %v5622_v51 = vld [vmem:[%s9026_s9 + $0x8] sm:$0xff] }
0x3e55   :  { %v2771_v53 = vpop.f32.mrb[22].mxu0 }
0x3e56   :  { %v2772_v54 = vadd.f32 %v8349_v52, %v2771_v53  ;;  %v6400_v55 = vpop.f32.mrb[23].mxu0 }
0x3e58   :  { %2776 = vst [vmem:[#allocation4 + $0x8] sm:$0xff] %v2772_v54  ;;  %2777 = vmax.xlane.f32.xlu1 %v2772_v54 }
0x3e69   :  { %2894 = vperm.xlu1 %7360, %v2892_v31  }
0x3ee5   :  { %v2778_v58 = vpop.xlane.xlu1 %2777 }
0x3ee6   :  { %vm2779_vm4 = vcmp.eq.f32.partialorder %v2772_v54, %v2778_v58 }
0x3ee7   :  { %v2780_v45 = vsel %vm2779_vm4, %v8352_v57, 128 }
0x3ee8   :  { %v2782_v59 = vshra.s32 %v2780_v45, 16  ;;  %v2781_v20 = vand.u32 65535, %v2780_v45 }
0x3ee9   :  { %v2895_v53 = vpop.permute.xlu1 %2894 }
0x3eea   :  { %v2784_v60 = vcvt.s32.f32 %v2782_v59  ;;  %v2783_v22 = vcvt.s32.f32 %v2781_v20  ;;  %v2897_v55 = vmul.f32 %v5622_v51, %v2895_v53 }
0x3eec   :  { %2785 = vmin.xlane.f32.xlu0 %v2784_v60 }
0x3f79   :  { %v2786_v21 = vpop.xlane.xlu0 %2785 }
0x3f7a   :  { %vm2787_vm5 = vcmp.eq.f32.partialorder %v2784_v60, %v2786_v21  ;;  %v2792_v35 = vcvt.f32.s32 %v2786_v21 }
0x3f7b   :  { %v2788_v23 = vsel %vm2787_vm5, %v2783_v22, inf }
0x3f7c   :  { %2789 = vmin.xlane.f32.xlu0 %v2788_v23  ;;  %v2793_v41 = vshll.u32 %v2792_v35, 16 }
0x3f92   :  { %2905 = vperm.xlu0 %7361, %v2903_v13  }
0x4009   :  { %v2790_v40 = vpop.xlane.xlu0 %2789 }
0x400a   :  { %v2791_v44 = vcvt.f32.s32 %v2790_v40 }
0x400c   :  { %v2794_v47 = vadd.s32 %v2793_v41, %v2791_v44 }
0x400e   :  { %vm2795_vm6 = vcmp.eq.s32.totalorder %v8352_v57, %v2794_v47 }
0x400f   :  { %6434 = vmatmul.mubr.msk.f32.vlgmr.msra.gmra.mrb[24].mxu0 %vm2795_vm6, %v7668_v48 }
0x4010   :  { %7111 = vmatpush3.bf16.msra.mxu0 %v8364_v63  ;;  %6509 = vmatprep.mubr.msk.f32.mxu0 %vm7662_vm0, %v8445_v49 }
0x4011   :  { %7112 = vmatprep.subr.bf16.mxu0 %v7661_v3  ;;  %v2906_v54 = vpop.permute.xlu0 %2905 }
0x4014   :  { %7114 = vmatpush3.bf16.msra.mxu0 %v8370_v34 }
0x4015   :  { %7115 = vmatprep.subr.bf16.mxu0 %v7661_v3 }
0x4018   :  { %7117 = vmatpush3.bf16.msra.mxu0 %v8380_v37 }
0x4019   :  { %7118 = vmatprep.subr.bf16.mxu0 %v7661_v3 }
0x401c   :  { %7120 = vmatpush3.bf16.msra.mxu0 %v8390_v38 }
0x401d   :  { %7121 = vmatprep.subr.bf16.mxu0 %v7661_v3 }
0x4020   :  { %7123 = vmatpush3.bf16.msra.mxu0 %v8400_v11 }
0x4021   :  { %7124 = vmatprep.subr.bf16.mxu0 %v7661_v3 }
0x4024   :  { %7126 = vmatpush3.bf16.msra.mxu0 %v8410_v15 }
0x4025   :  { %7127 = vmatprep.subr.bf16.mxu0 %v7661_v3 }
0x4028   :  { %7129 = vmatpush3.bf16.msra.mxu0 %v8420_v19 }
0x4029   :  { %7130 = vmatprep.subr.bf16.mxu0 %v7661_v3 }
0x402c   :  { %7132 = vmatpush3.bf16.msra.mxu0 %v8431_v6 }
0x402d   :  { %7157 = vmatprep.subr.bf16.mxu0 %v7661_v3 }
0x40e2   :  { %v2880_v56 = vpop.f32.mrb[24].mxu0 }
0x40e3   :  { %v2908_v58 = vmul.f32 %v2906_v54, %v2880_v56  ;;  %v6435_v45 = vpop.f32.mrb[25].mxu0 }
0x40e5   :  { %v2909_v59 = vadd.f32 %v2908_v58, %v2897_v55 }
0x40e7   :  { %v2988_v60 = vadd.f32 %v8344_v50, %v2909_v59 }
0x40e9   :  { %7538 = vtanh.f32 %v2988_v60  ;;  %v5624_v4 = vmul.f32 -1.442695, %v2988_v60 }
0x40eb   :  { %7540 = vpow2.f32 %v5624_v4 }
0x40f3   :  { %v7539_v28 = vpop.eup %7538 }
0x40f4   :  { %3003 = vrot.lane.b32.xlu1 %v7539_v28, %s7664_s13 }
0x40f5   :  { %v7541_v62 = vpop.eup %7540 }
0x40f6   :  { %v2992_v33 = vadd.f32 1.0, %v7541_v62 }
0x40f8   :  { %2998 = vrot.lane.b32.xlu1 %v2996_v61, %s7665_s14  ;;  %7542 = vrcp.f32 %v2992_v33 }
0x4102   :  { %v7543_v1 = vpop.eup %7542 }
0x4166   :  { %v3004_v7 = vpop.permute.xlu1 %3003 }
0x4167   :  { %v3006_v2 = vmul.f32 %v7543_v1, %v3004_v7 }
0x4169   :  { %3008 = vrot.lane.b32.xlu1 %v3006_v2, %s7665_s14 }
0x416a   :  { %v2999_v8 = vpop.permute.xlu1 %2998 }
0x416b   :  { %v3001_v10 = vmul.f32 %v7543_v1, %v2999_v8 }
0x41db   :  { %v3009_v50 = vpop.permute.xlu1 %3008 }
0x41dc   :  { %v3011_v12 = vadd.f32 %v3009_v50, %v3001_v10 }
0x41de   :  { %7544 = vtanh.f32 %v3011_v12 }
0x41e8   :  { %v7545_v14 = vpop.eup %7544 }
0x41e9   :  { %3014 = vrot.lane.b32.xlu1 %v7545_v14, %s7664_s13 }
0x425b   :  { %v3015_v17 = vpop.permute.xlu1 %3014 }
0x425c   :  { %v3017_v18 = vmul.f32 %v7543_v1, %v3015_v17 }
0x425e   :  { %3024 = vrot.lane.b32.xlu1 %v3017_v18, %s7665_s14 }
0x42d0   :  { %v3025_v20 = vpop.permute.xlu1 %3024 }
0x42d1   :  { %3027 = vst.msk [vmem:[#allocation2] sm:$0xff] %vm51_vm2, %v3025_v20 }
0x42d8   :  { %v3028_v21 = vld [vmem:[#allocation2] sm:$0xff] }
0x42d9   :  { %6464 = vmatmul.mubr.msk.f32.vlgmr.msra.gmra.mrb[24].mxu1 %vm42_vm1, %v3028_v21 }
0x42da   :  { %7105 = vmatpush3.bf16.msra.mxu1 %v8316_v36  ;;  %6474 = vmatprep.mubr.msk.f32.mxu1 %vm7662_vm0, %v8445_v49 }
0x42db   :  { %7106 = vmatprep.subr.bf16.mxu1 %v7661_v3 }
0x42de   :  { %7108 = vmatpush3.bf16.msra.mxu1 %v8322_v46 }
0x42df   :  { %7133 = vmatprep.subr.bf16.mxu1 %v7661_v3 }
0x43ac   :  { %v3113_v22 = vpop.f32.mrb[24].mxu1 }
0x43ad   :  { %v3114_v23 = vadd.f32 %v8300_v16, %v3113_v22  ;;  %v6465_v24 = vpop.f32.mrb[25].mxu1 }
0x43af   :  { %7546 = vtanh.f32 %v3114_v23  ;;  %v5627_v26 = vmul.f32 -1.442695, %v3114_v23 }
0x43b1   :  { %7548 = vpow2.f32 %v5627_v26 }
0x43b9   :  { %v7547_v25 = vpop.eup %7546 }
0x43ba   :  { %3127 = vrot.lane.b32.xlu1 %v7547_v25, %s7664_s13 }
0x43bb   :  { %v7549_v29 = vpop.eup %7548 }
0x43bc   :  { %v3120_v43 = vadd.f32 1.0, %v7549_v29 }
0x43be   :  { %3019 = vrot.lane.b32.xlu1 %v3011_v12, %s7666_s15  ;;  %7550 = vrcp.f32 %v3120_v43 }
0x43c8   :  { %v7551_v31 = vpop.eup %7550 }
0x442c   :  { %v3128_v32 = vpop.permute.xlu1 %3127 }
0x442d   :  { %v3130_v13 = vmul.f32 %v7551_v31, %v3128_v32 }
0x442f   :  { %3132 = vrot.lane.b32.xlu1 %v3130_v13, %s7665_s14 }
0x4430   :  { %v3020_v35 = vpop.permute.xlu1 %3019 }
0x4431   :  { %3022 = vst.msk [vmem:[#allocation3] sm:$0xff] %vm51_vm2, %v3020_v35 }
0x4438   :  { %v3124_v40 = vld [vmem:[#allocation3] sm:$0xff] }
0x4439   :  { %v3125_v41 = vmul.f32 %v7551_v31, %v3124_v40 }
0x44a1   :  { %v3133_v44 = vpop.permute.xlu1 %3132 }
0x44a2   :  { %v3135_v47 = vadd.f32 %v3133_v44, %v3125_v41 }
0x44a4   :  { %7552 = vtanh.f32 %v3135_v47  ;;  %3142 = vst.msk [vmem:[#allocation3] sm:$0xff] %vm279_vm3, %v3135_v47 }
0x44ab   :  { %v3456_v23 = vld [vmem:[#allocation3] sm:$0xff] }
0x44ae   :  { %v7553_v51 = vpop.eup %7552 }
0x44af   :  { %3138 = vrot.lane.b32.xlu0 %v7553_v51, %s7664_s13 }
0x4521   :  { %v3139_v53 = vpop.permute.xlu0 %3138 }
0x4522   :  { %v3141_v54 = vmul.f32 %v7551_v31, %v3139_v53 }
0x4524   :  { %3144 = vrot.lane.b32.xlu1 %v3141_v54, %s7664_s13 }
0x4596   :  { %v3145_v55 = vpop.permute.xlu1 %3144 }
0x4597   :  { %3147 = vst.msk [vmem:[#allocation2] sm:$0xff] %vm279_vm3, %v3145_v55 }
0x459e   :  { %v3148_v56 = vld [vmem:[#allocation2] sm:$0xff] }
0x459f   :  { %3161 = vrot.lane.b32.xlu0 %v3148_v56, %s7666_s15 }
0x4611   :  { %v3162_v58 = vpop.permute.xlu0 %3161 }
0x4612   :  { %6475 = vmatmul.mubr.msk.f32.vlgmr.msra.gmra.mrb[26].mxu1 %vm51_vm2, %v3162_v58 }
0x4613   :  { %7135 = vmatpush3.bf16.msra.mxu1 %v8220_v39  ;;  %6520 = vmatprep.mubr.msk.f32.mxu1 %vm7662_vm0, %v8445_v49 }
0x4614   :  { %7136 = vmatprep.subr.bf16.mxu1 %v7661_v3 }
0x4617   :  { %7138 = vmatpush3.bf16.msra.mxu1 %v8230_v42 }
0x4618   :  { %7139 = vmatprep.subr.bf16.mxu1 %v7661_v3 }
0x461a   :  { %6521 = vmatmul.mubr.msk.f32.vlgmr.msra.gmra.mrb[28].mxu1 %vm51_vm2, %v3148_v56 }
0x461b   :  { %7141 = vmatpush3.bf16.msra.mxu1 %v8254_v0  ;;  %6539 = vmatprep.mubr.msk.f32.mxu1 %vm7662_vm0, %v8445_v49 }
0x461c   :  { %7142 = vmatprep.subr.bf16.mxu1 %v7661_v3 }
0x461f   :  { %7144 = vmatpush3.bf16.msra.mxu1 %v8260_v30  ;;  %v5632_v30 = vld [vmem:[%s9017_s0 + $0x2] sm:$0x1] }
0x4620   :  { %7145 = vmatprep.subr.bf16.mxu1 %v7661_v3  ;;  %v3358_v8 = vsub.f32 1.0, %v5632_v30 }
0x4622   :  { %v3363_v10 = vrot.slane %v3358_v8, %v8433_v27 }
0x4623   :  { %7147 = vmatpush3.bf16.msra.mxu1 %v8272_v5  ;;  %v3352_v5 = vrot.slane %v5632_v30, %v8433_v27 }
0x4624   :  { %7148 = vmatprep.subr.bf16.mxu1 %v7661_v3 }
0x4627   :  { %7150 = vmatpush3.bf16.msra.mxu1 %v8282_v9 }
0x4628   :  { %7151 = vmatprep.subr.bf16.mxu1 %v7661_v3 }
0x46e5   :  { %v3231_v45 = vpop.f32.mrb[26].mxu1 }
0x46e6   :  { %v3232_v0 = vadd.f32 %v8349_v52, %v3231_v45  ;;  %v6476_v59 = vpop.f32.mrb[27].mxu1 }
0x46e8   :  { %3236 = vst [vmem:[#allocation4 + $0x10] sm:$0xff] %v3232_v0  ;;  %3237 = vmax.xlane.f32.xlu1 %v3232_v0 }
0x46ed   :  { %v3444_v60 = vpop.f32.mrb[28].mxu1 }
0x46ee   :  { %v6522_v28 = vpop.f32.mrb[29].mxu1 }
0x46f9   :  { %3354 = vperm.xlu1 %7360, %v3352_v5  }
0x4775   :  { %v3238_v61 = vpop.xlane.xlu1 %3237 }
0x4776   :  { %vm3239_vm7 = vcmp.eq.f32.partialorder %v3232_v0, %v3238_v61 }
0x4777   :  { %v3240_v9 = vsel %vm3239_vm7, %v8352_v57, 128 }
0x4778   :  { %v3242_v4 = vshra.s32 %v3240_v9, 16  ;;  %v3241_v33 = vand.u32 65535, %v3240_v9 }
0x477a   :  { %v3244_v62 = vcvt.s32.f32 %v3242_v4  ;;  %v3243_v1 = vcvt.s32.f32 %v3241_v33 }
0x477c   :  { %3245 = vmin.xlane.f32.xlu0 %v3244_v62 }
0x4809   :  { %v3246_v7 = vpop.xlane.xlu0 %3245 }
0x480a   :  { %vm3247_vm8 = vcmp.eq.f32.partialorder %v3244_v62, %v3246_v7  ;;  %v3252_v50 = vcvt.f32.s32 %v3246_v7 }
0x480b   :  { %v3248_v2 = vsel %vm3247_vm8, %v3243_v1, inf }
0x480c   :  { %3249 = vmin.xlane.f32.xlu0 %v3248_v2  ;;  %v3253_v14 = vshll.u32 %v3252_v50, 16  ;;  %v5643_v50 = vld [vmem:[%s9017_s0 + $0x3] sm:$0x1] }
0x4822   :  { %3365 = vperm.xlu0 %7361, %v3363_v10  }
0x4899   :  { %v3250_v12 = vpop.xlane.xlu0 %3249 }
0x489a   :  { %v3251_v17 = vcvt.f32.s32 %v3250_v12 }
0x489c   :  { %v3254_v18 = vadd.s32 %v3253_v14, %v3251_v17 }
0x489e   :  { %vm3255_vm9 = vcmp.eq.s32.totalorder %v8352_v57, %v3254_v18 }
0x489f   :  { %6510 = vmatmul.mubr.msk.f32.vlgmr.msra.gmra.mrb[26].mxu0 %vm3255_vm9, %v7668_v48 }
0x48a0   :  { %7159 = vmatpush3.bf16.msra.mxu0 %v8364_v63  ;;  %6585 = vmatprep.mubr.msk.f32.mxu0 %vm7662_vm0, %v8445_v49  ;;  %v5633_v63 = vld [vmem:[%s9026_s9 + $0x10] sm:$0xff] }
0x48a1   :  { %7160 = vmatprep.subr.bf16.mxu0 %v7661_v3 }
0x48a4   :  { %7162 = vmatpush3.bf16.msra.mxu0 %v8370_v34  ;;  %v3355_v34 = vpop.permute.xlu1 %3354 }
0x48a5   :  { %7163 = vmatprep.subr.bf16.mxu0 %v7661_v3 }
0x48a8   :  { %7165 = vmatpush3.bf16.msra.mxu0 %v8380_v37  ;;  %v3366_v37 = vpop.permute.xlu0 %3365 }
0x48a9   :  { %7166 = vmatprep.subr.bf16.mxu0 %v7661_v3 }
0x48ac   :  { %7168 = vmatpush3.bf16.msra.mxu0 %v8390_v38 }
0x48ad   :  { %7169 = vmatprep.subr.bf16.mxu0 %v7661_v3 }
0x48b0   :  { %7171 = vmatpush3.bf16.msra.mxu0 %v8400_v11  ;;  %v3357_v11 = vmul.f32 %v5633_v63, %v3355_v34 }
0x48b1   :  { %7172 = vmatprep.subr.bf16.mxu0 %v7661_v3 }
0x48b4   :  { %7174 = vmatpush3.bf16.msra.mxu0 %v8410_v15 }
0x48b5   :  { %7175 = vmatprep.subr.bf16.mxu0 %v7661_v3 }
0x48b8   :  { %7177 = vmatpush3.bf16.msra.mxu0 %v8420_v19 }
0x48b9   :  { %7178 = vmatprep.subr.bf16.mxu0 %v7661_v3 }
0x48bc   :  { %7180 = vmatpush3.bf16.msra.mxu0 %v8431_v6 }
0x48bd   :  { %7205 = vmatprep.subr.bf16.mxu0 %v7661_v3 }
0x4972   :  { %v3340_v38 = vpop.f32.mrb[26].mxu0 }
0x4973   :  { %v3368_v20 = vmul.f32 %v3366_v37, %v3340_v38  ;;  %v6511_v15 = vpop.f32.mrb[27].mxu0  ;;  %v3818_v38 = vsub.f32 1.0, %v5643_v50 }
0x4975   :  { %v3369_v21 = vadd.f32 %v3368_v20, %v3357_v11  ;;  %v3823_v11 = vrot.slane %v3818_v38, %v8433_v27 }
0x4977   :  { %v3448_v22 = vadd.f32 %v3444_v60, %v3369_v21 }
0x4979   :  { %7554 = vtanh.f32 %v3448_v22  ;;  %v5635_v6 = vmul.f32 -1.442695, %v3448_v22 }
0x497b   :  { %7556 = vpow2.f32 %v5635_v6 }
0x4983   :  { %v7555_v19 = vpop.eup %7554 }
0x4984   :  { %3463 = vrot.lane.b32.xlu1 %v7555_v19, %s7664_s13 }
0x4985   :  { %v7557_v24 = vpop.eup %7556 }
0x4986   :  { %v3452_v25 = vadd.f32 1.0, %v7557_v24 }
0x4988   :  { %3458 = vrot.lane.b32.xlu1 %v3456_v23, %s7665_s14  ;;  %7558 = vrcp.f32 %v3452_v25  ;;  %v5644_v23 = vld [vmem:[%s9026_s9 + $0x18] sm:$0xff] }
0x4992   :  { %v7559_v26 = vpop.eup %7558 }
0x49f6   :  { %v3464_v29 = vpop.permute.xlu1 %3463 }
0x49f7   :  { %v3466_v43 = vmul.f32 %v7559_v26, %v3464_v29 }
0x49f9   :  { %3468 = vrot.lane.b32.xlu0 %v3466_v43, %s7665_s14 }
0x49fa   :  { %v3459_v31 = vpop.permute.xlu1 %3458 }
0x49fb   :  { %v3461_v32 = vmul.f32 %v7559_v26, %v3459_v31 }
0x4a6b   :  { %v3469_v13 = vpop.permute.xlu0 %3468 }
0x4a6c   :  { %v3471_v35 = vadd.f32 %v3469_v13, %v3461_v32 }
0x4a6e   :  { %7560 = vtanh.f32 %v3471_v35 }
0x4a78   :  { %v7561_v40 = vpop.eup %7560 }
0x4a79   :  { %3474 = vrot.lane.b32.xlu1 %v7561_v40, %s7664_s13 }
0x4aeb   :  { %v3475_v41 = vpop.permute.xlu1 %3474 }
0x4aec   :  { %v3477_v44 = vmul.f32 %v7559_v26, %v3475_v41 }
0x4aee   :  { %3484 = vrot.lane.b32.xlu0 %v3477_v44, %s7665_s14 }
0x4af2   :  { %3479 = vrot.lane.b32.xlu0 %v3471_v35, %s7666_s15 }
0x4b60   :  { %v3485_v47 = vpop.permute.xlu0 %3484 }
0x4b61   :  { %3487 = vst.msk [vmem:[#allocation2] sm:$0xff] %vm51_vm2, %v3485_v47 }
0x4b64   :  { %v3480_v51 = vpop.permute.xlu0 %3479 }
0x4b65   :  { %3482 = vst.msk [vmem:[#allocation3] sm:$0xff] %vm51_vm2, %v3480_v51 }
0x4b68   :  { %v3488_v53 = vld [vmem:[#allocation2] sm:$0xff] }
0x4b69   :  { %6540 = vmatmul.mubr.msk.f32.vlgmr.msra.gmra.mrb[30].mxu1 %vm42_vm1, %v3488_v53 }
0x4b6a   :  { %7153 = vmatpush3.bf16.msra.mxu1 %v8316_v36  ;;  %6550 = vmatprep.mubr.msk.f32.mxu1 %vm7662_vm0, %v8445_v49 }
0x4b6b   :  { %7154 = vmatprep.subr.bf16.mxu1 %v7661_v3 }
0x4b6e   :  { %7156 = vmatpush3.bf16.msra.mxu1 %v8322_v46  ;;  %v3584_v46 = vld [vmem:[#allocation3] sm:$0xff] }
0x4b6f   :  { %7181 = vmatprep.subr.bf16.mxu1 %v7661_v3 }
0x4c3c   :  { %v3573_v54 = vpop.f32.mrb[30].mxu1 }
0x4c3d   :  { %v3574_v55 = vadd.f32 %v8300_v16, %v3573_v54  ;;  %v6541_v56 = vpop.f32.mrb[31].mxu1 }
0x4c3f   :  { %7562 = vtanh.f32 %v3574_v55  ;;  %v5638_v45 = vmul.f32 -1.442695, %v3574_v55 }
0x4c41   :  { %7564 = vpow2.f32 %v5638_v45  ;;  %v3949_v45 = vld [vmem:[%s9024_s7] sm:$0xff] }
0x4c49   :  { %v7563_v58 = vpop.eup %7562 }
0x4c4a   :  { %3587 = vrot.lane.b32.xlu1 %v7563_v58, %s7664_s13 }
0x4c4b   :  { %v7565_v36 = vpop.eup %7564 }
0x4c4c   :  { %v3580_v0 = vadd.f32 1.0, %v7565_v36  ;;  %v3950_v36 = vld [vmem:[%s9024_s7 + $0x8] sm:$0xff] }
0x4c4e   :  { %7566 = vrcp.f32 %v3580_v0  ;;  %v3951_v0 = vld [vmem:[%s9024_s7 + $0x10] sm:$0xff] }
0x4c58   :  { %v7567_v59 = vpop.eup %7566 }
0x4c59   :  { %v3585_v30 = vmul.f32 %v7567_v59, %v3584_v46 }
0x4cbc   :  { %v3588_v60 = vpop.permute.xlu1 %3587 }
0x4cbd   :  { %v3590_v28 = vmul.f32 %v7567_v59, %v3588_v60  ;;  %v3952_v60 = vld [vmem:[%s9024_s7 + $0x18] sm:$0xff] }
0x4cbf   :  { %3592 = vrot.lane.b32.xlu1 %v3590_v28, %s7665_s14  ;;  %v8604_v28 = vpack.c.bf16 %v3952_v60, %v3951_v0 }
0x4d31   :  { %v3593_v5 = vpop.permute.xlu1 %3592 }
0x4d32   :  { %v3595_v61 = vadd.f32 %v3593_v5, %v3585_v30  ;;  %v3953_v30 = vld [vmem:[%s9024_s7 + $0x20] sm:$0xff]  ;;  %v3954_v5 = vld [vmem:[%s9024_s7 + $0x28] sm:$0xff] }
0x4d34   :  { %7568 = vtanh.f32 %v3595_v61  ;;  %3602 = vst.msk [vmem:[#allocation3] sm:$0xff] %vm279_vm3, %v3595_v61  ;;  %v8616_v61 = vpack.c.bf16 %v3954_v5, %v3953_v30  ;;  %v4179_v30 = vld [vmem:[%s9022_s5 + $0x8] sm:$0xff]  ;;  %v4180_v5 = vld [vmem:[%s9022_s5 + $0x10] sm:$0xff] }
0x4d3b   :  { %v3916_v35 = vld [vmem:[#allocation3] sm:$0xff] }
0x4d3e   :  { %v7569_v16 = vpop.eup %7568 }
0x4d3f   :  { %3598 = vrot.lane.b32.xlu0 %v7569_v16, %s7664_s13  ;;  %v3955_v16 = vld [vmem:[%s9024_s7 + $0x30] sm:$0xff] }
0x4db1   :  { %v3599_v9 = vpop.permute.xlu0 %3598 }
0x4db2   :  { %v3601_v4 = vmul.f32 %v7567_v59, %v3599_v9  ;;  %v8598_v59 = vpack.c.bf16 %v3950_v36, %v3949_v45  ;;  %v3956_v9 = vld [vmem:[%s9024_s7 + $0x38] sm:$0xff] }
0x4db4   :  { %3604 = vrot.lane.b32.xlu1 %v3601_v4, %s7664_s13  ;;  %v8626_v4 = vpack.c.bf16 %v3956_v9, %v3955_v16  ;;  %v4181_v9 = vld [vmem:[%s9022_s5 + $0x18] sm:$0xff] }
0x4e26   :  { %v3605_v62 = vpop.permute.xlu1 %3604 }
0x4e27   :  { %3607 = vst.msk [vmem:[#allocation2] sm:$0xff] %vm279_vm3, %v3605_v62 }
0x4e2e   :  { %v3608_v33 = vld [vmem:[#allocation2] sm:$0xff] }
0x4e2f   :  { %3621 = vrot.lane.b32.xlu0 %v3608_v33, %s7666_s15 }
0x4ea1   :  { %v3622_v1 = vpop.permute.xlu0 %3621 }
0x4ea2   :  { %6551 = vmatmul.mubr.msk.f32.vlgmr.msra.gmra.mrb[32].mxu1 %vm51_vm2, %v3622_v1 }
0x4ea3   :  { %7183 = vmatpush3.bf16.msra.mxu1 %v8220_v39  ;;  %6596 = vmatprep.mubr.msk.f32.mxu1 %vm7662_vm0, %v8445_v49 }
0x4ea4   :  { %7184 = vmatprep.subr.bf16.mxu1 %v7661_v3 }
0x4ea7   :  { %7186 = vmatpush3.bf16.msra.mxu1 %v8230_v42  ;;  %v3812_v42 = vrot.slane %v5643_v50, %v8433_v27 }
0x4ea8   :  { %7187 = vmatprep.subr.bf16.mxu1 %v7661_v3 }
0x4eaa   :  { %6597 = vmatmul.mubr.msk.f32.vlgmr.msra.gmra.mrb[34].mxu1 %vm51_vm2, %v3608_v33 }
0x4eab   :  { %6615 = vmatprep.mubr.msk.f32.mxu1 %vm7662_vm0, %v8445_v49  ;;  %7189 = vmatpush3.bf16.msra.mxu1 %v8598_v59 }
0x4eac   :  { %7190 = vmatprep.subr.bf16.mxu1 %v7661_v3 }
0x4eaf   :  { %7192 = vmatpush3.bf16.msra.mxu1 %v8604_v28 }
0x4eb0   :  { %7193 = vmatprep.subr.bf16.mxu1 %v7661_v3 }
0x4eb3   :  { %7195 = vmatpush3.bf16.msra.mxu1 %v8616_v61 }
0x4eb4   :  { %7196 = vmatprep.subr.bf16.mxu1 %v7661_v3 }
0x4eb7   :  { %7198 = vmatpush3.bf16.msra.mxu1 %v8626_v4 }
0x4eb8   :  { %7199 = vmatprep.subr.bf16.mxu1 %v7661_v3 }
0x4f75   :  { %v3691_v7 = vpop.f32.mrb[32].mxu1 }
0x4f76   :  { %v3692_v2 = vadd.f32 %v8349_v52, %v3691_v7  ;;  %v6552_v8 = vpop.f32.mrb[33].mxu1 }
0x4f77   :  { %v8640_v8 = vld [vmem:[%s9025_s8] ss:$0 sm:$0xff] }
0x4f78   :  { %3696 = vst [vmem:[#allocation4 + $0x18] sm:$0xff] %v3692_v2  ;;  %3697 = vmax.xlane.f32.xlu1 %v3692_v2 }
0x4f7d   :  { %v3904_v39 = vpop.f32.mrb[34].mxu1 }
0x4f7e   :  { %v6598_v10 = vpop.f32.mrb[35].mxu1 }
0x4f89   :  { %3814 = vperm.xlu1 %7360, %v3812_v42  }
0x5005   :  { %v3698_v12 = vpop.xlane.xlu1 %3697 }
0x5006   :  { %vm3699_vm10 = vcmp.eq.f32.partialorder %v3692_v2, %v3698_v12 }
0x5007   :  { %v3700_v14 = vsel %vm3699_vm10, %v8352_v57, 128 }
0x5008   :  { %v3702_v17 = vshra.s32 %v3700_v14, 16  ;;  %v3701_v52 = vand.u32 65535, %v3700_v14 }
0x5009   :  { %v3815_v6 = vpop.permute.xlu1 %3814 }
0x500a   :  { %v3704_v18 = vcvt.s32.f32 %v3702_v17  ;;  %v3703_v63 = vcvt.s32.f32 %v3701_v52  ;;  %v3817_v26 = vmul.f32 %v5644_v23, %v3815_v6  ;;  %v4072_v23 = vld [vmem:[%s9027_s10 + $0x18] sm:$0xff] }
0x500c   :  { %3705 = vmin.xlane.f32.xlu0 %v3704_v18 }
0x5099   :  { %v3706_v34 = vpop.xlane.xlu0 %3705 }
0x509a   :  { %vm3707_vm11 = vcmp.eq.f32.partialorder %v3704_v18, %v3706_v34  ;;  %v3712_v20 = vcvt.f32.s32 %v3706_v34 }
0x509b   :  { %v3708_v37 = vsel %vm3707_vm11, %v3703_v63, inf }
0x509c   :  { %3709 = vmin.xlane.f32.xlu0 %v3708_v37  ;;  %v3713_v21 = vshll.u32 %v3712_v20, 16 }
0x50b2   :  { %3825 = vperm.xlu0 %7361, %v3823_v11  }
0x5129   :  { %v3710_v15 = vpop.xlane.xlu0 %3709 }
0x512a   :  { %v3711_v22 = vcvt.f32.s32 %v3710_v15  ;;  %v4069_v15 = vld [vmem:[%s9027_s10] sm:$0xff] }
0x512c   :  { %v3714_v19 = vadd.s32 %v3713_v21, %v3711_v22  ;;  %v4070_v21 = vld [vmem:[%s9027_s10 + $0x8] sm:$0xff]  ;;  %v4071_v22 = vld [vmem:[%s9027_s10 + $0x10] sm:$0xff] }
0x512e   :  { %vm3715_vm12 = vcmp.eq.s32.totalorder %v8352_v57, %v3714_v19  ;;  %v8656_v19 = vpack.c.bf16 %v4070_v21, %v4069_v15  ;;  %v4192_v21 = vld [vmem:[%s9022_s5 + $0x70] sm:$0xff] }
0x512f   :  { %6586 = vmatmul.mubr.msk.f32.vlgmr.msra.gmra.mrb[28].mxu0 %vm3715_vm12, %v7668_v48 }
0x5130   :  { %6661 = vmatprep.mubr.msk.f32.mxu0 %vm7662_vm0, %v8445_v49 }
0x5131   :  { %v3826_v24 = vpop.permute.xlu0 %3825 }
0x5202   :  { %v3800_v25 = vpop.f32.mrb[28].mxu0 }
0x5203   :  { %v3828_v29 = vmul.f32 %v3826_v24, %v3800_v25  ;;  %v6587_v43 = vpop.f32.mrb[29].mxu0  ;;  %v8662_v25 = vpack.c.bf16 %v4072_v23, %v4071_v22  ;;  %v4193_v22 = vld [vmem:[%s9022_s5 + $0x78] sm:$0xff] }
0x5204   :  { %v4291_v43 = vld [vmem:[%s9023_s6] sm:$0xff]  ;;  %v8793_v23 = vpack.c.bf16 %v4193_v22, %v4192_v21 }
0x5205   :  { %v3829_v31 = vadd.f32 %v3828_v29, %v3817_v26 }
0x5207   :  { %v3908_v32 = vadd.f32 %v3904_v39, %v3829_v31  ;;  %v4292_v31 = vld [vmem:[%s9023_s6 + $0x8] sm:$0xff] }
0x5209   :  { %7570 = vtanh.f32 %v3908_v32  ;;  %v5646_v40 = vmul.f32 -1.442695, %v3908_v32  ;;  %v8676_v32 = vpack.c.bf16 %v4292_v31, %v4291_v43 }
0x520b   :  { %7572 = vpow2.f32 %v5646_v40 }
0x5213   :  { %v7571_v13 = vpop.eup %7570 }
0x5214   :  { %3923 = vrot.lane.b32.xlu1 %v7571_v13, %s7664_s13  ;;  %v4293_v13 = vld [vmem:[%s9023_s6 + $0x10] sm:$0xff] }
0x5215   :  { %v7573_v41 = vpop.eup %7572 }
0x5216   :  { %v3912_v44 = vadd.f32 1.0, %v7573_v41 }
0x5218   :  { %3918 = vrot.lane.b32.xlu1 %v3916_v35, %s7665_s14  ;;  %7574 = vrcp.f32 %v3912_v44  ;;  %v4294_v35 = vld [vmem:[%s9023_s6 + $0x18] sm:$0xff]  ;;  %v8707_v44 = vld [vmem:[%s9028_s11] ss:$0 sm:$0xff] }
0x5219   :  { %v8686_v41 = vpack.c.bf16 %v4294_v35, %v4293_v13 }
0x5222   :  { %v7575_v47 = vpop.eup %7574 }
0x5286   :  { %v3924_v51 = vpop.permute.xlu1 %3923 }
0x5287   :  { %v3926_v53 = vmul.f32 %v7575_v47, %v3924_v51 }
0x5289   :  { %3928 = vrot.lane.b32.xlu0 %v3926_v53, %s7665_s14 }
0x528a   :  { %v3919_v54 = vpop.permute.xlu1 %3918 }
0x528b   :  { %v3921_v55 = vmul.f32 %v7575_v47, %v3919_v54 }
0x52fb   :  { %v3929_v56 = vpop.permute.xlu0 %3928 }
0x52fc   :  { %v3931_v58 = vadd.f32 %v3929_v56, %v3921_v55  ;;  %v5654_v56 = vld [vmem:[%s9017_s0 + $0x4] sm:$0x1] }
0x52fd   :  { %v4278_v15 = vsub.f32 1.0, %v5654_v56 }
0x52fe   :  { %7576 = vtanh.f32 %v3931_v58 }
0x5308   :  { %v7577_v46 = vpop.eup %7576 }
0x5309   :  { %3934 = vrot.lane.b32.xlu1 %v7577_v46, %s7664_s13  ;;  %v4178_v46 = vld [vmem:[%s9022_s5] sm:$0xff] }
0x530a   :  { %v8726_v16 = vpack.c.bf16 %v4179_v30, %v4178_v46 }
0x530c   :  { %7207 = vmatpush3.bf16.msra.mxu0 %v8726_v16 }
0x530d   :  { %7208 = vmatprep.subr.bf16.mxu0 %v7661_v3 }
0x537b   :  { %v3935_v62 = vpop.permute.xlu1 %3934 }
0x537c   :  { %v3937_v33 = vmul.f32 %v7575_v47, %v3935_v62  ;;  %v8732_v62 = vpack.c.bf16 %v4181_v9, %v4180_v5 }
0x537e   :  { %3944 = vrot.lane.b32.xlu0 %v3937_v33, %s7665_s14  ;;  %v4182_v33 = vld [vmem:[%s9022_s5 + $0x20] sm:$0xff]  ;;  %7210 = vmatpush3.bf16.msra.mxu0 %v8732_v62 }
0x537f   :  { %7211 = vmatprep.subr.bf16.mxu0 %v7661_v3 }
0x5382   :  { %3939 = vrot.lane.b32.xlu0 %v3931_v58, %s7666_s15  ;;  %v4272_v58 = vrot.slane %v5654_v56, %v8433_v27 }
0x53f0   :  { %v3945_v1 = vpop.permute.xlu0 %3944 }
0x53f1   :  { %3947 = vst.msk [vmem:[#allocation2] sm:$0xff] %vm51_vm2, %v3945_v1  ;;  %v4183_v1 = vld [vmem:[%s9022_s5 + $0x28] sm:$0xff] }
0x53f4   :  { %v3940_v7 = vpop.permute.xlu0 %3939 }
0x53f5   :  { %3942 = vst.msk [vmem:[#allocation3] sm:$0xff] %vm51_vm2, %v3940_v7  ;;  %v8742_v7 = vpack.c.bf16 %v4183_v1, %v4182_v33 }
0x53f7   :  { %7213 = vmatpush3.bf16.msra.mxu0 %v8742_v7 }
0x53f8   :  { %v3948_v2 = vld [vmem:[#allocation2] sm:$0xff]  ;;  %7214 = vmatprep.subr.bf16.mxu0 %v7661_v3 }
0x53f9   :  { %6616 = vmatmul.mubr.msk.f32.vlgmr.msra.gmra.mrb[36].mxu1 %vm42_vm1, %v3948_v2  ;;  %v4184_v2 = vld [vmem:[%s9022_s5 + $0x30] sm:$0xff] }
0x53fa   :  { %6626 = vmatprep.mubr.msk.f32.mxu1 %vm7662_vm0, %v8445_v49  ;;  %7201 = vmatpush3.bf16.msra.mxu1 %v8656_v19 }
0x53fb   :  { %7202 = vmatprep.subr.bf16.mxu1 %v7661_v3 }
0x53fc   :  { %v4044_v34 = vld [vmem:[#allocation3] sm:$0xff] }
0x53fe   :  { %7204 = vmatpush3.bf16.msra.mxu1 %v8662_v25 }
0x53ff   :  { %7229 = vmatprep.subr.bf16.mxu1 %v7661_v3 }
0x54cc   :  { %v4033_v39 = vpop.f32.mrb[36].mxu1 }
0x54cd   :  { %v4034_v10 = vadd.f32 %v8640_v8, %v4033_v39  ;;  %v6617_v50 = vpop.f32.mrb[37].mxu1  ;;  %v4185_v39 = vld [vmem:[%s9022_s5 + $0x38] sm:$0xff] }
0x54ce   :  { %v4186_v50 = vld [vmem:[%s9022_s5 + $0x40] sm:$0xff] }
0x54cf   :  { %7578 = vtanh.f32 %v4034_v10  ;;  %v5649_v12 = vmul.f32 -1.442695, %v4034_v10  ;;  %v8752_v10 = vpack.c.bf16 %v4185_v39, %v4184_v2 }
0x54d1   :  { %7580 = vpow2.f32 %v5649_v12  ;;  %7216 = vmatpush3.bf16.msra.mxu0 %v8752_v10 }
0x54d2   :  { %7217 = vmatprep.subr.bf16.mxu0 %v7661_v3 }
0x54d9   :  { %v7579_v42 = vpop.eup %7578 }
0x54da   :  { %4047 = vrot.lane.b32.xlu1 %v7579_v42, %s7664_s13  ;;  %v4187_v42 = vld [vmem:[%s9022_s5 + $0x48] sm:$0xff] }
0x54db   :  { %v7581_v14 = vpop.eup %7580  ;;  %v8762_v12 = vpack.c.bf16 %v4187_v42, %v4186_v50 }
0x54dc   :  { %v4040_v17 = vadd.f32 1.0, %v7581_v14  ;;  %v4188_v14 = vld [vmem:[%s9022_s5 + $0x50] sm:$0xff] }
0x54dd   :  { %7219 = vmatpush3.bf16.msra.mxu0 %v8762_v12 }
0x54de   :  { %7582 = vrcp.f32 %v4040_v17  ;;  %v4189_v17 = vld [vmem:[%s9022_s5 + $0x58] sm:$0xff]  ;;  %7220 = vmatprep.subr.bf16.mxu0 %v7661_v3 }
0x54e8   :  { %v7583_v18 = vpop.eup %7582 }
0x54e9   :  { %v4045_v37 = vmul.f32 %v7583_v18, %v4044_v34 }
0x554c   :  { %v4048_v52 = vpop.permute.xlu1 %4047 }
0x554d   :  { %v4050_v63 = vmul.f32 %v7583_v18, %v4048_v52  ;;  %v4190_v52 = vld [vmem:[%s9022_s5 + $0x60] sm:$0xff] }
0x554f   :  { %4052 = vrot.lane.b32.xlu1 %v4050_v63, %s7665_s14  ;;  %v4191_v63 = vld [vmem:[%s9022_s5 + $0x68] sm:$0xff] }
0x5550   :  { %v8782_v34 = vpack.c.bf16 %v4191_v63, %v4190_v52  ;;  %v8832_v52 = vld [vmem:[#allocation4] sm:$0xff] }
0x55c1   :  { %v4053_v38 = vpop.permute.xlu1 %4052 }
0x55c2   :  { %v4055_v11 = vadd.f32 %v4053_v38, %v4045_v37 }
0x55c4   :  { %7584 = vtanh.f32 %v4055_v11  ;;  %4062 = vst.msk [vmem:[#allocation3] sm:$0xff] %vm279_vm3, %v4055_v11 }
0x55ce   :  { %v7585_v20 = vpop.eup %7584 }
0x55cf   :  { %4058 = vrot.lane.b32.xlu0 %v7585_v20, %s7664_s13 }
0x5641   :  { %v4059_v6 = vpop.permute.xlu0 %4058 }
0x5642   :  { %v4061_v24 = vmul.f32 %v7583_v18, %v4059_v6  ;;  %v8772_v18 = vpack.c.bf16 %v4189_v17, %v4188_v14  ;;  %v4283_v6 = vrot.slane %v4278_v15, %v8433_v27 }
0x5644   :  { %4064 = vrot.lane.b32.xlu1 %v4061_v24, %s7664_s13  ;;  %7222 = vmatpush3.bf16.msra.mxu0 %v8772_v18 }
0x5645   :  { %7223 = vmatprep.subr.bf16.mxu0 %v7661_v3 }
0x5648   :  { %7225 = vmatpush3.bf16.msra.mxu0 %v8782_v34 }
0x5649   :  { %7226 = vmatprep.subr.bf16.mxu0 %v7661_v3 }
0x564c   :  { %7228 = vmatpush3.bf16.msra.mxu0 %v8793_v23 }
0x564d   :  { %7253 = vmatprep.subr.bf16.mxu0 %v7661_v3 }
0x56b6   :  { %v4065_v26 = vpop.permute.xlu1 %4064 }
0x56b7   :  { %4067 = vst.msk [vmem:[#allocation2] sm:$0xff] %vm279_vm3, %v4065_v26 }
0x56be   :  { %v4068_v29 = vld [vmem:[#allocation2] sm:$0xff] }
0x56bf   :  { %4081 = vrot.lane.b32.xlu0 %v4068_v29, %s7666_s15 }
0x5731   :  { %v4082_v40 = vpop.permute.xlu0 %4081 }
0x5732   :  { %6627 = vmatmul.mubr.msk.f32.vlgmr.msra.gmra.mrb[38].mxu1 %vm51_vm2, %v4082_v40 }
0x5733   :  { %7231 = vmatpush3.bf16.msra.mxu1 %v8676_v32  ;;  %6672 = vmatprep.mubr.msk.f32.mxu1 %vm7662_vm0, %v8445_v49 }
0x5734   :  { %7232 = vmatprep.subr.bf16.mxu1 %v7661_v3 }
0x5737   :  { %7234 = vmatpush3.bf16.msra.mxu1 %v8686_v41 }
0x5738   :  { %7235 = vmatprep.subr.bf16.mxu1 %v7661_v3 }
0x573a   :  { %6673 = vmatmul.mubr.msk.f32.vlgmr.msra.gmra.mrb[40].mxu1 %vm51_vm2, %v4068_v29 }
0x573b   :  { %7237 = vmatpush3.bf16.msra.mxu1 %v8598_v59  ;;  %6691 = vmatprep.mubr.msk.f32.mxu1 %vm7662_vm0, %v8445_v49 }
0x573c   :  { %7238 = vmatprep.subr.bf16.mxu1 %v7661_v3 }
0x573f   :  { %7240 = vmatpush3.bf16.msra.mxu1 %v8604_v28 }
0x5740   :  { %7241 = vmatprep.subr.bf16.mxu1 %v7661_v3 }
0x5743   :  { %7243 = vmatpush3.bf16.msra.mxu1 %v8616_v61 }
0x5744   :  { %7244 = vmatprep.subr.bf16.mxu1 %v7661_v3 }
0x5747   :  { %7246 = vmatpush3.bf16.msra.mxu1 %v8626_v4 }
0x5748   :  { %7247 = vmatprep.subr.bf16.mxu1 %v7661_v3 }
0x5805   :  { %v4151_v47 = vpop.f32.mrb[38].mxu1 }
0x5806   :  { %v4152_v51 = vadd.f32 %v8707_v44, %v4151_v47  ;;  %v6628_v53 = vpop.f32.mrb[39].mxu1 }
0x5808   :  { %4156 = vst [vmem:[#allocation4 + $0x20] sm:$0xff] %v4152_v51  ;;  %4157 = vmax.xlane.f32.xlu1 %v4152_v51 }
0x580d   :  { %v8710_v54 = vpop.f32.mrb[40].mxu1 }
0x580e   :  { %v6674_v55 = vpop.f32.mrb[41].mxu1 }
0x5819   :  { %4274 = vperm.xlu1 %7360, %v4272_v58  }
0x5895   :  { %v4158_v45 = vpop.xlane.xlu1 %4157 }
0x5896   :  { %vm4159_vm13 = vcmp.eq.f32.partialorder %v4152_v51, %v4158_v45  ;;  %v4376_v45 = vld [vmem:[#allocation3] sm:$0xff] }
0x5897   :  { %v4160_v36 = vsel %vm4159_vm13, %v8352_v57, 128 }
0x5898   :  { %v4162_v0 = vshra.s32 %v4160_v36, 16  ;;  %v4161_v37 = vand.u32 65535, %v4160_v36 }
0x5899   :  { %v4275_v13 = vpop.permute.xlu1 %4274 }
0x589a   :  { %v4164_v60 = vcvt.s32.f32 %v4162_v0  ;;  %v4163_v38 = vcvt.s32.f32 %v4161_v37 }
0x589c   :  { %4165 = vmin.xlane.f32.xlu0 %v4164_v60 }
0x5929   :  { %v4166_v11 = vpop.xlane.xlu0 %4165 }
0x592a   :  { %vm4167_vm14 = vcmp.eq.f32.partialorder %v4164_v60, %v4166_v11  ;;  %v4172_v24 = vcvt.f32.s32 %v4166_v11 }
0x592b   :  { %v4168_v20 = vsel %vm4167_vm14, %v4163_v38, inf }
0x592c   :  { %4169 = vmin.xlane.f32.xlu0 %v4168_v20  ;;  %v4173_v29 = vshll.u32 %v4172_v24, 16 }
0x5942   :  { %4285 = vperm.xlu0 %7361, %v4283_v6  }
0x59b9   :  { %v4170_v26 = vpop.xlane.xlu0 %4169 }
0x59ba   :  { %v4171_v43 = vcvt.f32.s32 %v4170_v26 }
0x59bc   :  { %v4174_v31 = vadd.s32 %v4173_v29, %v4171_v43 }
0x59be   :  { %vm4175_vm15 = vcmp.eq.s32.totalorder %v8352_v57, %v4174_v31 }
0x59bf   :  { %6662 = vmatmul.mubr.msk.f32.vlgmr.msra.gmra.mrb[30].mxu0 %vm4175_vm15, %v7668_v48 }
0x59c0   :  { %7255 = vmatpush3.bf16.msra.mxu0 %v8726_v16  ;;  %6737 = vmatprep.mubr.msk.f32.mxu0 %vm7662_vm0, %v8445_v49  ;;  %v5655_v49 = vld [vmem:[%s9026_s9 + $0x20] sm:$0xff] }
0x59c1   :  { %7256 = vmatprep.subr.bf16.mxu0 %v7661_v3  ;;  %v4286_v35 = vpop.permute.xlu0 %4285  ;;  %v4277_v47 = vmul.f32 %v5655_v49, %v4275_v13 }
0x59c4   :  { %7258 = vmatpush3.bf16.msra.mxu0 %v8732_v62 }
0x59c5   :  { %7259 = vmatprep.subr.bf16.mxu0 %v7661_v3 }
0x59c8   :  { %7261 = vmatpush3.bf16.msra.mxu0 %v8742_v7 }
0x59c9   :  { %7262 = vmatprep.subr.bf16.mxu0 %v7661_v3 }
0x59cc   :  { %7264 = vmatpush3.bf16.msra.mxu0 %v8752_v10 }
0x59cd   :  { %7265 = vmatprep.subr.bf16.mxu0 %v7661_v3 }
0x59d0   :  { %7267 = vmatpush3.bf16.msra.mxu0 %v8762_v12 }
0x59d1   :  { %7268 = vmatprep.subr.bf16.mxu0 %v7661_v3 }
0x59d4   :  { %7270 = vmatpush3.bf16.msra.mxu0 %v8772_v18 }
0x59d5   :  { %7271 = vmatprep.subr.bf16.mxu0 %v7661_v3 }
0x59d8   :  { %7273 = vmatpush3.bf16.msra.mxu0 %v8782_v34 }
0x59d9   :  { %7274 = vmatprep.subr.bf16.mxu0 %v7661_v3 }
0x59dc   :  { %7276 = vmatpush3.bf16.msra.mxu0 %v8793_v23 }
0x59dd   :  { %7301 = vmatprep.subr.bf16.mxu0 %v7661_v3 }
0x5a92   :  { %v4260_v40 = vpop.f32.mrb[30].mxu0 }
0x5a93   :  { %v4288_v51 = vmul.f32 %v4286_v35, %v4260_v40  ;;  %v6663_v53 = vpop.f32.mrb[31].mxu0 }
0x5a95   :  { %v4289_v55 = vadd.f32 %v4288_v51, %v4277_v47 }
0x5a97   :  { %v4368_v56 = vadd.f32 %v8710_v54, %v4289_v55 }
0x5a99   :  { %7586 = vtanh.f32 %v4368_v56  ;;  %v5657_v36 = vmul.f32 -1.442695, %v4368_v56 }
0x5a9b   :  { %7588 = vpow2.f32 %v5657_v36 }
0x5aa3   :  { %v7587_v58 = vpop.eup %7586 }
0x5aa4   :  { %4383 = vrot.lane.b32.xlu1 %v7587_v58, %s7664_s13 }
0x5aa5   :  { %v7589_v0 = vpop.eup %7588 }
0x5aa6   :  { %v4372_v60 = vadd.f32 1.0, %v7589_v0 }
0x5aa8   :  { %4378 = vrot.lane.b32.xlu1 %v4376_v45, %s7665_s14  ;;  %7590 = vrcp.f32 %v4372_v60 }
0x5ab2   :  { %v7591_v46 = vpop.eup %7590 }
0x5b16   :  { %v4384_v30 = vpop.permute.xlu1 %4383 }
0x5b17   :  { %v4386_v5 = vmul.f32 %v7591_v46, %v4384_v30 }
0x5b19   :  { %4388 = vrot.lane.b32.xlu0 %v4386_v5, %s7665_s14 }
0x5b1a   :  { %v4379_v9 = vpop.permute.xlu1 %4378 }
0x5b1b   :  { %v4381_v33 = vmul.f32 %v7591_v46, %v4379_v9 }
0x5b8b   :  { %v4389_v54 = vpop.permute.xlu0 %4388 }
0x5b8c   :  { %v4391_v1 = vadd.f32 %v4389_v54, %v4381_v33 }
0x5b8e   :  { %7592 = vtanh.f32 %v4391_v1 }
0x5b98   :  { %v7593_v2 = vpop.eup %7592 }
0x5b99   :  { %4394 = vrot.lane.b32.xlu1 %v7593_v2, %s7664_s13 }
0x5c0b   :  { %v4395_v39 = vpop.permute.xlu1 %4394 }
0x5c0c   :  { %v4397_v50 = vmul.f32 %v7591_v46, %v4395_v39 }
0x5c0e   :  { %4404 = vrot.lane.b32.xlu0 %v4397_v50, %s7665_s14 }
0x5c12   :  { %4399 = vrot.lane.b32.xlu0 %v4391_v1, %s7666_s15 }
0x5c80   :  { %v4405_v42 = vpop.permute.xlu0 %4404 }
0x5c81   :  { %4407 = vst.msk [vmem:[#allocation2] sm:$0xff] %vm51_vm2, %v4405_v42 }
0x5c84   :  { %v4400_v14 = vpop.permute.xlu0 %4399 }
0x5c85   :  { %4402 = vst.msk [vmem:[#allocation3] sm:$0xff] %vm51_vm2, %v4400_v14 }
0x5c88   :  { %v4408_v17 = vld [vmem:[#allocation2] sm:$0xff] }
0x5c89   :  { %6692 = vmatmul.mubr.msk.f32.vlgmr.msra.gmra.mrb[42].mxu1 %vm42_vm1, %v4408_v17 }
0x5c8a   :  { %7249 = vmatpush3.bf16.msra.mxu1 %v8656_v19  ;;  %6702 = vmatprep.mubr.msk.f32.mxu1 %vm7662_vm0, %v8832_v52 }
0x5c8b   :  { %7250 = vmatprep.subr.bf16.mxu1 %v7661_v3 }
0x5c8c   :  { %v4504_v26 = vld [vmem:[#allocation3] sm:$0xff] }
0x5c8e   :  { %7252 = vmatpush3.bf16.msra.mxu1 %v8662_v25 }
0x5c8f   :  { %7277 = vmatprep.subr.bf16.mxu1 %v7661_v3 }
0x5d5c   :  { %v4493_v63 = vpop.f32.mrb[42].mxu1 }
0x5d5d   :  { %v4494_v37 = vadd.f32 %v8640_v8, %v4493_v63  ;;  %v6693_v38 = vpop.f32.mrb[43].mxu1 }
0x5d5f   :  { %7594 = vtanh.f32 %v4494_v37  ;;  %v5660_v20 = vmul.f32 -1.442695, %v4494_v37 }
0x5d61   :  { %7596 = vpow2.f32 %v5660_v20 }
0x5d69   :  { %v7595_v11 = vpop.eup %7594 }
0x5d6a   :  { %4507 = vrot.lane.b32.xlu1 %v7595_v11, %s7664_s13 }
0x5d6b   :  { %v7597_v15 = vpop.eup %7596 }
0x5d6c   :  { %v4500_v21 = vadd.f32 1.0, %v7597_v15 }
0x5d6e   :  { %7598 = vrcp.f32 %v4500_v21 }
0x5d78   :  { %v7599_v22 = vpop.eup %7598 }
0x5d79   :  { %v4505_v29 = vmul.f32 %v7599_v22, %v4504_v26 }
0x5ddc   :  { %v4508_v6 = vpop.permute.xlu1 %4507 }
0x5ddd   :  { %v4510_v24 = vmul.f32 %v7599_v22, %v4508_v6 }
0x5ddf   :  { %4512 = vrot.lane.b32.xlu1 %v4510_v24, %s7665_s14 }
0x5e51   :  { %v4513_v43 = vpop.permute.xlu1 %4512 }
0x5e52   :  { %v4515_v31 = vadd.f32 %v4513_v43, %v4505_v29 }
0x5e54   :  { %7600 = vtanh.f32 %v4515_v31  ;;  %4522 = vst.msk [vmem:[#allocation3] sm:$0xff] %vm279_vm3, %v4515_v31 }
0x5e5e   :  { %v7601_v49 = vpop.eup %7600 }
0x5e5f   :  { %4518 = vrot.lane.b32.xlu0 %v7601_v49, %s7664_s13 }
0x5ed1   :  { %v4519_v13 = vpop.permute.xlu0 %4518 }
0x5ed2   :  { %v4521_v35 = vmul.f32 %v7599_v22, %v4519_v13 }
0x5ed4   :  { %4524 = vrot.lane.b32.xlu1 %v4521_v35, %s7664_s13 }
0x5f46   :  { %v4525_v40 = vpop.permute.xlu1 %4524 }
0x5f47   :  { %4527 = vst.msk [vmem:[#allocation2] sm:$0xff] %vm279_vm3, %v4525_v40 }
0x5f4e   :  { %v4528_v47 = vld [vmem:[#allocation2] sm:$0xff] }
0x5f4f   :  { %4541 = vrot.lane.b32.xlu0 %v4528_v47, %s7666_s15 }
0x5fc1   :  { %v4542_v51 = vpop.permute.xlu0 %4541 }
0x5fc2   :  { %6703 = vmatmul.mubr.msk.f32.vlgmr.msra.gmra.mrb[44].mxu1 %vm51_vm2, %v4542_v51 }
0x5fc3   :  { %7279 = vmatpush3.bf16.msra.mxu1 %v8676_v32  ;;  %6748 = vmatprep.mubr.msk.f32.mxu1 %vm7662_vm0, %v8832_v52 }
0x5fc4   :  { %7280 = vmatprep.subr.bf16.mxu1 %v7661_v3 }
0x5fc7   :  { %7282 = vmatpush3.bf16.msra.mxu1 %v8686_v41 }
0x5fc8   :  { %7283 = vmatprep.subr.bf16.mxu1 %v7661_v3 }
0x5fca   :  { %6749 = vmatmul.mubr.msk.f32.vlgmr.msra.gmra.mrb[46].mxu1 %vm51_vm2, %v4528_v47 }
0x5fcb   :  { %7285 = vmatpush3.bf16.msra.mxu1 %v8598_v59  ;;  %6767 = vmatprep.mubr.msk.f32.mxu1 %vm7662_vm0, %v8832_v52 }
0x5fcc   :  { %7286 = vmatprep.subr.bf16.mxu1 %v7661_v3 }
0x5fcf   :  { %7288 = vmatpush3.bf16.msra.mxu1 %v8604_v28  ;;  %v5665_v28 = vld [vmem:[%s9017_s0 + $0x5] sm:$0x1] }
0x5fd0   :  { %7289 = vmatprep.subr.bf16.mxu1 %v7661_v3  ;;  %v4738_v9 = vsub.f32 1.0, %v5665_v28 }
0x5fd2   :  { %v4743_v33 = vrot.slane %v4738_v9, %v8433_v27 }
0x5fd3   :  { %7291 = vmatpush3.bf16.msra.mxu1 %v8616_v61  ;;  %v4732_v61 = vrot.slane %v5665_v28, %v8433_v27 }
0x5fd4   :  { %7292 = vmatprep.subr.bf16.mxu1 %v7661_v3 }
0x5fd7   :  { %7294 = vmatpush3.bf16.msra.mxu1 %v8626_v4 }
0x5fd8   :  { %7295 = vmatprep.subr.bf16.mxu1 %v7661_v3 }
0x6095   :  { %v4611_v53 = vpop.f32.mrb[44].mxu1 }
0x6096   :  { %v4612_v59 = vadd.f32 %v8707_v44, %v4611_v53  ;;  %v6704_v55 = vpop.f32.mrb[45].mxu1 }
0x6098   :  { %4616 = vst [vmem:[#allocation4 + $0x28] sm:$0xff] %v4612_v59  ;;  %4617 = vmax.xlane.f32.xlu1 %v4612_v59 }
0x609d   :  { %v4824_v56 = vpop.f32.mrb[46].mxu1 }
0x609e   :  { %v6750_v58 = vpop.f32.mrb[47].mxu1 }
0x60a9   :  { %4734 = vperm.xlu1 %7360, %v4732_v61  }
0x6125   :  { %v4618_v45 = vpop.xlane.xlu1 %4617 }
0x6126   :  { %vm4619_vm4 = vcmp.eq.f32.partialorder %v4612_v59, %v4618_v45 }
0x6127   :  { %v4620_v4 = vsel %vm4619_vm4, %v8352_v57, 128 }
0x6128   :  { %v4622_v36 = vshra.s32 %v4620_v4, 16  ;;  %v4621_v60 = vand.u32 65535, %v4620_v4 }
0x612a   :  { %v4624_v0 = vcvt.s32.f32 %v4622_v36  ;;  %v4623_v46 = vcvt.s32.f32 %v4621_v60 }
0x612c   :  { %4625 = vmin.xlane.f32.xlu0 %v4624_v0 }
0x61b9   :  { %v4626_v30 = vpop.xlane.xlu0 %4625 }
0x61ba   :  { %vm4627_vm5 = vcmp.eq.f32.partialorder %v4624_v0, %v4626_v30  ;;  %v4632_v54 = vcvt.f32.s32 %v4626_v30 }
0x61bb   :  { %v4628_v5 = vsel %vm4627_vm5, %v4623_v46, inf }
0x61bc   :  { %4629 = vmin.xlane.f32.xlu0 %v4628_v5  ;;  %v4633_v2 = vshll.u32 %v4632_v54, 16  ;;  %v5676_v54 = vld [vmem:[%s9017_s0 + $0x6] sm:$0x1] }
0x61d2   :  { %4745 = vperm.xlu0 %7361, %v4743_v33  }
0x6249   :  { %v4630_v1 = vpop.xlane.xlu0 %4629 }
0x624a   :  { %v4631_v39 = vcvt.f32.s32 %v4630_v1 }
0x624c   :  { %v4634_v50 = vadd.s32 %v4633_v2, %v4631_v39 }
0x624e   :  { %vm4635_vm6 = vcmp.eq.s32.totalorder %v8352_v57, %v4634_v50 }
0x624f   :  { %6738 = vmatmul.mubr.msk.f32.vlgmr.msra.gmra.mrb[32].mxu0 %vm4635_vm6, %v7668_v48 }
0x6250   :  { %7303 = vmatpush3.bf16.msra.mxu0 %v8726_v16  ;;  %6813 = vmatprep.mubr.msk.f32.mxu0 %vm7662_vm0, %v8832_v52  ;;  %v5666_v16 = vld [vmem:[%s9026_s9 + $0x28] sm:$0xff] }
0x6251   :  { %7304 = vmatprep.subr.bf16.mxu0 %v7661_v3 }
0x6254   :  { %7306 = vmatpush3.bf16.msra.mxu0 %v8732_v62  ;;  %v4735_v62 = vpop.permute.xlu1 %4734 }
0x6255   :  { %7307 = vmatprep.subr.bf16.mxu0 %v7661_v3 }
0x6258   :  { %7309 = vmatpush3.bf16.msra.mxu0 %v8742_v7  ;;  %v4746_v7 = vpop.permute.xlu0 %4745 }
0x6259   :  { %7310 = vmatprep.subr.bf16.mxu0 %v7661_v3 }
0x625c   :  { %7312 = vmatpush3.bf16.msra.mxu0 %v8752_v10 }
0x625d   :  { %7313 = vmatprep.subr.bf16.mxu0 %v7661_v3 }
0x6260   :  { %7315 = vmatpush3.bf16.msra.mxu0 %v8762_v12  ;;  %v4737_v12 = vmul.f32 %v5666_v16, %v4735_v62 }
0x6261   :  { %7316 = vmatprep.subr.bf16.mxu0 %v7661_v3 }
0x6264   :  { %7318 = vmatpush3.bf16.msra.mxu0 %v8772_v18 }
0x6265   :  { %7319 = vmatprep.subr.bf16.mxu0 %v7661_v3 }
0x6268   :  { %7321 = vmatpush3.bf16.msra.mxu0 %v8782_v34  ;;  %v4836_v34 = vld [vmem:[#allocation3] sm:$0xff] }
0x6269   :  { %7322 = vmatprep.subr.bf16.mxu0 %v7661_v3 }
0x626c   :  { %7324 = vmatpush3.bf16.msra.mxu0 %v8793_v23 }
0x6322   :  { %v4720_v10 = vpop.f32.mrb[32].mxu0 }
0x6323   :  { %v4748_v42 = vmul.f32 %v4746_v7, %v4720_v10  ;;  %v6739_v14 = vpop.f32.mrb[33].mxu0  ;;  %v5198_v10 = vsub.f32 1.0, %v5676_v54 }
0x6325   :  { %v4749_v17 = vadd.f32 %v4748_v42, %v4737_v12  ;;  %v5203_v12 = vrot.slane %v5198_v10, %v8433_v27  ;;  %v5450_v10 = vld [vmem:[%s9027_s10 + $0x8] sm:$0xff] }
0x6327   :  { %v4828_v18 = vadd.f32 %v4824_v56, %v4749_v17 }
0x6329   :  { %7602 = vtanh.f32 %v4828_v18  ;;  %v5668_v23 = vmul.f32 -1.442695, %v4828_v18 }
0x632b   :  { %7604 = vpow2.f32 %v5668_v23 }
0x6333   :  { %v7603_v63 = vpop.eup %7602 }
0x6334   :  { %4843 = vrot.lane.b32.xlu1 %v7603_v63, %s7664_s13 }
0x6335   :  { %v7605_v37 = vpop.eup %7604 }
0x6336   :  { %v4832_v38 = vadd.f32 1.0, %v7605_v37 }
0x6338   :  { %4838 = vrot.lane.b32.xlu1 %v4836_v34, %s7665_s14  ;;  %7606 = vrcp.f32 %v4832_v38  ;;  %v5677_v34 = vld [vmem:[%s9026_s9 + $0x30] sm:$0xff] }
0x6342   :  { %v7607_v11 = vpop.eup %7606 }
0x63a6   :  { %v4844_v20 = vpop.permute.xlu1 %4843 }
0x63a7   :  { %v4846_v15 = vmul.f32 %v7607_v11, %v4844_v20 }
0x63a9   :  { %4848 = vrot.lane.b32.xlu0 %v4846_v15, %s7665_s14 }
0x63aa   :  { %v4839_v21 = vpop.permute.xlu1 %4838 }
0x63ab   :  { %v4841_v22 = vmul.f32 %v7607_v11, %v4839_v21 }
0x641b   :  { %v4849_v6 = vpop.permute.xlu0 %4848 }
0x641c   :  { %v4851_v24 = vadd.f32 %v4849_v6, %v4841_v22 }
0x641e   :  { %7608 = vtanh.f32 %v4851_v24 }
0x6428   :  { %v7609_v26 = vpop.eup %7608 }
0x6429   :  { %4854 = vrot.lane.b32.xlu1 %v7609_v26, %s7664_s13 }
0x649b   :  { %v4855_v29 = vpop.permute.xlu1 %4854 }
0x649c   :  { %v4857_v43 = vmul.f32 %v7607_v11, %v4855_v29 }
0x649e   :  { %4864 = vrot.lane.b32.xlu0 %v4857_v43, %s7665_s14 }
0x64a2   :  { %4859 = vrot.lane.b32.xlu0 %v4851_v24, %s7666_s15 }
0x6510   :  { %v4865_v31 = vpop.permute.xlu0 %4864 }
0x6511   :  { %4867 = vst.msk [vmem:[#allocation2] sm:$0xff] %vm51_vm2, %v4865_v31 }
0x6514   :  { %v4860_v49 = vpop.permute.xlu0 %4859 }
0x6515   :  { %4862 = vst.msk [vmem:[#allocation3] sm:$0xff] %vm51_vm2, %v4860_v49 }
0x6518   :  { %v4868_v13 = vld [vmem:[#allocation2] sm:$0xff] }
0x6519   :  { %6768 = vmatmul.mubr.msk.f32.vlgmr.msra.gmra.mrb[48].mxu1 %vm42_vm1, %v4868_v13 }
0x651a   :  { %7297 = vmatpush3.bf16.msra.mxu1 %v8656_v19  ;;  %6778 = vmatprep.mubr.msk.f32.mxu1 %vm7662_vm0, %v8832_v52 }
0x651b   :  { %7298 = vmatprep.subr.bf16.mxu1 %v7661_v3 }
0x651e   :  { %7300 = vmatpush3.bf16.msra.mxu1 %v8662_v25  ;;  %v4964_v25 = vld [vmem:[#allocation3] sm:$0xff] }
0x651f   :  { %7325 = vmatprep.subr.bf16.mxu1 %v7661_v3 }
0x65ec   :  { %v4953_v35 = vpop.f32.mrb[48].mxu1 }
0x65ed   :  { %v4954_v40 = vadd.f32 %v8640_v8, %v4953_v35  ;;  %v6769_v47 = vpop.f32.mrb[49].mxu1 }
0x65ee   :  { %v5330_v47 = vld [vmem:[%s9024_s7 + $0x8] sm:$0xff] }
0x65ef   :  { %7610 = vtanh.f32 %v4954_v40  ;;  %v5671_v53 = vmul.f32 -1.442695, %v4954_v40  ;;  %v5329_v40 = vld [vmem:[%s9024_s7] sm:$0xff] }
0x65f1   :  { %7612 = vpow2.f32 %v5671_v53  ;;  %v7332_v53 = vpack.c.bf16 %v5330_v47, %v5329_v40 }
0x65f9   :  { %v7611_v51 = vpop.eup %7610 }
0x65fa   :  { %4967 = vrot.lane.b32.xlu1 %v7611_v51, %s7664_s13  ;;  %v5331_v51 = vld [vmem:[%s9024_s7 + $0x10] sm:$0xff] }
0x65fb   :  { %v7613_v19 = vpop.eup %7612 }
0x65fc   :  { %v4960_v59 = vadd.f32 1.0, %v7613_v19  ;;  %v5332_v19 = vld [vmem:[%s9024_s7 + $0x18] sm:$0xff] }
0x65fe   :  { %7614 = vrcp.f32 %v4960_v59  ;;  %v7335_v59 = vpack.c.bf16 %v5332_v19, %v5331_v51 }
0x6608   :  { %v7615_v55 = vpop.eup %7614 }
0x6609   :  { %v4965_v28 = vmul.f32 %v7615_v55, %v4964_v25 }
0x666c   :  { %v4968_v56 = vpop.permute.xlu1 %4967 }
0x666d   :  { %v4970_v58 = vmul.f32 %v7615_v55, %v4968_v56  ;;  %v5333_v56 = vld [vmem:[%s9024_s7 + $0x20] sm:$0xff] }
0x666f   :  { %4972 = vrot.lane.b32.xlu1 %v4970_v58, %s7665_s14  ;;  %v5334_v58 = vld [vmem:[%s9024_s7 + $0x28] sm:$0xff] }
0x6670   :  { %v7338_v25 = vpack.c.bf16 %v5334_v58, %v5333_v56 }
0x66e1   :  { %v4973_v61 = vpop.permute.xlu1 %4972 }
0x66e2   :  { %v4975_v45 = vadd.f32 %v4973_v61, %v4965_v28  ;;  %v5335_v28 = vld [vmem:[%s9024_s7 + $0x30] sm:$0xff]  ;;  %v5336_v61 = vld [vmem:[%s9024_s7 + $0x38] sm:$0xff] }
0x66e4   :  { %7616 = vtanh.f32 %v4975_v45  ;;  %4982 = vst.msk [vmem:[#allocation3] sm:$0xff] %vm279_vm3, %v4975_v45  ;;  %v7341_v45 = vpack.c.bf16 %v5336_v61, %v5335_v28 }
0x66eb   :  { %v5296_v6 = vld [vmem:[#allocation3] sm:$0xff] }
0x66ee   :  { %v7617_v8 = vpop.eup %7616 }
0x66ef   :  { %4978 = vrot.lane.b32.xlu0 %v7617_v8, %s7664_s13 }
0x6761   :  { %v4979_v4 = vpop.permute.xlu0 %4978 }
0x6762   :  { %v4981_v36 = vmul.f32 %v7615_v55, %v4979_v4 }
0x6764   :  { %4984 = vrot.lane.b32.xlu1 %v4981_v36, %s7664_s13 }
0x67d6   :  { %v4985_v0 = vpop.permute.xlu1 %4984 }
0x67d7   :  { %4987 = vst.msk [vmem:[#allocation2] sm:$0xff] %vm279_vm3, %v4985_v0 }
0x67de   :  { %v4988_v60 = vld [vmem:[#allocation2] sm:$0xff] }
0x67df   :  { %5001 = vrot.lane.b32.xlu0 %v4988_v60, %s7666_s15 }
0x6851   :  { %v5002_v46 = vpop.permute.xlu0 %5001 }
0x6852   :  { %6779 = vmatmul.mubr.msk.f32.vlgmr.msra.gmra.mrb[50].mxu1 %vm51_vm2, %v5002_v46  ;;  %v5680_v46 = vld [vmem:[%s9025_s8] ss:$0 sm:$0xff] }
0x6853   :  { %7327 = vmatpush3.bf16.msra.mxu1 %v8676_v32  ;;  %6824 = vmatprep.mubr.msk.f32.mxu1 %vm7662_vm0, %v8832_v52 }
0x6854   :  { %7328 = vmatprep.subr.bf16.mxu1 %v7661_v3 }
0x6857   :  { %7330 = vmatpush3.bf16.msra.mxu1 %v8686_v41  ;;  %v5192_v41 = vrot.slane %v5676_v54, %v8433_v27 }
0x6858   :  { %7331 = vmatprep.subr.bf16.mxu1 %v7661_v3 }
0x685a   :  { %6825 = vmatmul.mubr.msk.f32.vlgmr.msra.gmra.mrb[52].mxu1 %vm51_vm2, %v4988_v60 }
0x685b   :  { %6843 = vmatprep.mubr.msk.f32.mxu1 %vm7662_vm0, %v8832_v52  ;;  %7333 = vmatpush3.bf16.msra.mxu1 %v7332_v53 }
0x685c   :  { %7334 = vmatprep.subr.bf16.mxu1 %v7661_v3 }
0x685f   :  { %7336 = vmatpush3.bf16.msra.mxu1 %v7335_v59 }
0x6860   :  { %7337 = vmatprep.subr.bf16.mxu1 %v7661_v3 }
0x6863   :  { %7339 = vmatpush3.bf16.msra.mxu1 %v7338_v25 }
0x6864   :  { %7340 = vmatprep.subr.bf16.mxu1 %v7661_v3 }
0x6867   :  { %7342 = vmatpush3.bf16.msra.mxu1 %v7341_v45 }
0x6868   :  { %7343 = vmatprep.subr.bf16.mxu1 %v7661_v3 }
0x6925   :  { %v5071_v30 = vpop.f32.mrb[50].mxu1 }
0x6926   :  { %v5072_v5 = vadd.f32 %v8707_v44, %v5071_v30  ;;  %v6780_v9 = vpop.f32.mrb[51].mxu1 }
0x6928   :  { %5076 = vst [vmem:[#allocation4 + $0x30] sm:$0xff] %v5072_v5  ;;  %5077 = vmax.xlane.f32.xlu1 %v5072_v5 }
0x692d   :  { %v5284_v32 = vpop.f32.mrb[52].mxu1 }
0x692e   :  { %v6826_v33 = vpop.f32.mrb[53].mxu1 }
0x6939   :  { %5194 = vperm.xlu1 %7360, %v5192_v41  }
0x69b5   :  { %v5078_v1 = vpop.xlane.xlu1 %5077 }
0x69b6   :  { %vm5079_vm7 = vcmp.eq.f32.partialorder %v5072_v5, %v5078_v1 }
0x69b7   :  { %v5080_v2 = vsel %vm5079_vm7, %v8352_v57, 128 }
0x69b8   :  { %v5082_v39 = vshra.s32 %v5080_v2, 16  ;;  %v5081_v44 = vand.u32 65535, %v5080_v2 }
0x69b9   :  { %v5195_v23 = vpop.permute.xlu1 %5194 }
0x69ba   :  { %v5084_v50 = vcvt.s32.f32 %v5082_v39  ;;  %v5083_v16 = vcvt.s32.f32 %v5081_v44  ;;  %v5197_v11 = vmul.f32 %v5677_v34, %v5195_v23 }
0x69bc   :  { %5085 = vmin.xlane.f32.xlu0 %v5084_v50 }
0x6a49   :  { %v5086_v62 = vpop.xlane.xlu0 %5085 }
0x6a4a   :  { %vm5087_vm8 = vcmp.eq.f32.partialorder %v5084_v50, %v5086_v62  ;;  %v5092_v42 = vcvt.f32.s32 %v5086_v62 }
0x6a4b   :  { %v5088_v7 = vsel %vm5087_vm8, %v5083_v16, inf }
0x6a4c   :  { %5089 = vmin.xlane.f32.xlu0 %v5088_v7  ;;  %v5093_v17 = vshll.u32 %v5092_v42, 16  ;;  %v5449_v7 = vld [vmem:[%s9027_s10] sm:$0xff] }
0x6a4d   :  { %v7344_v42 = vpack.c.bf16 %v5450_v10, %v5449_v7 }
0x6a62   :  { %5205 = vperm.xlu0 %7361, %v5203_v12   ;;  %v5451_v12 = vld [vmem:[%s9027_s10 + $0x10] sm:$0xff] }
0x6ad9   :  { %v5090_v14 = vpop.xlane.xlu0 %5089 }
0x6ada   :  { %v5091_v18 = vcvt.f32.s32 %v5090_v14  ;;  %v5452_v14 = vld [vmem:[%s9027_s10 + $0x18] sm:$0xff] }
0x6adc   :  { %v5094_v63 = vadd.s32 %v5093_v17, %v5091_v18 }
0x6ade   :  { %vm5095_vm9 = vcmp.eq.s32.totalorder %v8352_v57, %v5094_v63  ;;  %v7347_v63 = vpack.c.bf16 %v5452_v14, %v5451_v12 }
0x6adf   :  { %6814 = vmatmul.mubr.msk.f32.vlgmr.msra.gmra.mrb[34].mxu0 %vm5095_vm9, %v7668_v48 }
0x6ae1   :  { %v5206_v37 = vpop.permute.xlu0 %5205 }
0x6bb2   :  { %v5180_v38 = vpop.f32.mrb[34].mxu0 }
0x6bb3   :  { %v5208_v20 = vmul.f32 %v5206_v37, %v5180_v38  ;;  %v6815_v27 = vpop.f32.mrb[35].mxu0  ;;  %v5683_v38 = vld [vmem:[%s9028_s11] ss:$0 sm:$0xff] }
0x6bb5   :  { %v5209_v15 = vadd.f32 %v5208_v20, %v5197_v11 }
0x6bb7   :  { %v5288_v21 = vadd.f32 %v5284_v32, %v5209_v15 }
0x6bb9   :  { %7618 = vtanh.f32 %v5288_v21  ;;  %v5679_v57 = vmul.f32 -1.442695, %v5288_v21 }
0x6bbb   :  { %7620 = vpow2.f32 %v5679_v57 }
0x6bc3   :  { %v7619_v22 = vpop.eup %7618 }
0x6bc4   :  { %5303 = vrot.lane.b32.xlu1 %v7619_v22, %s7664_s13 }
0x6bc5   :  { %v7621_v48 = vpop.eup %7620 }
0x6bc6   :  { %v5292_v24 = vadd.f32 1.0, %v7621_v48 }
0x6bc8   :  { %5298 = vrot.lane.b32.xlu1 %v5296_v6, %s7665_s14  ;;  %7622 = vrcp.f32 %v5292_v24 }
0x6bd2   :  { %v7623_v26 = vpop.eup %7622 }
0x6c36   :  { %v5304_v29 = vpop.permute.xlu1 %5303 }
0x6c37   :  { %v5306_v43 = vmul.f32 %v7623_v26, %v5304_v29 }
0x6c39   :  { %5308 = vrot.lane.b32.xlu0 %v5306_v43, %s7665_s14 }
0x6c3a   :  { %v5299_v31 = vpop.permute.xlu1 %5298 }
0x6c3b   :  { %v5301_v49 = vmul.f32 %v7623_v26, %v5299_v31 }
0x6cab   :  { %v5309_v13 = vpop.permute.xlu0 %5308 }
0x6cac   :  { %v5311_v35 = vadd.f32 %v5309_v13, %v5301_v49 }
0x6cae   :  { %7624 = vtanh.f32 %v5311_v35 }
0x6cb8   :  { %v7625_v55 = vpop.eup %7624 }
0x6cb9   :  { %5314 = vrot.lane.b32.xlu1 %v7625_v55, %s7664_s13 }
0x6d2b   :  { %v5315_v8 = vpop.permute.xlu1 %5314 }
0x6d2c   :  { %v5317_v4 = vmul.f32 %v7623_v26, %v5315_v8 }
0x6d2e   :  { %5324 = vrot.lane.b32.xlu0 %v5317_v4, %s7665_s14 }
0x6d32   :  { %5319 = vrot.lane.b32.xlu0 %v5311_v35, %s7666_s15 }
0x6da0   :  { %v5325_v36 = vpop.permute.xlu0 %5324 }
0x6da1   :  { %5327 = vst.msk [vmem:[#allocation2] sm:$0xff] %vm51_vm2, %v5325_v36 }
0x6da4   :  { %v5320_v0 = vpop.permute.xlu0 %5319 }
0x6da5   :  { %5322 = vst.msk [vmem:[#allocation3] sm:$0xff] %vm51_vm2, %v5320_v0 }
0x6da8   :  { %v5328_v60 = vld [vmem:[#allocation2] sm:$0xff] }
0x6da9   :  { %6844 = vmatmul.mubr.msk.f32.vlgmr.msra.gmra.mrb[54].mxu1 %vm42_vm1, %v5328_v60 }
0x6daa   :  { %6854 = vmatprep.mubr.msk.f32.mxu1 %vm7662_vm0, %v8832_v52  ;;  %7345 = vmatpush3.bf16.msra.mxu1 %v7344_v42 }
0x6dab   :  { %7346 = vmatprep.subr.bf16.mxu1 %v7661_v3 }
0x6dac   :  { %v5424_v52 = vld [vmem:[#allocation3] sm:$0xff] }
0x6dae   :  { %7348 = vmatpush3.bf16.msra.mxu1 %v7347_v63 }
0x6e7c   :  { %v5413_v30 = vpop.f32.mrb[54].mxu1 }
0x6e7d   :  { %v5414_v5 = vadd.f32 %v5680_v46, %v5413_v30  ;;  %v6845_v9 = vpop.f32.mrb[55].mxu1 }
0x6e7f   :  { %7626 = vtanh.f32 %v5414_v5  ;;  %v5682_v33 = vmul.f32 -1.442695, %v5414_v5 }
0x6e81   :  { %7628 = vpow2.f32 %v5682_v33 }
0x6e89   :  { %v7627_v32 = vpop.eup %7626 }
0x6e8a   :  { %5427 = vrot.lane.b32.xlu1 %v7627_v32, %s7664_s13 }
0x6e8b   :  { %v7629_v54 = vpop.eup %7628 }
0x6e8c   :  { %v5420_v41 = vadd.f32 1.0, %v7629_v54 }
0x6e8e   :  { %7630 = vrcp.f32 %v5420_v41 }
0x6e98   :  { %v7631_v1 = vpop.eup %7630 }
0x6e99   :  { %v5425_v50 = vmul.f32 %v7631_v1, %v5424_v52 }
0x6efc   :  { %v5428_v2 = vpop.permute.xlu1 %5427 }
0x6efd   :  { %v5430_v39 = vmul.f32 %v7631_v1, %v5428_v2 }
0x6eff   :  { %5432 = vrot.lane.b32.xlu1 %v5430_v39, %s7665_s14 }
0x6f71   :  { %v5433_v44 = vpop.permute.xlu1 %5432 }
0x6f72   :  { %v5435_v16 = vadd.f32 %v5433_v44, %v5425_v50 }
0x6f74   :  { %7632 = vtanh.f32 %v5435_v16  ;;  %5442 = vst.msk [vmem:[#allocation3] sm:$0xff] %vm279_vm3, %v5435_v16 }
0x6f7e   :  { %v7633_v62 = vpop.eup %7632 }
0x6f7f   :  { %5438 = vrot.lane.b32.xlu0 %v7633_v62, %s7664_s13 }
0x6ff1   :  { %v5439_v17 = vpop.permute.xlu0 %5438 }
0x6ff2   :  { %v5441_v18 = vmul.f32 %v7631_v1, %v5439_v17 }
0x6ff4   :  { %5444 = vrot.lane.b32.xlu1 %v5441_v18, %s7664_s13  ;;  %s7637_s13 = scalar_lea.vmem %s5543_s18, 1024 }
0x6ff5   :  { %p7638_p0 = scmp.ne.s32.totalorder %s5543_s18, %s7637_s13  ;;  %p7643_p2 = scmp.lt.s32.totalorder %s7637_s13, %s7637_s13 }
0x6ff7   :  { %p7644_p3 = por %p7643_p2, %p7642_p1 }
0x6ff9   :  { %p7645_p4 = pnand %p7644_p3, %p7638_p0 }
0x7066   :  { %v5445_v34 = vpop.permute.xlu1 %5444 }
0x7067   :  { %5447 = vst.msk [vmem:[#allocation2] sm:$0xff] %vm279_vm3, %v5445_v34 }
0x706e   :  { %v5448_v23 = vld [vmem:[#allocation2] sm:$0xff] }
0x706f   :  { %5461 = vrot.lane.b32.xlu0 %v5448_v23, %s7666_s15 }
0x70e1   :  { %v5462_v37 = vpop.permute.xlu0 %5461 }
0x70e2   :  { %6855 = vmatmul.mubr.msk.f32.vlgmr.msra.gmra.mrb[56].mxu1 %vm51_vm2, %v5462_v37 }
0x71b5   :  { %v5531_v11 = vpop.f32.mrb[56].mxu1 }
0x71b6   :  { %v5532_v3 = vadd.f32 %v5683_v38, %v5531_v11  ;;  %v6856_v20 = vpop.f32.mrb[57].mxu1 }
0x71b8   :  { %5536 = vst [vmem:[#allocation4 + $0x38] sm:$0xff] %v5532_v3 }
0x71b9   :  { %7648 = shalt.err (!%p7645_p4)
}
0x71ba   :  { %s7649_s20 = scalar_lea.hbm %s9029_s12, 1024 }
0x71bb   :  { %p7650_p5 = scmp.ne.s32.totalorder %s9029_s12, %s7649_s20  ;;  %p7653_p6 = scmp.lt.u32.totalorder %s7649_s20, %s9029_s12 }
0x71bd   :  { %p7655_p7 = pnand %p7653_p6, %p7650_p5 }
0x71bf   :  { %7658 = shalt.err (!%p7655_p7)
}
0x71c0   :  { %s7670_s22 = smov 128   ;;  %s7671_s4 = smov 8  }
0x71c1   :  { %5548 = dma.vmem_to_hbm [thread:$0]  %s5543_s18, 1024, %s9029_s12, [#allocation5], %s7670_s22, %s7670_s22, %s7671_s4  }
0x71c2   :  { %7659 = dma.done.wait [#allocation5], 1024  }
0x71c3   :  { %7660 = vsyncadd [#allocation5], 4294966272 }
0x71c4   :  { %5552 = vsyncpa [#allocation5], 1 }

</bundles_post_ra>
